<compile_context>
chip_gen: v5e
topology: v5e:2x2
jax: 0.10.0
libtpu: 0.0.40
codegen_flags: <defaults>
</compile_context>

<pallas_src>
import math

import jax
import jax.numpy as jnp
from jax.experimental import pallas as pl
from jax.experimental.pallas import tpu as pltpu

# ----------------------------- model hyper-params (small) -----------------------------
BATCH = 2
IN_CH = 3
IMG = 32
PATCH = 8
N_PATCH = (IMG // PATCH) ** 2          # 16
SEQ = N_PATCH + 1                      # 17  (patches + cls token)
EMBED = 64                             # embed_dim (768 in the real vit_base)
HEADS = 4
HEAD_DIM = EMBED // HEADS              # 16
MLP_DIM = 4 * EMBED                    # 256
DEPTH = 2
HIDDEN = 32                            # classifier hidden_dim (512 in the reference)
NUM_CLASSES = 2

# ------------------------------- padded (lane-dense) layout ---------------------------
PDIM = IN_CH * PATCH * PATCH           # 192  (flattened patch length)
D_PAD = 128                            # EMBED padded to one full lane group
H_PAD = 128                            # classifier hidden padded
C_PAD = 128                            # logits padded (lane-dense store; sliced outside)
SEQ_PAD = 24                           # SEQ padded to a multiple of 8 sublanes
OUT_ROWS = 8                           # sublane-aligned output block rows per batch

PARAM_ORDER = (
    "patch_w", "patch_b", "pos_full",
    "qkv_w", "qkv_b", "proj_w", "proj_b",
    "fc1_w", "fc1_b", "fc2_w", "fc2_b",
    "norm_g", "norm_b", "attn_w", "attn_b",
    "cls_fc1_w", "cls_fc1_b", "cls_fc2_w", "cls_fc2_b",
)


# =============================== fused Pallas kernel ===============================

def _vit_kernel(xp_ref,
                patch_w_ref, patch_b_ref, pos_ref,
                qkv_w_ref, qkv_b_ref, proj_w_ref, proj_b_ref,
                fc1_w_ref, fc1_b_ref, fc2_w_ref, fc2_b_ref,
                norm_g_ref, norm_b_ref, attn_w_ref, attn_b_ref,
                cfc1_w_ref, cfc1_b_ref, cfc2_w_ref, cfc2_b_ref,
                out_ref):
    f32 = jnp.float32
    inv_d = 1.0 / EMBED
    inv_sqrt2 = 1.0 / math.sqrt(2.0)

    # Masks: real feature lanes (EMBED of D_PAD) and real tokens (SEQ of SEQ_PAD).
    lane_ids = jax.lax.broadcasted_iota(jnp.int32, (1, D_PAD), 1)
    lane_mask = (lane_ids < EMBED).astype(f32)                       # (1, D_PAD)
    key_ids = jax.lax.broadcasted_iota(jnp.int32, (1, SEQ_PAD), 1)
    key_neg = jnp.where(key_ids < SEQ, 0.0, -1e30).astype(f32)       # (1, SEQ_PAD)
    row_ids = jax.lax.broadcasted_iota(jnp.int32, (SEQ_PAD, 1), 0)
    tok_neg = jnp.where(row_ids < SEQ, 0.0, -1e30).astype(f32)       # (SEQ_PAD, 1)

    def ln_core(z, eps):
        # Padded feature lanes of the residual stream are exactly zero by
        # construction; the mean is therefore exact and the variance is
        # lane-masked.  Returns the normalized (un-affined) activations.
        mu = jnp.sum(z, axis=-1, keepdims=True) * inv_d
        zc = z - mu
        var = jnp.sum(zc * zc * lane_mask, axis=-1, keepdims=True) * inv_d
        return zc * jax.lax.rsqrt(var + eps)

    def gelu(z):  # exact erf GELU (matches torch.nn.GELU default)
        return 0.5 * z * (1.0 + jax.lax.erf(z * inv_sqrt2))

    def softmax_rows(s):
        m = jnp.max(s, axis=-1, keepdims=True)
        e = jnp.exp(s - m)
        return e * pl.reciprocal(jnp.sum(e, axis=-1, keepdims=True), approx=True)

    # ---- patch embedding + cls token + positional embedding -------------------------
    # token order inside the kernel: rows 0..15 = patches, row 16 = cls, rows 17..23 pad
    pe = jnp.dot(xp_ref[0], patch_w_ref[...],
                 preferred_element_type=f32) + patch_b_ref[...]       # (N_PATCH, D_PAD)
    x = jnp.concatenate(
        [pe, jnp.zeros((SEQ_PAD - N_PATCH, D_PAD), f32)], axis=0) + pos_ref[...]

    # ---- pre-LN transformer blocks ---------------------------------------------------
    for d in range(DEPTH):
        # attention sub-block:  x = x + proj(attn(LN1(x)))
        # (LN1 affine + attention scale already folded into qkv_w / qkv_b.)
        h = ln_core(x, 1e-6)
        qkv = jnp.dot(h, qkv_w_ref[d],
                      preferred_element_type=f32) + qkv_b_ref[d]      # (SEQ_PAD, 3*EMBED)
        attn_out = x + proj_b_ref[d]
        for hh in range(HEADS):
            lo = hh * HEAD_DIM
            q = qkv[:, lo:lo + HEAD_DIM]
            k = qkv[:, EMBED + lo:EMBED + lo + HEAD_DIM]
            v = qkv[:, 2 * EMBED + lo:2 * EMBED + lo + HEAD_DIM]
            s = jax.lax.dot_general(q, k, (((1,), (1,)), ((), ())),
                                    preferred_element_type=f32) + key_neg
            p = softmax_rows(s)                                       # (SEQ_PAD, SEQ_PAD)
            oh = jnp.dot(p, v, preferred_element_type=f32)            # (SEQ_PAD, HEAD_DIM)
            w_h = proj_w_ref[d, lo:lo + HEAD_DIM, :]                  # (HEAD_DIM, D_PAD)
            attn_out = attn_out + jnp.dot(oh, w_h, preferred_element_type=f32)
        x = attn_out

        # MLP sub-block:  x = x + fc2(gelu(fc1(LN2(x))))
        # (LN2 affine folded into fc1_w / fc1_b.)
        h = ln_core(x, 1e-6)
        h = gelu(jnp.dot(h, fc1_w_ref[d], preferred_element_type=f32) + fc1_b_ref[d])
        x = x + jnp.dot(h, fc2_w_ref[d], preferred_element_type=f32) + fc2_b_ref[d]

    # ---- final backbone LayerNorm (forward_features output == tokens) ---------------
    tokens = ln_core(x, 1e-6) * norm_g_ref[...] + norm_b_ref[...]     # (SEQ_PAD, D_PAD)

    # ---- attention pooling: softmax(Linear(D,1)(tokens)) along the token axis -------
    score = (jnp.sum(tokens * attn_w_ref[...], axis=-1, keepdims=True)
             + attn_b_ref[...] + tok_neg)                             # (SEQ_PAD, 1)
    m = jnp.max(score, axis=0, keepdims=True)
    e = jnp.exp(score - m)
    w = e * pl.reciprocal(jnp.sum(e, axis=0, keepdims=True), approx=True)
    weighted = jnp.sum(w * tokens, axis=0, keepdims=True)             # (1, D_PAD)

    # ---- classifier: LN -> (Dropout=Id) -> Linear -> ReLU -> (Dropout=Id) -> Linear -
    # (classifier-LN affine folded into cls_fc1_w / cls_fc1_b.)
    hc = ln_core(weighted, 1e-5)
    hc = jnp.maximum(
        jnp.dot(hc, cfc1_w_ref[...], preferred_element_type=f32) + cfc1_b_ref[...], 0.0)
    logits = jnp.dot(hc, cfc2_w_ref[...],
                     preferred_element_type=f32) + cfc2_b_ref[...]    # (1, C_PAD)

    out_ref[0, :, :] = jnp.broadcast_to(logits, (OUT_ROWS, C_PAD))


# =============================== parameters ===============================

def init_params(key):
    def nrm(k, shape, std=0.02):
        return std * jax.random.normal(k, shape, jnp.float32)

    keys = iter(jax.random.split(key, 8 + DEPTH * 6 + 8))
    p = {
        "patch_w": nrm(next(keys), (PDIM, EMBED)),
        "patch_b": jnp.zeros((EMBED,), jnp.float32),
        "cls_token": nrm(next(keys), (1, 1, EMBED)),
        "pos_embed": nrm(next(keys), (1, SEQ, EMBED)),
        "norm_g": jnp.ones((EMBED,), jnp.float32),
        "norm_b": jnp.zeros((EMBED,), jnp.float32),
        "attn_w": nrm(next(keys), (EMBED, 1)),
        "attn_b": jnp.zeros((1,), jnp.float32),
        "cls_ln_g": jnp.ones((EMBED,), jnp.float32),
        "cls_ln_b": jnp.zeros((EMBED,), jnp.float32),
        "cls_fc1_w": nrm(next(keys), (EMBED, HIDDEN)),
        "cls_fc1_b": jnp.zeros((HIDDEN,), jnp.float32),
        "cls_fc2_w": nrm(next(keys), (HIDDEN, NUM_CLASSES)),
        "cls_fc2_b": jnp.zeros((NUM_CLASSES,), jnp.float32),
        "blocks": [],
    }
    for _ in range(DEPTH):
        p["blocks"].append({
            "ln1_g": jnp.ones((EMBED,), jnp.float32),
            "ln1_b": jnp.zeros((EMBED,), jnp.float32),
            "qkv_w": nrm(next(keys), (EMBED, 3 * EMBED)),
            "qkv_b": jnp.zeros((3 * EMBED,), jnp.float32),
            "proj_w": nrm(next(keys), (EMBED, EMBED)),
            "proj_b": jnp.zeros((EMBED,), jnp.float32),
            "ln2_g": jnp.ones((EMBED,), jnp.float32),
            "ln2_b": jnp.zeros((EMBED,), jnp.float32),
            "fc1_w": nrm(next(keys), (EMBED, MLP_DIM)),
            "fc1_b": jnp.zeros((MLP_DIM,), jnp.float32),
            "fc2_w": nrm(next(keys), (MLP_DIM, EMBED)),
            "fc2_b": jnp.zeros((EMBED,), jnp.float32),
        })
    return p


def _pad_to(x, shape):
    return jnp.pad(x, [(0, t - s) for s, t in zip(x.shape, shape)])


def pack_params(p):
    """Pad/stack raw params into the lane-dense layout consumed by the fused kernel.

    - Zero padding keeps the padded feature lanes exactly zero throughout the
      residual stream (required by the masked LayerNorm statistics).
    - LN1/LN2/classifier-LN affine params and the attention scale are folded
      into the subsequent matmul weights & biases (exact algebraic fold)."""
    blocks = p["blocks"]
    scale = HEAD_DIM ** -0.5

    qkv_w_f, qkv_b_f, fc1_w_f, fc1_b_f = [], [], [], []
    for b in blocks:
        qw = b["qkv_w"] * b["ln1_g"][:, None]                 # (EMBED, 3*EMBED)
        qb = b["qkv_b"] + b["ln1_b"] @ b["qkv_w"]             # (3*EMBED,)
        # fold the attention scale into the Q third of the fused qkv projection
        qw = jnp.concatenate([qw[:, :EMBED] * scale, qw[:, EMBED:]], axis=1)
        qb = jnp.concatenate([qb[:EMBED] * scale, qb[EMBED:]], axis=0)
        qkv_w_f.append(qw)
        qkv_b_f.append(qb)

        fw = b["fc1_w"] * b["ln2_g"][:, None]                 # (EMBED, MLP_DIM)
        fb = b["fc1_b"] + b["ln2_b"] @ b["fc1_w"]             # (MLP_DIM,)
        fc1_w_f.append(fw)
        fc1_b_f.append(fb)

    def stk(name):
        return jnp.stack([b[name] for b in blocks], axis=0)

    pos = p["pos_embed"][0]                       # (SEQ, EMBED)
    cls_row = p["cls_token"][0] + pos[:1]         # (1, EMBED): cls token + its pos
    # kernel token order = [patches(0..15), cls(16), pad(17..23)]
    pos_perm = jnp.concatenate([pos[1:], cls_row], axis=0)            # (SEQ, EMBED)

    cfc1_w = p["cls_fc1_w"] * p["cls_ln_g"][:, None]                  # (EMBED, HIDDEN)
    cfc1_b = p["cls_fc1_b"] + p["cls_ln_b"] @ p["cls_fc1_w"]          # (HIDDEN,)

    return {
        "patch_w": _pad_to(p["patch_w"], (PDIM, D_PAD)),
        "patch_b": _pad_to(p["patch_b"][None, :], (1, D_PAD)),
        "pos_full": _pad_to(pos_perm, (SEQ_PAD, D_PAD)),
        "qkv_w": _pad_to(jnp.stack(qkv_w_f, 0), (DEPTH, D_PAD, 3 * EMBED)),
        "qkv_b": jnp.stack(qkv_b_f, 0)[:, None, :],
        "proj_w": _pad_to(stk("proj_w"), (DEPTH, D_PAD, D_PAD)),
        "proj_b": _pad_to(stk("proj_b")[:, None, :], (DEPTH, 1, D_PAD)),
        "fc1_w": _pad_to(jnp.stack(fc1_w_f, 0), (DEPTH, D_PAD, MLP_DIM)),
        "fc1_b": jnp.stack(fc1_b_f, 0)[:, None, :],
        "fc2_w": _pad_to(stk("fc2_w"), (DEPTH, MLP_DIM, D_PAD)),
        "fc2_b": _pad_to(stk("fc2_b")[:, None, :], (DEPTH, 1, D_PAD)),
        "norm_g": _pad_to(p["norm_g"][None, :], (1, D_PAD)),
        "norm_b": _pad_to(p["norm_b"][None, :], (1, D_PAD)),
        "attn_w": _pad_to(p["attn_w"].reshape(1, EMBED), (1, D_PAD)),
        "attn_b": p["attn_b"].reshape(1, 1),
        "cls_fc1_w": _pad_to(cfc1_w, (D_PAD, H_PAD)),
        "cls_fc1_b": _pad_to(cfc1_b[None, :], (1, H_PAD)),
        "cls_fc2_w": _pad_to(p["cls_fc2_w"], (H_PAD, C_PAD)),
        "cls_fc2_b": _pad_to(p["cls_fc2_b"][None, :], (1, C_PAD)),
    }


# =============================== forward ===============================

def enhanced_vit_forward(packed, x):
    # x: (B, C, H, W) float32, NCHW
    B, C, H, W = x.shape
    ph = PATCH
    # Patchify: Conv2d(C, D, k=p, s=p) == flatten each patch in (c, i, j) order + matmul.
    xp = x.reshape(B, C, H // ph, ph, W // ph, ph)
    xp = xp.transpose(0, 2, 4, 1, 3, 5).reshape(B, N_PATCH, PDIM)

    in_specs = [pl.BlockSpec((1, N_PATCH, PDIM), lambda b: (b, 0, 0))]
    operands = [xp]
    for name in PARAM_ORDER:
        arr = packed[name]
        in_specs.append(pl.BlockSpec(arr.shape, lambda b, _n=arr.ndim: (0,) * _n))
        operands.append(arr)

    out = pl.pallas_call(
        _vit_kernel,
        out_shape=jax.ShapeDtypeStruct((B, OUT_ROWS, C_PAD), jnp.float32),
        grid=(B,),
        in_specs=in_specs,
        out_specs=pl.BlockSpec((1, OUT_ROWS, C_PAD), lambda b: (b, 0, 0)),
        compiler_params=pltpu.CompilerParams(
            dimension_semantics=("parallel",)),   # v7x: one batch element per TensorCore
    )(*operands)
    return out[:, 0, :NUM_CLASSES]


# =============================== main ===============================

if __name__ == "__main__":
    x = jax.random.normal(jax.random.PRNGKey(0), (BATCH, IN_CH, IMG, IMG), jnp.float32)
    params = init_params(jax.random.PRNGKey(1))
    packed = pack_params(params)

    fwd = jax.jit(enhanced_vit_forward)
    out = jax.block_until_ready(fwd(packed, x))

    assert out.shape == (BATCH, NUM_CLASSES), out.shape
    assert bool(jnp.all(jnp.isfinite(out)))
    print("KERNEL_OK")
</pallas_src>

<mosaic_0001>
module attributes {stable_mosaic.version = 11 : i64} {
  func.func @_vit_kernel(%arg0: i32, %arg1: memref<1x16x192xf32, #tpu.memory_space<vmem>>, %arg2: memref<192x128xf32, #tpu.memory_space<vmem>>, %arg3: memref<1x128xf32, #tpu.memory_space<vmem>>, %arg4: memref<24x128xf32, #tpu.memory_space<vmem>>, %arg5: memref<2x128x192xf32, #tpu.memory_space<vmem>>, %arg6: memref<2x1x192xf32, #tpu.memory_space<vmem>>, %arg7: memref<2x128x128xf32, #tpu.memory_space<vmem>>, %arg8: memref<2x1x128xf32, #tpu.memory_space<vmem>>, %arg9: memref<2x128x256xf32, #tpu.memory_space<vmem>>, %arg10: memref<2x1x256xf32, #tpu.memory_space<vmem>>, %arg11: memref<2x256x128xf32, #tpu.memory_space<vmem>>, %arg12: memref<2x1x128xf32, #tpu.memory_space<vmem>>, %arg13: memref<1x128xf32, #tpu.memory_space<vmem>>, %arg14: memref<1x128xf32, #tpu.memory_space<vmem>>, %arg15: memref<1x128xf32, #tpu.memory_space<vmem>>, %arg16: memref<1x1xf32, #tpu.memory_space<vmem>>, %arg17: memref<128x128xf32, #tpu.memory_space<vmem>>, %arg18: memref<1x128xf32, #tpu.memory_space<vmem>>, %arg19: memref<128x128xf32, #tpu.memory_space<vmem>>, %arg20: memref<1x128xf32, #tpu.memory_space<vmem>>, %arg21: memref<1x8x128xf32, #tpu.memory_space<vmem>>) attributes {dimension_semantics = [#tpu.dimension_semantics<parallel>], iteration_bounds = array<i64: 2>, scalar_prefetch = 0 : i64, scratch_operands = 0 : i64, tpu.core_type = #tpu.core_type<tc>, window_params = [{transform_indices = @transform_0, window_bounds = array<i64: 1, 16, 192>}, {pipeline_mode = #tpu.pipeline_mode<synchronous>, transform_indices = @transform_1, window_bounds = array<i64: 192, 128>}, {pipeline_mode = #tpu.pipeline_mode<synchronous>, transform_indices = @transform_2, window_bounds = array<i64: 1, 128>}, {pipeline_mode = #tpu.pipeline_mode<synchronous>, transform_indices = @transform_3, window_bounds = array<i64: 24, 128>}, {pipeline_mode = #tpu.pipeline_mode<synchronous>, transform_indices = @transform_4, window_bounds = array<i64: 2, 128, 192>}, {pipeline_mode = #tpu.pipeline_mode<synchronous>, transform_indices = @transform_5, window_bounds = array<i64: 2, 1, 192>}, {pipeline_mode = #tpu.pipeline_mode<synchronous>, transform_indices = @transform_6, window_bounds = array<i64: 2, 128, 128>}, {pipeline_mode = #tpu.pipeline_mode<synchronous>, transform_indices = @transform_7, window_bounds = array<i64: 2, 1, 128>}, {pipeline_mode = #tpu.pipeline_mode<synchronous>, transform_indices = @transform_8, window_bounds = array<i64: 2, 128, 256>}, {pipeline_mode = #tpu.pipeline_mode<synchronous>, transform_indices = @transform_9, window_bounds = array<i64: 2, 1, 256>}, {pipeline_mode = #tpu.pipeline_mode<synchronous>, transform_indices = @transform_10, window_bounds = array<i64: 2, 256, 128>}, {pipeline_mode = #tpu.pipeline_mode<synchronous>, transform_indices = @transform_11, window_bounds = array<i64: 2, 1, 128>}, {pipeline_mode = #tpu.pipeline_mode<synchronous>, transform_indices = @transform_12, window_bounds = array<i64: 1, 128>}, {pipeline_mode = #tpu.pipeline_mode<synchronous>, transform_indices = @transform_13, window_bounds = array<i64: 1, 128>}, {pipeline_mode = #tpu.pipeline_mode<synchronous>, transform_indices = @transform_14, window_bounds = array<i64: 1, 128>}, {pipeline_mode = #tpu.pipeline_mode<synchronous>, transform_indices = @transform_15, window_bounds = array<i64: 1, 1>}, {pipeline_mode = #tpu.pipeline_mode<synchronous>, transform_indices = @transform_16, window_bounds = array<i64: 128, 128>}, {pipeline_mode = #tpu.pipeline_mode<synchronous>, transform_indices = @transform_17, window_bounds = array<i64: 1, 128>}, {pipeline_mode = #tpu.pipeline_mode<synchronous>, transform_indices = @transform_18, window_bounds = array<i64: 128, 128>}, {pipeline_mode = #tpu.pipeline_mode<synchronous>, transform_indices = @transform_19, window_bounds = array<i64: 1, 128>}, {transform_indices = @transform_20, window_bounds = array<i64: 1, 8, 128>}]} {
    %0 = tpu.iota {dimensions = array<i32: 1>} : vector<1x128xi32>
    %c64_i32 = arith.constant 64 : i32
    %1 = vector.broadcast %c64_i32 : i32 to vector<1x128xi32>
    %2 = arith.cmpi slt, %0, %1 : vector<1x128xi32>
    %3 = arith.extui %2 : vector<1x128xi1> to vector<1x128xi32>
    %4 = arith.sitofp %3 : vector<1x128xi32> to vector<1x128xf32>
    %5 = tpu.iota {dimensions = array<i32: 1>} : vector<1x24xi32>
    %c17_i32 = arith.constant 17 : i32
    %6 = vector.broadcast %c17_i32 : i32 to vector<1x24xi32>
    %7 = arith.cmpi slt, %5, %6 : vector<1x24xi32>
    %cst = arith.constant 0.000000e+00 : f32
    %cst_0 = arith.constant -1.000000e+30 : f32
    %8 = vector.broadcast %cst : f32 to vector<1x24xf32>
    %9 = vector.broadcast %cst_0 : f32 to vector<1x24xf32>
    %10 = arith.select %7, %8, %9 : vector<1x24xi1>, vector<1x24xf32>
    %11 = tpu.iota {dimensions = array<i32: 0>} : vector<24x1xi32>
    %c17_i32_1 = arith.constant 17 : i32
    %12 = vector.broadcast %c17_i32_1 : i32 to vector<24x1xi32>
    %13 = arith.cmpi slt, %11, %12 : vector<24x1xi32>
    %cst_2 = arith.constant 0.000000e+00 : f32
    %cst_3 = arith.constant -1.000000e+30 : f32
    %14 = vector.broadcast %cst_2 : f32 to vector<24x1xf32>
    %15 = vector.broadcast %cst_3 : f32 to vector<24x1xf32>
    %16 = arith.select %13, %14, %15 : vector<24x1xi1>, vector<24x1xf32>
    %c0 = arith.constant 0 : index
    %c0_4 = arith.constant 0 : index
    %c0_5 = arith.constant 0 : index
    %17 = vector.load %arg1[%c0, %c0_4, %c0_5] : memref<1x16x192xf32, #tpu.memory_space<vmem>>, vector<1x16x192xf32>
    %18 = vector.shape_cast %17 : vector<1x16x192xf32> to vector<16x192xf32>
    %c0_6 = arith.constant 0 : index
    %c0_7 = arith.constant 0 : index
    %19 = vector.load %arg2[%c0_6, %c0_7] : memref<192x128xf32, #tpu.memory_space<vmem>>, vector<192x128xf32>
    %cst_8 = arith.constant dense<0.000000e+00> : vector<16x128xf32>
    %20 = tpu.matmul %18, %19, %cst_8 {dimension_numbers = #tpu.dot_dimension_numbers<[1], [0], [0], [1], [0, 0, 1, 1], [], []>} : vector<16x192xf32>, vector<192x128xf32>, vector<16x128xf32> -> vector<16x128xf32>
    %c0_9 = arith.constant 0 : index
    %c0_10 = arith.constant 0 : index
    %21 = vector.load %arg3[%c0_9, %c0_10] : memref<1x128xf32, #tpu.memory_space<vmem>>, vector<1x128xf32>
    %22 = vector.broadcast %21 : vector<1x128xf32> to vector<16x128xf32>
    %23 = arith.addf %20, %22 : vector<16x128xf32>
    %cst_11 = arith.constant 0.000000e+00 : f32
    %24 = vector.broadcast %cst_11 : f32 to vector<8x128xf32>
    %25 = tpu.concatenate %23, %24 in 0 : vector<16x128xf32>, vector<8x128xf32> -> vector<24x128xf32>
    %c0_12 = arith.constant 0 : index
    %c0_13 = arith.constant 0 : index
    %26 = vector.load %arg4[%c0_12, %c0_13] : memref<24x128xf32, #tpu.memory_space<vmem>>, vector<24x128xf32>
    %27 = arith.addf %25, %26 : vector<24x128xf32>
    %cst_14 = arith.constant dense<0.000000e+00> : vector<24xf32>
    %28 = vector.multi_reduction <add>, %27, %cst_14 [1] : vector<24x128xf32> to vector<24xf32>
    %29 = vector.shape_cast %28 : vector<24xf32> to vector<24x1xf32>
    %cst_15 = arith.constant 1.562500e-02 : f32
    %30 = vector.broadcast %cst_15 : f32 to vector<24x1xf32>
    %31 = arith.mulf %29, %30 : vector<24x1xf32>
    %32 = vector.broadcast %31 : vector<24x1xf32> to vector<24x128xf32>
    %33 = arith.subf %27, %32 : vector<24x128xf32>
    %34 = arith.mulf %33, %33 : vector<24x128xf32>
    %35 = vector.broadcast %4 : vector<1x128xf32> to vector<24x128xf32>
    %36 = arith.mulf %34, %35 : vector<24x128xf32>
    %cst_16 = arith.constant dense<0.000000e+00> : vector<24xf32>
    %37 = vector.multi_reduction <add>, %36, %cst_16 [1] : vector<24x128xf32> to vector<24xf32>
    %38 = vector.shape_cast %37 : vector<24xf32> to vector<24x1xf32>
    %cst_17 = arith.constant 1.562500e-02 : f32
    %39 = vector.broadcast %cst_17 : f32 to vector<24x1xf32>
    %40 = arith.mulf %38, %39 : vector<24x1xf32>
    %cst_18 = arith.constant 9.99999997E-7 : f32
    %41 = vector.broadcast %cst_18 : f32 to vector<24x1xf32>
    %42 = arith.addf %40, %41 : vector<24x1xf32>
    %43 = math.rsqrt %42 : vector<24x1xf32>
    %44 = vector.broadcast %43 : vector<24x1xf32> to vector<24x128xf32>
    %45 = arith.mulf %33, %44 : vector<24x128xf32>
    %c0_19 = arith.constant 0 : index
    %c0_20 = arith.constant 0 : index
    %c0_21 = arith.constant 0 : index
    %46 = vector.load %arg5[%c0_19, %c0_20, %c0_21] : memref<2x128x192xf32, #tpu.memory_space<vmem>>, vector<1x128x192xf32>
    %47 = vector.shape_cast %46 : vector<1x128x192xf32> to vector<128x192xf32>
    %cst_22 = arith.constant dense<0.000000e+00> : vector<24x192xf32>
    %48 = tpu.matmul %45, %47, %cst_22 {dimension_numbers = #tpu.dot_dimension_numbers<[1], [0], [0], [1], [0, 0, 1, 1], [], []>} : vector<24x128xf32>, vector<128x192xf32>, vector<24x192xf32> -> vector<24x192xf32>
    %c0_23 = arith.constant 0 : index
    %c0_24 = arith.constant 0 : index
    %c0_25 = arith.constant 0 : index
    %49 = vector.load %arg6[%c0_23, %c0_24, %c0_25] : memref<2x1x192xf32, #tpu.memory_space<vmem>>, vector<1x1x192xf32>
    %50 = vector.shape_cast %49 : vector<1x1x192xf32> to vector<1x192xf32>
    %51 = vector.broadcast %50 : vector<1x192xf32> to vector<24x192xf32>
    %52 = arith.addf %48, %51 : vector<24x192xf32>
    %c0_26 = arith.constant 0 : index
    %c0_27 = arith.constant 0 : index
    %c0_28 = arith.constant 0 : index
    %53 = vector.load %arg8[%c0_26, %c0_27, %c0_28] : memref<2x1x128xf32, #tpu.memory_space<vmem>>, vector<1x1x128xf32>
    %54 = vector.shape_cast %53 : vector<1x1x128xf32> to vector<1x128xf32>
    %55 = vector.broadcast %54 : vector<1x128xf32> to vector<24x128xf32>
    %56 = arith.addf %27, %55 : vector<24x128xf32>
    %57 = vector.extract_strided_slice %52 {offsets = [0, 0], sizes = [24, 16], strides = [1, 1]} : vector<24x192xf32> to vector<24x16xf32>
    %58 = vector.extract_strided_slice %52 {offsets = [0, 64], sizes = [24, 16], strides = [1, 1]} : vector<24x192xf32> to vector<24x16xf32>
    %59 = vector.extract_strided_slice %52 {offsets = [0, 128], sizes = [24, 16], strides = [1, 1]} : vector<24x192xf32> to vector<24x16xf32>
    %cst_29 = arith.constant dense<0.000000e+00> : vector<24x24xf32>
    %60 = tpu.matmul %57, %58, %cst_29 {dimension_numbers = #tpu.dot_dimension_numbers<[1], [1], [0], [0], [0, 0, 1, 0], [], []>} : vector<24x16xf32>, vector<24x16xf32>, vector<24x24xf32> -> vector<24x24xf32>
    %61 = vector.broadcast %10 : vector<1x24xf32> to vector<24x24xf32>
    %62 = arith.addf %60, %61 : vector<24x24xf32>
    %cst_30 = arith.constant dense<0xFF800000> : vector<24xf32>
    %63 = vector.multi_reduction <maximumf>, %62, %cst_30 [1] : vector<24x24xf32> to vector<24xf32>
    %64 = vector.shape_cast %63 : vector<24xf32> to vector<24x1xf32>
    %65 = vector.broadcast %64 : vector<24x1xf32> to vector<24x24xf32>
    %66 = arith.subf %62, %65 : vector<24x24xf32>
    %67 = math.exp %66 : vector<24x24xf32>
    %cst_31 = arith.constant dense<0.000000e+00> : vector<24xf32>
    %68 = vector.multi_reduction <add>, %67, %cst_31 [1] : vector<24x24xf32> to vector<24xf32>
    %69 = vector.shape_cast %68 : vector<24xf32> to vector<24x1xf32>
    %70 = tpu.reciprocal %69 {approx = true} : vector<24x1xf32> -> vector<24x1xf32>
    %71 = vector.broadcast %70 : vector<24x1xf32> to vector<24x24xf32>
    %72 = arith.mulf %67, %71 : vector<24x24xf32>
    %cst_32 = arith.constant dense<0.000000e+00> : vector<24x16xf32>
    %73 = tpu.matmul %72, %59, %cst_32 {dimension_numbers = #tpu.dot_dimension_numbers<[1], [0], [0], [1], [0, 0, 1, 1], [], []>} : vector<24x24xf32>, vector<24x16xf32>, vector<24x16xf32> -> vector<24x16xf32>
    %c0_33 = arith.constant 0 : index
    %c0_34 = arith.constant 0 : index
    %c0_35 = arith.constant 0 : index
    %74 = vector.load %arg7[%c0_33, %c0_34, %c0_35] : memref<2x128x128xf32, #tpu.memory_space<vmem>>, vector<1x16x128xf32>
    %75 = vector.shape_cast %74 : vector<1x16x128xf32> to vector<16x128xf32>
    %cst_36 = arith.constant dense<0.000000e+00> : vector<24x128xf32>
    %76 = tpu.matmul %73, %75, %cst_36 {dimension_numbers = #tpu.dot_dimension_numbers<[1], [0], [0], [1], [0, 0, 1, 1], [], []>} : vector<24x16xf32>, vector<16x128xf32>, vector<24x128xf32> -> vector<24x128xf32>
    %77 = arith.addf %56, %76 : vector<24x128xf32>
    %78 = vector.extract_strided_slice %52 {offsets = [0, 16], sizes = [24, 16], strides = [1, 1]} : vector<24x192xf32> to vector<24x16xf32>
    %79 = vector.extract_strided_slice %52 {offsets = [0, 80], sizes = [24, 16], strides = [1, 1]} : vector<24x192xf32> to vector<24x16xf32>
    %80 = vector.extract_strided_slice %52 {offsets = [0, 144], sizes = [24, 16], strides = [1, 1]} : vector<24x192xf32> to vector<24x16xf32>
    %cst_37 = arith.constant dense<0.000000e+00> : vector<24x24xf32>
    %81 = tpu.matmul %78, %79, %cst_37 {dimension_numbers = #tpu.dot_dimension_numbers<[1], [1], [0], [0], [0, 0, 1, 0], [], []>} : vector<24x16xf32>, vector<24x16xf32>, vector<24x24xf32> -> vector<24x24xf32>
    %82 = vector.broadcast %10 : vector<1x24xf32> to vector<24x24xf32>
    %83 = arith.addf %81, %82 : vector<24x24xf32>
    %cst_38 = arith.constant dense<0xFF800000> : vector<24xf32>
    %84 = vector.multi_reduction <maximumf>, %83, %cst_38 [1] : vector<24x24xf32> to vector<24xf32>
    %85 = vector.shape_cast %84 : vector<24xf32> to vector<24x1xf32>
    %86 = vector.broadcast %85 : vector<24x1xf32> to vector<24x24xf32>
    %87 = arith.subf %83, %86 : vector<24x24xf32>
    %88 = math.exp %87 : vector<24x24xf32>
    %cst_39 = arith.constant dense<0.000000e+00> : vector<24xf32>
    %89 = vector.multi_reduction <add>, %88, %cst_39 [1] : vector<24x24xf32> to vector<24xf32>
    %90 = vector.shape_cast %89 : vector<24xf32> to vector<24x1xf32>
    %91 = tpu.reciprocal %90 {approx = true} : vector<24x1xf32> -> vector<24x1xf32>
    %92 = vector.broadcast %91 : vector<24x1xf32> to vector<24x24xf32>
    %93 = arith.mulf %88, %92 : vector<24x24xf32>
    %cst_40 = arith.constant dense<0.000000e+00> : vector<24x16xf32>
    %94 = tpu.matmul %93, %80, %cst_40 {dimension_numbers = #tpu.dot_dimension_numbers<[1], [0], [0], [1], [0, 0, 1, 1], [], []>} : vector<24x24xf32>, vector<24x16xf32>, vector<24x16xf32> -> vector<24x16xf32>
    %c0_41 = arith.constant 0 : index
    %c16 = arith.constant 16 : index
    %c0_42 = arith.constant 0 : index
    %95 = vector.load %arg7[%c0_41, %c16, %c0_42] : memref<2x128x128xf32, #tpu.memory_space<vmem>>, vector<1x16x128xf32>
    %96 = vector.shape_cast %95 : vector<1x16x128xf32> to vector<16x128xf32>
    %cst_43 = arith.constant dense<0.000000e+00> : vector<24x128xf32>
    %97 = tpu.matmul %94, %96, %cst_43 {dimension_numbers = #tpu.dot_dimension_numbers<[1], [0], [0], [1], [0, 0, 1, 1], [], []>} : vector<24x16xf32>, vector<16x128xf32>, vector<24x128xf32> -> vector<24x128xf32>
    %98 = arith.addf %77, %97 : vector<24x128xf32>
    %99 = vector.extract_strided_slice %52 {offsets = [0, 32], sizes = [24, 16], strides = [1, 1]} : vector<24x192xf32> to vector<24x16xf32>
    %100 = vector.extract_strided_slice %52 {offsets = [0, 96], sizes = [24, 16], strides = [1, 1]} : vector<24x192xf32> to vector<24x16xf32>
    %101 = vector.extract_strided_slice %52 {offsets = [0, 160], sizes = [24, 16], strides = [1, 1]} : vector<24x192xf32> to vector<24x16xf32>
    %cst_44 = arith.constant dense<0.000000e+00> : vector<24x24xf32>
    %102 = tpu.matmul %99, %100, %cst_44 {dimension_numbers = #tpu.dot_dimension_numbers<[1], [1], [0], [0], [0, 0, 1, 0], [], []>} : vector<24x16xf32>, vector<24x16xf32>, vector<24x24xf32> -> vector<24x24xf32>
    %103 = vector.broadcast %10 : vector<1x24xf32> to vector<24x24xf32>
    %104 = arith.addf %102, %103 : vector<24x24xf32>
    %cst_45 = arith.constant dense<0xFF800000> : vector<24xf32>
    %105 = vector.multi_reduction <maximumf>, %104, %cst_45 [1] : vector<24x24xf32> to vector<24xf32>
    %106 = vector.shape_cast %105 : vector<24xf32> to vector<24x1xf32>
    %107 = vector.broadcast %106 : vector<24x1xf32> to vector<24x24xf32>
    %108 = arith.subf %104, %107 : vector<24x24xf32>
    %109 = math.exp %108 : vector<24x24xf32>
    %cst_46 = arith.constant dense<0.000000e+00> : vector<24xf32>
    %110 = vector.multi_reduction <add>, %109, %cst_46 [1] : vector<24x24xf32> to vector<24xf32>
    %111 = vector.shape_cast %110 : vector<24xf32> to vector<24x1xf32>
    %112 = tpu.reciprocal %111 {approx = true} : vector<24x1xf32> -> vector<24x1xf32>
    %113 = vector.broadcast %112 : vector<24x1xf32> to vector<24x24xf32>
    %114 = arith.mulf %109, %113 : vector<24x24xf32>
    %cst_47 = arith.constant dense<0.000000e+00> : vector<24x16xf32>
    %115 = tpu.matmul %114, %101, %cst_47 {dimension_numbers = #tpu.dot_dimension_numbers<[1], [0], [0], [1], [0, 0, 1, 1], [], []>} : vector<24x24xf32>, vector<24x16xf32>, vector<24x16xf32> -> vector<24x16xf32>
    %c0_48 = arith.constant 0 : index
    %c32 = arith.constant 32 : index
    %c0_49 = arith.constant 0 : index
    %116 = vector.load %arg7[%c0_48, %c32, %c0_49] : memref<2x128x128xf32, #tpu.memory_space<vmem>>, vector<1x16x128xf32>
    %117 = vector.shape_cast %116 : vector<1x16x128xf32> to vector<16x128xf32>
    %cst_50 = arith.constant dense<0.000000e+00> : vector<24x128xf32>
    %118 = tpu.matmul %115, %117, %cst_50 {dimension_numbers = #tpu.dot_dimension_numbers<[1], [0], [0], [1], [0, 0, 1, 1], [], []>} : vector<24x16xf32>, vector<16x128xf32>, vector<24x128xf32> -> vector<24x128xf32>
    %119 = arith.addf %98, %118 : vector<24x128xf32>
    %120 = vector.extract_strided_slice %52 {offsets = [0, 48], sizes = [24, 16], strides = [1, 1]} : vector<24x192xf32> to vector<24x16xf32>
    %121 = vector.extract_strided_slice %52 {offsets = [0, 112], sizes = [24, 16], strides = [1, 1]} : vector<24x192xf32> to vector<24x16xf32>
    %122 = vector.extract_strided_slice %52 {offsets = [0, 176], sizes = [24, 16], strides = [1, 1]} : vector<24x192xf32> to vector<24x16xf32>
    %cst_51 = arith.constant dense<0.000000e+00> : vector<24x24xf32>
    %123 = tpu.matmul %120, %121, %cst_51 {dimension_numbers = #tpu.dot_dimension_numbers<[1], [1], [0], [0], [0, 0, 1, 0], [], []>} : vector<24x16xf32>, vector<24x16xf32>, vector<24x24xf32> -> vector<24x24xf32>
    %124 = vector.broadcast %10 : vector<1x24xf32> to vector<24x24xf32>
    %125 = arith.addf %123, %124 : vector<24x24xf32>
    %cst_52 = arith.constant dense<0xFF800000> : vector<24xf32>
    %126 = vector.multi_reduction <maximumf>, %125, %cst_52 [1] : vector<24x24xf32> to vector<24xf32>
    %127 = vector.shape_cast %126 : vector<24xf32> to vector<24x1xf32>
    %128 = vector.broadcast %127 : vector<24x1xf32> to vector<24x24xf32>
    %129 = arith.subf %125, %128 : vector<24x24xf32>
    %130 = math.exp %129 : vector<24x24xf32>
    %cst_53 = arith.constant dense<0.000000e+00> : vector<24xf32>
    %131 = vector.multi_reduction <add>, %130, %cst_53 [1] : vector<24x24xf32> to vector<24xf32>
    %132 = vector.shape_cast %131 : vector<24xf32> to vector<24x1xf32>
    %133 = tpu.reciprocal %132 {approx = true} : vector<24x1xf32> -> vector<24x1xf32>
    %134 = vector.broadcast %133 : vector<24x1xf32> to vector<24x24xf32>
    %135 = arith.mulf %130, %134 : vector<24x24xf32>
    %cst_54 = arith.constant dense<0.000000e+00> : vector<24x16xf32>
    %136 = tpu.matmul %135, %122, %cst_54 {dimension_numbers = #tpu.dot_dimension_numbers<[1], [0], [0], [1], [0, 0, 1, 1], [], []>} : vector<24x24xf32>, vector<24x16xf32>, vector<24x16xf32> -> vector<24x16xf32>
    %c0_55 = arith.constant 0 : index
    %c48 = arith.constant 48 : index
    %c0_56 = arith.constant 0 : index
    %137 = vector.load %arg7[%c0_55, %c48, %c0_56] : memref<2x128x128xf32, #tpu.memory_space<vmem>>, vector<1x16x128xf32>
    %138 = vector.shape_cast %137 : vector<1x16x128xf32> to vector<16x128xf32>
    %cst_57 = arith.constant dense<0.000000e+00> : vector<24x128xf32>
    %139 = tpu.matmul %136, %138, %cst_57 {dimension_numbers = #tpu.dot_dimension_numbers<[1], [0], [0], [1], [0, 0, 1, 1], [], []>} : vector<24x16xf32>, vector<16x128xf32>, vector<24x128xf32> -> vector<24x128xf32>
    %140 = arith.addf %119, %139 : vector<24x128xf32>
    %cst_58 = arith.constant dense<0.000000e+00> : vector<24xf32>
    %141 = vector.multi_reduction <add>, %140, %cst_58 [1] : vector<24x128xf32> to vector<24xf32>
    %142 = vector.shape_cast %141 : vector<24xf32> to vector<24x1xf32>
    %cst_59 = arith.constant 1.562500e-02 : f32
    %143 = vector.broadcast %cst_59 : f32 to vector<24x1xf32>
    %144 = arith.mulf %142, %143 : vector<24x1xf32>
    %145 = vector.broadcast %144 : vector<24x1xf32> to vector<24x128xf32>
    %146 = arith.subf %140, %145 : vector<24x128xf32>
    %147 = arith.mulf %146, %146 : vector<24x128xf32>
    %148 = vector.broadcast %4 : vector<1x128xf32> to vector<24x128xf32>
    %149 = arith.mulf %147, %148 : vector<24x128xf32>
    %cst_60 = arith.constant dense<0.000000e+00> : vector<24xf32>
    %150 = vector.multi_reduction <add>, %149, %cst_60 [1] : vector<24x128xf32> to vector<24xf32>
    %151 = vector.shape_cast %150 : vector<24xf32> to vector<24x1xf32>
    %cst_61 = arith.constant 1.562500e-02 : f32
    %152 = vector.broadcast %cst_61 : f32 to vector<24x1xf32>
    %153 = arith.mulf %151, %152 : vector<24x1xf32>
    %cst_62 = arith.constant 9.99999997E-7 : f32
    %154 = vector.broadcast %cst_62 : f32 to vector<24x1xf32>
    %155 = arith.addf %153, %154 : vector<24x1xf32>
    %156 = math.rsqrt %155 : vector<24x1xf32>
    %157 = vector.broadcast %156 : vector<24x1xf32> to vector<24x128xf32>
    %158 = arith.mulf %146, %157 : vector<24x128xf32>
    %c0_63 = arith.constant 0 : index
    %c0_64 = arith.constant 0 : index
    %c0_65 = arith.constant 0 : index
    %159 = vector.load %arg9[%c0_63, %c0_64, %c0_65] : memref<2x128x256xf32, #tpu.memory_space<vmem>>, vector<1x128x256xf32>
    %160 = vector.shape_cast %159 : vector<1x128x256xf32> to vector<128x256xf32>
    %cst_66 = arith.constant dense<0.000000e+00> : vector<24x256xf32>
    %161 = tpu.matmul %158, %160, %cst_66 {dimension_numbers = #tpu.dot_dimension_numbers<[1], [0], [0], [1], [0, 0, 1, 1], [], []>} : vector<24x128xf32>, vector<128x256xf32>, vector<24x256xf32> -> vector<24x256xf32>
    %c0_67 = arith.constant 0 : index
    %c0_68 = arith.constant 0 : index
    %c0_69 = arith.constant 0 : index
    %162 = vector.load %arg10[%c0_67, %c0_68, %c0_69] : memref<2x1x256xf32, #tpu.memory_space<vmem>>, vector<1x1x256xf32>
    %163 = vector.shape_cast %162 : vector<1x1x256xf32> to vector<1x256xf32>
    %164 = vector.broadcast %163 : vector<1x256xf32> to vector<24x256xf32>
    %165 = arith.addf %161, %164 : vector<24x256xf32>
    %cst_70 = arith.constant 5.000000e-01 : f32
    %166 = vector.broadcast %cst_70 : f32 to vector<24x256xf32>
    %167 = arith.mulf %166, %165 : vector<24x256xf32>
    %cst_71 = arith.constant 0.707106769 : f32
    %168 = vector.broadcast %cst_71 : f32 to vector<24x256xf32>
    %169 = arith.mulf %165, %168 : vector<24x256xf32>
    %170 = math.erf %169 : vector<24x256xf32>
    %cst_72 = arith.constant 1.000000e+00 : f32
    %171 = vector.broadcast %cst_72 : f32 to vector<24x256xf32>
    %172 = arith.addf %171, %170 : vector<24x256xf32>
    %173 = arith.mulf %167, %172 : vector<24x256xf32>
    %c0_73 = arith.constant 0 : index
    %c0_74 = arith.constant 0 : index
    %c0_75 = arith.constant 0 : index
    %174 = vector.load %arg11[%c0_73, %c0_74, %c0_75] : memref<2x256x128xf32, #tpu.memory_space<vmem>>, vector<1x256x128xf32>
    %175 = vector.shape_cast %174 : vector<1x256x128xf32> to vector<256x128xf32>
    %cst_76 = arith.constant dense<0.000000e+00> : vector<24x128xf32>
    %176 = tpu.matmul %173, %175, %cst_76 {dimension_numbers = #tpu.dot_dimension_numbers<[1], [0], [0], [1], [0, 0, 1, 1], [], []>} : vector<24x256xf32>, vector<256x128xf32>, vector<24x128xf32> -> vector<24x128xf32>
    %177 = arith.addf %140, %176 : vector<24x128xf32>
    %c0_77 = arith.constant 0 : index
    %c0_78 = arith.constant 0 : index
    %c0_79 = arith.constant 0 : index
    %178 = vector.load %arg12[%c0_77, %c0_78, %c0_79] : memref<2x1x128xf32, #tpu.memory_space<vmem>>, vector<1x1x128xf32>
    %179 = vector.shape_cast %178 : vector<1x1x128xf32> to vector<1x128xf32>
    %180 = vector.broadcast %179 : vector<1x128xf32> to vector<24x128xf32>
    %181 = arith.addf %177, %180 : vector<24x128xf32>
    %cst_80 = arith.constant dense<0.000000e+00> : vector<24xf32>
    %182 = vector.multi_reduction <add>, %181, %cst_80 [1] : vector<24x128xf32> to vector<24xf32>
    %183 = vector.shape_cast %182 : vector<24xf32> to vector<24x1xf32>
    %cst_81 = arith.constant 1.562500e-02 : f32
    %184 = vector.broadcast %cst_81 : f32 to vector<24x1xf32>
    %185 = arith.mulf %183, %184 : vector<24x1xf32>
    %186 = vector.broadcast %185 : vector<24x1xf32> to vector<24x128xf32>
    %187 = arith.subf %181, %186 : vector<24x128xf32>
    %188 = arith.mulf %187, %187 : vector<24x128xf32>
    %189 = vector.broadcast %4 : vector<1x128xf32> to vector<24x128xf32>
    %190 = arith.mulf %188, %189 : vector<24x128xf32>
    %cst_82 = arith.constant dense<0.000000e+00> : vector<24xf32>
    %191 = vector.multi_reduction <add>, %190, %cst_82 [1] : vector<24x128xf32> to vector<24xf32>
    %192 = vector.shape_cast %191 : vector<24xf32> to vector<24x1xf32>
    %cst_83 = arith.constant 1.562500e-02 : f32
    %193 = vector.broadcast %cst_83 : f32 to vector<24x1xf32>
    %194 = arith.mulf %192, %193 : vector<24x1xf32>
    %cst_84 = arith.constant 9.99999997E-7 : f32
    %195 = vector.broadcast %cst_84 : f32 to vector<24x1xf32>
    %196 = arith.addf %194, %195 : vector<24x1xf32>
    %197 = math.rsqrt %196 : vector<24x1xf32>
    %198 = vector.broadcast %197 : vector<24x1xf32> to vector<24x128xf32>
    %199 = arith.mulf %187, %198 : vector<24x128xf32>
    %c1 = arith.constant 1 : index
    %c0_85 = arith.constant 0 : index
    %c0_86 = arith.constant 0 : index
    %200 = vector.load %arg5[%c1, %c0_85, %c0_86] : memref<2x128x192xf32, #tpu.memory_space<vmem>>, vector<1x128x192xf32>
    %201 = vector.shape_cast %200 : vector<1x128x192xf32> to vector<128x192xf32>
    %cst_87 = arith.constant dense<0.000000e+00> : vector<24x192xf32>
    %202 = tpu.matmul %199, %201, %cst_87 {dimension_numbers = #tpu.dot_dimension_numbers<[1], [0], [0], [1], [0, 0, 1, 1], [], []>} : vector<24x128xf32>, vector<128x192xf32>, vector<24x192xf32> -> vector<24x192xf32>
    %c1_88 = arith.constant 1 : index
    %c0_89 = arith.constant 0 : index
    %c0_90 = arith.constant 0 : index
    %203 = vector.load %arg6[%c1_88, %c0_89, %c0_90] : memref<2x1x192xf32, #tpu.memory_space<vmem>>, vector<1x1x192xf32>
    %204 = vector.shape_cast %203 : vector<1x1x192xf32> to vector<1x192xf32>
    %205 = vector.broadcast %204 : vector<1x192xf32> to vector<24x192xf32>
    %206 = arith.addf %202, %205 : vector<24x192xf32>
    %c1_91 = arith.constant 1 : index
    %c0_92 = arith.constant 0 : index
    %c0_93 = arith.constant 0 : index
    %207 = vector.load %arg8[%c1_91, %c0_92, %c0_93] : memref<2x1x128xf32, #tpu.memory_space<vmem>>, vector<1x1x128xf32>
    %208 = vector.shape_cast %207 : vector<1x1x128xf32> to vector<1x128xf32>
    %209 = vector.broadcast %208 : vector<1x128xf32> to vector<24x128xf32>
    %210 = arith.addf %181, %209 : vector<24x128xf32>
    %211 = vector.extract_strided_slice %206 {offsets = [0, 0], sizes = [24, 16], strides = [1, 1]} : vector<24x192xf32> to vector<24x16xf32>
    %212 = vector.extract_strided_slice %206 {offsets = [0, 64], sizes = [24, 16], strides = [1, 1]} : vector<24x192xf32> to vector<24x16xf32>
    %213 = vector.extract_strided_slice %206 {offsets = [0, 128], sizes = [24, 16], strides = [1, 1]} : vector<24x192xf32> to vector<24x16xf32>
    %cst_94 = arith.constant dense<0.000000e+00> : vector<24x24xf32>
    %214 = tpu.matmul %211, %212, %cst_94 {dimension_numbers = #tpu.dot_dimension_numbers<[1], [1], [0], [0], [0, 0, 1, 0], [], []>} : vector<24x16xf32>, vector<24x16xf32>, vector<24x24xf32> -> vector<24x24xf32>
    %215 = vector.broadcast %10 : vector<1x24xf32> to vector<24x24xf32>
    %216 = arith.addf %214, %215 : vector<24x24xf32>
    %cst_95 = arith.constant dense<0xFF800000> : vector<24xf32>
    %217 = vector.multi_reduction <maximumf>, %216, %cst_95 [1] : vector<24x24xf32> to vector<24xf32>
    %218 = vector.shape_cast %217 : vector<24xf32> to vector<24x1xf32>
    %219 = vector.broadcast %218 : vector<24x1xf32> to vector<24x24xf32>
    %220 = arith.subf %216, %219 : vector<24x24xf32>
    %221 = math.exp %220 : vector<24x24xf32>
    %cst_96 = arith.constant dense<0.000000e+00> : vector<24xf32>
    %222 = vector.multi_reduction <add>, %221, %cst_96 [1] : vector<24x24xf32> to vector<24xf32>
    %223 = vector.shape_cast %222 : vector<24xf32> to vector<24x1xf32>
    %224 = tpu.reciprocal %223 {approx = true} : vector<24x1xf32> -> vector<24x1xf32>
    %225 = vector.broadcast %224 : vector<24x1xf32> to vector<24x24xf32>
    %226 = arith.mulf %221, %225 : vector<24x24xf32>
    %cst_97 = arith.constant dense<0.000000e+00> : vector<24x16xf32>
    %227 = tpu.matmul %226, %213, %cst_97 {dimension_numbers = #tpu.dot_dimension_numbers<[1], [0], [0], [1], [0, 0, 1, 1], [], []>} : vector<24x24xf32>, vector<24x16xf32>, vector<24x16xf32> -> vector<24x16xf32>
    %c1_98 = arith.constant 1 : index
    %c0_99 = arith.constant 0 : index
    %c0_100 = arith.constant 0 : index
    %228 = vector.load %arg7[%c1_98, %c0_99, %c0_100] : memref<2x128x128xf32, #tpu.memory_space<vmem>>, vector<1x16x128xf32>
    %229 = vector.shape_cast %228 : vector<1x16x128xf32> to vector<16x128xf32>
    %cst_101 = arith.constant dense<0.000000e+00> : vector<24x128xf32>
    %230 = tpu.matmul %227, %229, %cst_101 {dimension_numbers = #tpu.dot_dimension_numbers<[1], [0], [0], [1], [0, 0, 1, 1], [], []>} : vector<24x16xf32>, vector<16x128xf32>, vector<24x128xf32> -> vector<24x128xf32>
    %231 = arith.addf %210, %230 : vector<24x128xf32>
    %232 = vector.extract_strided_slice %206 {offsets = [0, 16], sizes = [24, 16], strides = [1, 1]} : vector<24x192xf32> to vector<24x16xf32>
    %233 = vector.extract_strided_slice %206 {offsets = [0, 80], sizes = [24, 16], strides = [1, 1]} : vector<24x192xf32> to vector<24x16xf32>
    %234 = vector.extract_strided_slice %206 {offsets = [0, 144], sizes = [24, 16], strides = [1, 1]} : vector<24x192xf32> to vector<24x16xf32>
    %cst_102 = arith.constant dense<0.000000e+00> : vector<24x24xf32>
    %235 = tpu.matmul %232, %233, %cst_102 {dimension_numbers = #tpu.dot_dimension_numbers<[1], [1], [0], [0], [0, 0, 1, 0], [], []>} : vector<24x16xf32>, vector<24x16xf32>, vector<24x24xf32> -> vector<24x24xf32>
    %236 = vector.broadcast %10 : vector<1x24xf32> to vector<24x24xf32>
    %237 = arith.addf %235, %236 : vector<24x24xf32>
    %cst_103 = arith.constant dense<0xFF800000> : vector<24xf32>
    %238 = vector.multi_reduction <maximumf>, %237, %cst_103 [1] : vector<24x24xf32> to vector<24xf32>
    %239 = vector.shape_cast %238 : vector<24xf32> to vector<24x1xf32>
    %240 = vector.broadcast %239 : vector<24x1xf32> to vector<24x24xf32>
    %241 = arith.subf %237, %240 : vector<24x24xf32>
    %242 = math.exp %241 : vector<24x24xf32>
    %cst_104 = arith.constant dense<0.000000e+00> : vector<24xf32>
    %243 = vector.multi_reduction <add>, %242, %cst_104 [1] : vector<24x24xf32> to vector<24xf32>
    %244 = vector.shape_cast %243 : vector<24xf32> to vector<24x1xf32>
    %245 = tpu.reciprocal %244 {approx = true} : vector<24x1xf32> -> vector<24x1xf32>
    %246 = vector.broadcast %245 : vector<24x1xf32> to vector<24x24xf32>
    %247 = arith.mulf %242, %246 : vector<24x24xf32>
    %cst_105 = arith.constant dense<0.000000e+00> : vector<24x16xf32>
    %248 = tpu.matmul %247, %234, %cst_105 {dimension_numbers = #tpu.dot_dimension_numbers<[1], [0], [0], [1], [0, 0, 1, 1], [], []>} : vector<24x24xf32>, vector<24x16xf32>, vector<24x16xf32> -> vector<24x16xf32>
    %c1_106 = arith.constant 1 : index
    %c16_107 = arith.constant 16 : index
    %c0_108 = arith.constant 0 : index
    %249 = vector.load %arg7[%c1_106, %c16_107, %c0_108] : memref<2x128x128xf32, #tpu.memory_space<vmem>>, vector<1x16x128xf32>
    %250 = vector.shape_cast %249 : vector<1x16x128xf32> to vector<16x128xf32>
    %cst_109 = arith.constant dense<0.000000e+00> : vector<24x128xf32>
    %251 = tpu.matmul %248, %250, %cst_109 {dimension_numbers = #tpu.dot_dimension_numbers<[1], [0], [0], [1], [0, 0, 1, 1], [], []>} : vector<24x16xf32>, vector<16x128xf32>, vector<24x128xf32> -> vector<24x128xf32>
    %252 = arith.addf %231, %251 : vector<24x128xf32>
    %253 = vector.extract_strided_slice %206 {offsets = [0, 32], sizes = [24, 16], strides = [1, 1]} : vector<24x192xf32> to vector<24x16xf32>
    %254 = vector.extract_strided_slice %206 {offsets = [0, 96], sizes = [24, 16], strides = [1, 1]} : vector<24x192xf32> to vector<24x16xf32>
    %255 = vector.extract_strided_slice %206 {offsets = [0, 160], sizes = [24, 16], strides = [1, 1]} : vector<24x192xf32> to vector<24x16xf32>
    %cst_110 = arith.constant dense<0.000000e+00> : vector<24x24xf32>
    %256 = tpu.matmul %253, %254, %cst_110 {dimension_numbers = #tpu.dot_dimension_numbers<[1], [1], [0], [0], [0, 0, 1, 0], [], []>} : vector<24x16xf32>, vector<24x16xf32>, vector<24x24xf32> -> vector<24x24xf32>
    %257 = vector.broadcast %10 : vector<1x24xf32> to vector<24x24xf32>
    %258 = arith.addf %256, %257 : vector<24x24xf32>
    %cst_111 = arith.constant dense<0xFF800000> : vector<24xf32>
    %259 = vector.multi_reduction <maximumf>, %258, %cst_111 [1] : vector<24x24xf32> to vector<24xf32>
    %260 = vector.shape_cast %259 : vector<24xf32> to vector<24x1xf32>
    %261 = vector.broadcast %260 : vector<24x1xf32> to vector<24x24xf32>
    %262 = arith.subf %258, %261 : vector<24x24xf32>
    %263 = math.exp %262 : vector<24x24xf32>
    %cst_112 = arith.constant dense<0.000000e+00> : vector<24xf32>
    %264 = vector.multi_reduction <add>, %263, %cst_112 [1] : vector<24x24xf32> to vector<24xf32>
    %265 = vector.shape_cast %264 : vector<24xf32> to vector<24x1xf32>
    %266 = tpu.reciprocal %265 {approx = true} : vector<24x1xf32> -> vector<24x1xf32>
    %267 = vector.broadcast %266 : vector<24x1xf32> to vector<24x24xf32>
    %268 = arith.mulf %263, %267 : vector<24x24xf32>
    %cst_113 = arith.constant dense<0.000000e+00> : vector<24x16xf32>
    %269 = tpu.matmul %268, %255, %cst_113 {dimension_numbers = #tpu.dot_dimension_numbers<[1], [0], [0], [1], [0, 0, 1, 1], [], []>} : vector<24x24xf32>, vector<24x16xf32>, vector<24x16xf32> -> vector<24x16xf32>
    %c1_114 = arith.constant 1 : index
    %c32_115 = arith.constant 32 : index
    %c0_116 = arith.constant 0 : index
    %270 = vector.load %arg7[%c1_114, %c32_115, %c0_116] : memref<2x128x128xf32, #tpu.memory_space<vmem>>, vector<1x16x128xf32>
    %271 = vector.shape_cast %270 : vector<1x16x128xf32> to vector<16x128xf32>
    %cst_117 = arith.constant dense<0.000000e+00> : vector<24x128xf32>
    %272 = tpu.matmul %269, %271, %cst_117 {dimension_numbers = #tpu.dot_dimension_numbers<[1], [0], [0], [1], [0, 0, 1, 1], [], []>} : vector<24x16xf32>, vector<16x128xf32>, vector<24x128xf32> -> vector<24x128xf32>
    %273 = arith.addf %252, %272 : vector<24x128xf32>
    %274 = vector.extract_strided_slice %206 {offsets = [0, 48], sizes = [24, 16], strides = [1, 1]} : vector<24x192xf32> to vector<24x16xf32>
    %275 = vector.extract_strided_slice %206 {offsets = [0, 112], sizes = [24, 16], strides = [1, 1]} : vector<24x192xf32> to vector<24x16xf32>
    %276 = vector.extract_strided_slice %206 {offsets = [0, 176], sizes = [24, 16], strides = [1, 1]} : vector<24x192xf32> to vector<24x16xf32>
    %cst_118 = arith.constant dense<0.000000e+00> : vector<24x24xf32>
    %277 = tpu.matmul %274, %275, %cst_118 {dimension_numbers = #tpu.dot_dimension_numbers<[1], [1], [0], [0], [0, 0, 1, 0], [], []>} : vector<24x16xf32>, vector<24x16xf32>, vector<24x24xf32> -> vector<24x24xf32>
    %278 = vector.broadcast %10 : vector<1x24xf32> to vector<24x24xf32>
    %279 = arith.addf %277, %278 : vector<24x24xf32>
    %cst_119 = arith.constant dense<0xFF800000> : vector<24xf32>
    %280 = vector.multi_reduction <maximumf>, %279, %cst_119 [1] : vector<24x24xf32> to vector<24xf32>
    %281 = vector.shape_cast %280 : vector<24xf32> to vector<24x1xf32>
    %282 = vector.broadcast %281 : vector<24x1xf32> to vector<24x24xf32>
    %283 = arith.subf %279, %282 : vector<24x24xf32>
    %284 = math.exp %283 : vector<24x24xf32>
    %cst_120 = arith.constant dense<0.000000e+00> : vector<24xf32>
    %285 = vector.multi_reduction <add>, %284, %cst_120 [1] : vector<24x24xf32> to vector<24xf32>
    %286 = vector.shape_cast %285 : vector<24xf32> to vector<24x1xf32>
    %287 = tpu.reciprocal %286 {approx = true} : vector<24x1xf32> -> vector<24x1xf32>
    %288 = vector.broadcast %287 : vector<24x1xf32> to vector<24x24xf32>
    %289 = arith.mulf %284, %288 : vector<24x24xf32>
    %cst_121 = arith.constant dense<0.000000e+00> : vector<24x16xf32>
    %290 = tpu.matmul %289, %276, %cst_121 {dimension_numbers = #tpu.dot_dimension_numbers<[1], [0], [0], [1], [0, 0, 1, 1], [], []>} : vector<24x24xf32>, vector<24x16xf32>, vector<24x16xf32> -> vector<24x16xf32>
    %c1_122 = arith.constant 1 : index
    %c48_123 = arith.constant 48 : index
    %c0_124 = arith.constant 0 : index
    %291 = vector.load %arg7[%c1_122, %c48_123, %c0_124] : memref<2x128x128xf32, #tpu.memory_space<vmem>>, vector<1x16x128xf32>
    %292 = vector.shape_cast %291 : vector<1x16x128xf32> to vector<16x128xf32>
    %cst_125 = arith.constant dense<0.000000e+00> : vector<24x128xf32>
    %293 = tpu.matmul %290, %292, %cst_125 {dimension_numbers = #tpu.dot_dimension_numbers<[1], [0], [0], [1], [0, 0, 1, 1], [], []>} : vector<24x16xf32>, vector<16x128xf32>, vector<24x128xf32> -> vector<24x128xf32>
    %294 = arith.addf %273, %293 : vector<24x128xf32>
    %cst_126 = arith.constant dense<0.000000e+00> : vector<24xf32>
    %295 = vector.multi_reduction <add>, %294, %cst_126 [1] : vector<24x128xf32> to vector<24xf32>
    %296 = vector.shape_cast %295 : vector<24xf32> to vector<24x1xf32>
    %cst_127 = arith.constant 1.562500e-02 : f32
    %297 = vector.broadcast %cst_127 : f32 to vector<24x1xf32>
    %298 = arith.mulf %296, %297 : vector<24x1xf32>
    %299 = vector.broadcast %298 : vector<24x1xf32> to vector<24x128xf32>
    %300 = arith.subf %294, %299 : vector<24x128xf32>
    %301 = arith.mulf %300, %300 : vector<24x128xf32>
    %302 = vector.broadcast %4 : vector<1x128xf32> to vector<24x128xf32>
    %303 = arith.mulf %301, %302 : vector<24x128xf32>
    %cst_128 = arith.constant dense<0.000000e+00> : vector<24xf32>
    %304 = vector.multi_reduction <add>, %303, %cst_128 [1] : vector<24x128xf32> to vector<24xf32>
    %305 = vector.shape_cast %304 : vector<24xf32> to vector<24x1xf32>
    %cst_129 = arith.constant 1.562500e-02 : f32
    %306 = vector.broadcast %cst_129 : f32 to vector<24x1xf32>
    %307 = arith.mulf %305, %306 : vector<24x1xf32>
    %cst_130 = arith.constant 9.99999997E-7 : f32
    %308 = vector.broadcast %cst_130 : f32 to vector<24x1xf32>
    %309 = arith.addf %307, %308 : vector<24x1xf32>
    %310 = math.rsqrt %309 : vector<24x1xf32>
    %311 = vector.broadcast %310 : vector<24x1xf32> to vector<24x128xf32>
    %312 = arith.mulf %300, %311 : vector<24x128xf32>
    %c1_131 = arith.constant 1 : index
    %c0_132 = arith.constant 0 : index
    %c0_133 = arith.constant 0 : index
    %313 = vector.load %arg9[%c1_131, %c0_132, %c0_133] : memref<2x128x256xf32, #tpu.memory_space<vmem>>, vector<1x128x256xf32>
    %314 = vector.shape_cast %313 : vector<1x128x256xf32> to vector<128x256xf32>
    %cst_134 = arith.constant dense<0.000000e+00> : vector<24x256xf32>
    %315 = tpu.matmul %312, %314, %cst_134 {dimension_numbers = #tpu.dot_dimension_numbers<[1], [0], [0], [1], [0, 0, 1, 1], [], []>} : vector<24x128xf32>, vector<128x256xf32>, vector<24x256xf32> -> vector<24x256xf32>
    %c1_135 = arith.constant 1 : index
    %c0_136 = arith.constant 0 : index
    %c0_137 = arith.constant 0 : index
    %316 = vector.load %arg10[%c1_135, %c0_136, %c0_137] : memref<2x1x256xf32, #tpu.memory_space<vmem>>, vector<1x1x256xf32>
    %317 = vector.shape_cast %316 : vector<1x1x256xf32> to vector<1x256xf32>
    %318 = vector.broadcast %317 : vector<1x256xf32> to vector<24x256xf32>
    %319 = arith.addf %315, %318 : vector<24x256xf32>
    %cst_138 = arith.constant 5.000000e-01 : f32
    %320 = vector.broadcast %cst_138 : f32 to vector<24x256xf32>
    %321 = arith.mulf %320, %319 : vector<24x256xf32>
    %cst_139 = arith.constant 0.707106769 : f32
    %322 = vector.broadcast %cst_139 : f32 to vector<24x256xf32>
    %323 = arith.mulf %319, %322 : vector<24x256xf32>
    %324 = math.erf %323 : vector<24x256xf32>
    %cst_140 = arith.constant 1.000000e+00 : f32
    %325 = vector.broadcast %cst_140 : f32 to vector<24x256xf32>
    %326 = arith.addf %325, %324 : vector<24x256xf32>
    %327 = arith.mulf %321, %326 : vector<24x256xf32>
    %c1_141 = arith.constant 1 : index
    %c0_142 = arith.constant 0 : index
    %c0_143 = arith.constant 0 : index
    %328 = vector.load %arg11[%c1_141, %c0_142, %c0_143] : memref<2x256x128xf32, #tpu.memory_space<vmem>>, vector<1x256x128xf32>
    %329 = vector.shape_cast %328 : vector<1x256x128xf32> to vector<256x128xf32>
    %cst_144 = arith.constant dense<0.000000e+00> : vector<24x128xf32>
    %330 = tpu.matmul %327, %329, %cst_144 {dimension_numbers = #tpu.dot_dimension_numbers<[1], [0], [0], [1], [0, 0, 1, 1], [], []>} : vector<24x256xf32>, vector<256x128xf32>, vector<24x128xf32> -> vector<24x128xf32>
    %331 = arith.addf %294, %330 : vector<24x128xf32>
    %c1_145 = arith.constant 1 : index
    %c0_146 = arith.constant 0 : index
    %c0_147 = arith.constant 0 : index
    %332 = vector.load %arg12[%c1_145, %c0_146, %c0_147] : memref<2x1x128xf32, #tpu.memory_space<vmem>>, vector<1x1x128xf32>
    %333 = vector.shape_cast %332 : vector<1x1x128xf32> to vector<1x128xf32>
    %334 = vector.broadcast %333 : vector<1x128xf32> to vector<24x128xf32>
    %335 = arith.addf %331, %334 : vector<24x128xf32>
    %cst_148 = arith.constant dense<0.000000e+00> : vector<24xf32>
    %336 = vector.multi_reduction <add>, %335, %cst_148 [1] : vector<24x128xf32> to vector<24xf32>
    %337 = vector.shape_cast %336 : vector<24xf32> to vector<24x1xf32>
    %cst_149 = arith.constant 1.562500e-02 : f32
    %338 = vector.broadcast %cst_149 : f32 to vector<24x1xf32>
    %339 = arith.mulf %337, %338 : vector<24x1xf32>
    %340 = vector.broadcast %339 : vector<24x1xf32> to vector<24x128xf32>
    %341 = arith.subf %335, %340 : vector<24x128xf32>
    %342 = arith.mulf %341, %341 : vector<24x128xf32>
    %343 = vector.broadcast %4 : vector<1x128xf32> to vector<24x128xf32>
    %344 = arith.mulf %342, %343 : vector<24x128xf32>
    %cst_150 = arith.constant dense<0.000000e+00> : vector<24xf32>
    %345 = vector.multi_reduction <add>, %344, %cst_150 [1] : vector<24x128xf32> to vector<24xf32>
    %346 = vector.shape_cast %345 : vector<24xf32> to vector<24x1xf32>
    %cst_151 = arith.constant 1.562500e-02 : f32
    %347 = vector.broadcast %cst_151 : f32 to vector<24x1xf32>
    %348 = arith.mulf %346, %347 : vector<24x1xf32>
    %cst_152 = arith.constant 9.99999997E-7 : f32
    %349 = vector.broadcast %cst_152 : f32 to vector<24x1xf32>
    %350 = arith.addf %348, %349 : vector<24x1xf32>
    %351 = math.rsqrt %350 : vector<24x1xf32>
    %352 = vector.broadcast %351 : vector<24x1xf32> to vector<24x128xf32>
    %353 = arith.mulf %341, %352 : vector<24x128xf32>
    %c0_153 = arith.constant 0 : index
    %c0_154 = arith.constant 0 : index
    %354 = vector.load %arg13[%c0_153, %c0_154] : memref<1x128xf32, #tpu.memory_space<vmem>>, vector<1x128xf32>
    %355 = vector.broadcast %354 : vector<1x128xf32> to vector<24x128xf32>
    %356 = arith.mulf %353, %355 : vector<24x128xf32>
    %c0_155 = arith.constant 0 : index
    %c0_156 = arith.constant 0 : index
    %357 = vector.load %arg14[%c0_155, %c0_156] : memref<1x128xf32, #tpu.memory_space<vmem>>, vector<1x128xf32>
    %358 = vector.broadcast %357 : vector<1x128xf32> to vector<24x128xf32>
    %359 = arith.addf %356, %358 : vector<24x128xf32>
    %c0_157 = arith.constant 0 : index
    %c0_158 = arith.constant 0 : index
    %360 = vector.load %arg15[%c0_157, %c0_158] : memref<1x128xf32, #tpu.memory_space<vmem>>, vector<1x128xf32>
    %361 = vector.broadcast %360 : vector<1x128xf32> to vector<24x128xf32>
    %362 = arith.mulf %359, %361 : vector<24x128xf32>
    %cst_159 = arith.constant dense<0.000000e+00> : vector<24xf32>
    %363 = vector.multi_reduction <add>, %362, %cst_159 [1] : vector<24x128xf32> to vector<24xf32>
    %364 = vector.shape_cast %363 : vector<24xf32> to vector<24x1xf32>
    %c0_160 = arith.constant 0 : index
    %c0_161 = arith.constant 0 : index
    %365 = vector.load %arg16[%c0_160, %c0_161] : memref<1x1xf32, #tpu.memory_space<vmem>>, vector<1x1xf32>
    %366 = vector.broadcast %365 : vector<1x1xf32> to vector<24x1xf32>
    %367 = arith.addf %364, %366 : vector<24x1xf32>
    %368 = arith.addf %367, %16 : vector<24x1xf32>
    %cst_162 = arith.constant dense<0xFF800000> : vector<1xf32>
    %369 = vector.multi_reduction <maximumf>, %368, %cst_162 [0] : vector<24x1xf32> to vector<1xf32>
    %370 = vector.shape_cast %369 : vector<1xf32> to vector<1x1xf32>
    %371 = vector.broadcast %370 : vector<1x1xf32> to vector<24x1xf32>
    %372 = arith.subf %368, %371 : vector<24x1xf32>
    %373 = math.exp %372 : vector<24x1xf32>
    %cst_163 = arith.constant dense<0.000000e+00> : vector<1xf32>
    %374 = vector.multi_reduction <add>, %373, %cst_163 [0] : vector<24x1xf32> to vector<1xf32>
    %375 = vector.shape_cast %374 : vector<1xf32> to vector<1x1xf32>
    %376 = tpu.reciprocal %375 {approx = true} : vector<1x1xf32> -> vector<1x1xf32>
    %377 = vector.broadcast %376 : vector<1x1xf32> to vector<24x1xf32>
    %378 = arith.mulf %373, %377 : vector<24x1xf32>
    %379 = vector.broadcast %378 : vector<24x1xf32> to vector<24x128xf32>
    %380 = arith.mulf %379, %359 : vector<24x128xf32>
    %cst_164 = arith.constant dense<0.000000e+00> : vector<128xf32>
    %381 = vector.multi_reduction <add>, %380, %cst_164 [0] : vector<24x128xf32> to vector<128xf32>
    %382 = vector.shape_cast %381 : vector<128xf32> to vector<1x128xf32>
    %cst_165 = arith.constant dense<0.000000e+00> : vector<1xf32>
    %383 = vector.multi_reduction <add>, %382, %cst_165 [1] : vector<1x128xf32> to vector<1xf32>
    %384 = vector.shape_cast %383 : vector<1xf32> to vector<1x1xf32>
    %cst_166 = arith.constant 1.562500e-02 : f32
    %385 = vector.broadcast %cst_166 : f32 to vector<1x1xf32>
    %386 = arith.mulf %384, %385 : vector<1x1xf32>
    %387 = vector.broadcast %386 : vector<1x1xf32> to vector<1x128xf32>
    %388 = arith.subf %382, %387 : vector<1x128xf32>
    %389 = arith.mulf %388, %388 : vector<1x128xf32>
    %390 = arith.mulf %389, %4 : vector<1x128xf32>
    %cst_167 = arith.constant dense<0.000000e+00> : vector<1xf32>
    %391 = vector.multi_reduction <add>, %390, %cst_167 [1] : vector<1x128xf32> to vector<1xf32>
    %392 = vector.shape_cast %391 : vector<1xf32> to vector<1x1xf32>
    %cst_168 = arith.constant 1.562500e-02 : f32
    %393 = vector.broadcast %cst_168 : f32 to vector<1x1xf32>
    %394 = arith.mulf %392, %393 : vector<1x1xf32>
    %cst_169 = arith.constant 9.99999974E-6 : f32
    %395 = vector.broadcast %cst_169 : f32 to vector<1x1xf32>
    %396 = arith.addf %394, %395 : vector<1x1xf32>
    %397 = math.rsqrt %396 : vector<1x1xf32>
    %398 = vector.broadcast %397 : vector<1x1xf32> to vector<1x128xf32>
    %399 = arith.mulf %388, %398 : vector<1x128xf32>
    %c0_170 = arith.constant 0 : index
    %c0_171 = arith.constant 0 : index
    %400 = vector.load %arg17[%c0_170, %c0_171] : memref<128x128xf32, #tpu.memory_space<vmem>>, vector<128x128xf32>
    %cst_172 = arith.constant dense<0.000000e+00> : vector<1x128xf32>
    %401 = tpu.matmul %399, %400, %cst_172 {dimension_numbers = #tpu.dot_dimension_numbers<[1], [0], [0], [1], [0, 0, 1, 1], [], []>} : vector<1x128xf32>, vector<128x128xf32>, vector<1x128xf32> -> vector<1x128xf32>
    %c0_173 = arith.constant 0 : index
    %c0_174 = arith.constant 0 : index
    %402 = vector.load %arg18[%c0_173, %c0_174] : memref<1x128xf32, #tpu.memory_space<vmem>>, vector<1x128xf32>
    %403 = arith.addf %401, %402 : vector<1x128xf32>
    %cst_175 = arith.constant 0.000000e+00 : f32
    %404 = vector.broadcast %cst_175 : f32 to vector<1x128xf32>
    %405 = arith.maximumf %403, %404 : vector<1x128xf32>
    %c0_176 = arith.constant 0 : index
    %c0_177 = arith.constant 0 : index
    %406 = vector.load %arg19[%c0_176, %c0_177] : memref<128x128xf32, #tpu.memory_space<vmem>>, vector<128x128xf32>
    %cst_178 = arith.constant dense<0.000000e+00> : vector<1x128xf32>
    %407 = tpu.matmul %405, %406, %cst_178 {dimension_numbers = #tpu.dot_dimension_numbers<[1], [0], [0], [1], [0, 0, 1, 1], [], []>} : vector<1x128xf32>, vector<128x128xf32>, vector<1x128xf32> -> vector<1x128xf32>
    %c0_179 = arith.constant 0 : index
    %c0_180 = arith.constant 0 : index
    %408 = vector.load %arg20[%c0_179, %c0_180] : memref<1x128xf32, #tpu.memory_space<vmem>>, vector<1x128xf32>
    %409 = arith.addf %407, %408 : vector<1x128xf32>
    %410 = vector.shape_cast %409 : vector<1x128xf32> to vector<1x128xf32>
    %411 = vector.broadcast %410 : vector<1x128xf32> to vector<8x128xf32>
    %c0_181 = arith.constant 0 : index
    %c0_182 = arith.constant 0 : index
    %c0_183 = arith.constant 0 : index
    %412 = vector.load %arg21[%c0_181, %c0_182, %c0_183] : memref<1x8x128xf32, #tpu.memory_space<vmem>>, vector<1x8x128xf32>
    %413 = vector.shape_cast %412 : vector<1x8x128xf32> to vector<8x128xf32>
    %414 = vector.shape_cast %411 : vector<8x128xf32> to vector<1x8x128xf32>
    tpu.vector_store %arg21[%c0_181, %c0_182, %c0_183], %414 {strides = array<i32>} : memref<1x8x128xf32, #tpu.memory_space<vmem>>, vector<1x8x128xf32>,
    return
  }
  func.func @transform_0(%arg0: i32) -> (i32, i32, i32) {
    %c0_i32 = arith.constant 0 : i32
    %c0_i32_0 = arith.constant 0 : i32
    %c0_i32_1 = arith.constant 0 : i32
    return %arg0, %c0_i32, %c0_i32_0 : i32, i32, i32
  }
  func.func @transform_1(%arg0: i32) -> (i32, i32) {
    %c0_i32 = arith.constant 0 : i32
    %c0_i32_0 = arith.constant 0 : i32
    %c0_i32_1 = arith.constant 0 : i32
    return %c0_i32, %c0_i32_0 : i32, i32
  }
  func.func @transform_2(%arg0: i32) -> (i32, i32) {
    %c0_i32 = arith.constant 0 : i32
    %c0_i32_0 = arith.constant 0 : i32
    %c0_i32_1 = arith.constant 0 : i32
    return %c0_i32, %c0_i32_0 : i32, i32
  }
  func.func @transform_3(%arg0: i32) -> (i32, i32) {
    %c0_i32 = arith.constant 0 : i32
    %c0_i32_0 = arith.constant 0 : i32
    %c0_i32_1 = arith.constant 0 : i32
    return %c0_i32, %c0_i32_0 : i32, i32
  }
  func.func @transform_4(%arg0: i32) -> (i32, i32, i32) {
    %c0_i32 = arith.constant 0 : i32
    %c0_i32_0 = arith.constant 0 : i32
    %c0_i32_1 = arith.constant 0 : i32
    %c0_i32_2 = arith.constant 0 : i32
    return %c0_i32, %c0_i32_0, %c0_i32_1 : i32, i32, i32
  }
  func.func @transform_5(%arg0: i32) -> (i32, i32, i32) {
    %c0_i32 = arith.constant 0 : i32
    %c0_i32_0 = arith.constant 0 : i32
    %c0_i32_1 = arith.constant 0 : i32
    %c0_i32_2 = arith.constant 0 : i32
    return %c0_i32, %c0_i32_0, %c0_i32_1 : i32, i32, i32
  }
  func.func @transform_6(%arg0: i32) -> (i32, i32, i32) {
    %c0_i32 = arith.constant 0 : i32
    %c0_i32_0 = arith.constant 0 : i32
    %c0_i32_1 = arith.constant 0 : i32
    %c0_i32_2 = arith.constant 0 : i32
    return %c0_i32, %c0_i32_0, %c0_i32_1 : i32, i32, i32
  }
  func.func @transform_7(%arg0: i32) -> (i32, i32, i32) {
    %c0_i32 = arith.constant 0 : i32
    %c0_i32_0 = arith.constant 0 : i32
    %c0_i32_1 = arith.constant 0 : i32
    %c0_i32_2 = arith.constant 0 : i32
    return %c0_i32, %c0_i32_0, %c0_i32_1 : i32, i32, i32
  }
  func.func @transform_8(%arg0: i32) -> (i32, i32, i32) {
    %c0_i32 = arith.constant 0 : i32
    %c0_i32_0 = arith.constant 0 : i32
    %c0_i32_1 = arith.constant 0 : i32
    %c0_i32_2 = arith.constant 0 : i32
    return %c0_i32, %c0_i32_0, %c0_i32_1 : i32, i32, i32
  }
  func.func @transform_9(%arg0: i32) -> (i32, i32, i32) {
    %c0_i32 = arith.constant 0 : i32
    %c0_i32_0 = arith.constant 0 : i32
    %c0_i32_1 = arith.constant 0 : i32
    %c0_i32_2 = arith.constant 0 : i32
    return %c0_i32, %c0_i32_0, %c0_i32_1 : i32, i32, i32
  }
  func.func @transform_10(%arg0: i32) -> (i32, i32, i32) {
    %c0_i32 = arith.constant 0 : i32
    %c0_i32_0 = arith.constant 0 : i32
    %c0_i32_1 = arith.constant 0 : i32
    %c0_i32_2 = arith.constant 0 : i32
    return %c0_i32, %c0_i32_0, %c0_i32_1 : i32, i32, i32
  }
  func.func @transform_11(%arg0: i32) -> (i32, i32, i32) {
    %c0_i32 = arith.constant 0 : i32
    %c0_i32_0 = arith.constant 0 : i32
    %c0_i32_1 = arith.constant 0 : i32
    %c0_i32_2 = arith.constant 0 : i32
    return %c0_i32, %c0_i32_0, %c0_i32_1 : i32, i32, i32
  }
  func.func @transform_12(%arg0: i32) -> (i32, i32) {
    %c0_i32 = arith.constant 0 : i32
    %c0_i32_0 = arith.constant 0 : i32
    %c0_i32_1 = arith.constant 0 : i32
    return %c0_i32, %c0_i32_0 : i32, i32
  }
  func.func @transform_13(%arg0: i32) -> (i32, i32) {
    %c0_i32 = arith.constant 0 : i32
    %c0_i32_0 = arith.constant 0 : i32
    %c0_i32_1 = arith.constant 0 : i32
    return %c0_i32, %c0_i32_0 : i32, i32
  }
  func.func @transform_14(%arg0: i32) -> (i32, i32) {
    %c0_i32 = arith.constant 0 : i32
    %c0_i32_0 = arith.constant 0 : i32
    %c0_i32_1 = arith.constant 0 : i32
    return %c0_i32, %c0_i32_0 : i32, i32
  }
  func.func @transform_15(%arg0: i32) -> (i32, i32) {
    %c0_i32 = arith.constant 0 : i32
    %c0_i32_0 = arith.constant 0 : i32
    %c0_i32_1 = arith.constant 0 : i32
    return %c0_i32, %c0_i32_0 : i32, i32
  }
  func.func @transform_16(%arg0: i32) -> (i32, i32) {
    %c0_i32 = arith.constant 0 : i32
    %c0_i32_0 = arith.constant 0 : i32
    %c0_i32_1 = arith.constant 0 : i32
    return %c0_i32, %c0_i32_0 : i32, i32
  }
  func.func @transform_17(%arg0: i32) -> (i32, i32) {
    %c0_i32 = arith.constant 0 : i32
    %c0_i32_0 = arith.constant 0 : i32
    %c0_i32_1 = arith.constant 0 : i32
    return %c0_i32, %c0_i32_0 : i32, i32
  }
  func.func @transform_18(%arg0: i32) -> (i32, i32) {
    %c0_i32 = arith.constant 0 : i32
    %c0_i32_0 = arith.constant 0 : i32
    %c0_i32_1 = arith.constant 0 : i32
    return %c0_i32, %c0_i32_0 : i32, i32
  }
  func.func @transform_19(%arg0: i32) -> (i32, i32) {
    %c0_i32 = arith.constant 0 : i32
    %c0_i32_0 = arith.constant 0 : i32
    %c0_i32_1 = arith.constant 0 : i32
    return %c0_i32, %c0_i32_0 : i32, i32
  }
  func.func @transform_20(%arg0: i32) -> (i32, i32, i32) {
    %c0_i32 = arith.constant 0 : i32
    %c0_i32_0 = arith.constant 0 : i32
    %c0_i32_1 = arith.constant 0 : i32
    return %arg0, %c0_i32, %c0_i32_0 : i32, i32, i32
  }
}

</mosaic_0001>

<bundles_post_ra>
// kernel: enhanced_vit_forward.1
= control target key start
LH: loop header
LB: loop body
LE: loop exit
PB: predicated region body
PF: predicated region fallthrough
CT: control target
= control target key end

     0   :  { %s4300_s23 = smov 0   ;;  %s5957_s0 = inlined_call_operand.vmem [shape: f32[2,16,192], index: 0, kind: input, shape index: {}]   ;;  %s5958_s1 = inlined_call_operand.vmem [shape: f32[192,128], index: 1, kind: input, shape index: {}]   ;;  %s5959_s2 = inlined_call_operand.vmem [shape: f32[1,128], index: 2, kind: input, shape index: {}]   ;;  %s5960_s3 = inlined_call_operand.vmem [shape: f32[24,128], index: 3, kind: input, shape index: {}]   ;;  %s5961_s4 = inlined_call_operand.vmem [shape: f32[2,128,192], index: 4, kind: input, shape index: {}]   ;;  %s5962_s5 = inlined_call_operand.vmem [shape: f32[2,1,192], index: 5, kind: input, shape index: {}]   ;;  %s5963_s6 = inlined_call_operand.vmem [shape: f32[2,128,128], index: 6, kind: input, shape index: {}]   ;;  %s5964_s7 = inlined_call_operand.vmem [shape: f32[2,1,128], index: 7, kind: input, shape index: {}]   ;;  %s5965_s8 = inlined_call_operand.vmem [shape: f32[2,128,256], index: 8, kind: input, shape index: {}]   ;;  %s5966_s9 = inlined_call_operand.vmem [shape: f32[2,1,256], index: 9, kind: input, shape index: {}]   ;;  %s5967_s10 = inlined_call_operand.vmem [shape: f32[2,256,128], index: 10, kind: input, shape index: {}]   ;;  %s5968_s11 = inlined_call_operand.vmem [shape: f32[2,1,128], index: 11, kind: input, shape index: {}]   ;;  %s5969_s12 = inlined_call_operand.vmem [shape: f32[1,128], index: 12, kind: input, shape index: {}]   ;;  %s5970_s13 = inlined_call_operand.vmem [shape: f32[1,128], index: 13, kind: input, shape index: {}]   ;;  %s5971_s14 = inlined_call_operand.vmem [shape: f32[1,128], index: 14, kind: input, shape index: {}]   ;;  %s5972_s15 = inlined_call_operand.<no memory space> [shape: f32[1,1], index: 15, kind: input, shape index: {}]   ;;  %s5973_s16 = inlined_call_operand.vmem [shape: f32[128,128], index: 16, kind: input, shape index: {}]   ;;  %s5974_s17 = inlined_call_operand.vmem [shape: f32[1,128], index: 17, kind: input, shape index: {}]   ;;  %s5975_s18 = inlined_call_operand.vmem [shape: f32[128,128], index: 18, kind: input, shape index: {}]   ;;  %s5976_s19 = inlined_call_operand.vmem [shape: f32[1,128], index: 19, kind: input, shape index: {}]   ;;  %s5977_s20 = inlined_call_operand.vmem [shape: f32[2,8,128], index: 20, kind: output, shape index: {}]  }
   0x1   :  { %5993 = sst [smem:[#allocation3_spill]] %s5957_s0  ;;  %v25_v0 = vstv %s5972_s15 }
   0x2   :  { %5994 = sst [smem:[#allocation4_spill]] %s5958_s1  ;;  %26 = vst [vmem:[#allocation2] sm:$0x1] %v25_v0 }
   0x3   :  { %5995 = sst [smem:[#allocation5_spill]] %s5959_s2 }
   0x4   :  { %5996 = sst [smem:[#allocation6_spill]] %s5960_s3 }
   0x5   :  { %5997 = sst [smem:[#allocation7_spill]] %s5961_s4 }
   0x6 LB: > { %s3721_s24 = sadd.s32 4294967295, %s4180_s23   ;;  %p3725_p0 = scmp.ge.s32.totalorder %s4180_s23, 1  ;;  %s4180_s23 = sphi %s4300_s23, %s32_s23  }
   0x7   : > { %p564_p1 = scmp.lt.s32.totalorder %s4180_s23, 3 }
   0x9   : > { %p565_p2 = pnand %p3725_p0, %p564_p1 }
   0xa   : > { %s5998_s3 = sld [smem:[#allocation4_spill]] (!%p565_p2)  ;;  %p621_p3 = scmp.lt.s32.totalorder (!%p565_p2), %s3721_s24, 1 }
   0xb   : > { %568 = sbr.rel (%p565_p2) target bundleno = 6051 (0x17a3), region = 100  ;;  %s5999_s0 = sld [smem:[#allocation3_spill]] (!%p565_p2) }
   0xc   : > { %s6001_s29 = sld [smem:[#allocation5_spill]] (!%p565_p2)  ;;  %s4183_s22 = smov (!%p565_p2), 64  }
   0xd   : > { %s6002_s25 = sld [smem:[#allocation7_spill]] (!%p565_p2)  ;;  %s5987_s2 = smov (!%p565_p2), 48  }
   0xe   : > { %s5985_s26 = smov (!%p565_p2), 112   ;;  %s5981_s27 = smov (!%p565_p2), 32  }
   0xf   : > { %s5983_s28 = smov (!%p565_p2), 16   ;;  %s5989_s4 = smov (!%p565_p2), 96  }
  0x10   : > { %v666_v1 = vld [vmem:[%s5998_s3 + $0x78] sm:$0xff]  ;;  %v665_v2 = vld [vmem:[%s5998_s3 + $0x70] sm:$0xff]  ;;  %v664_v3 = vld [vmem:[%s5998_s3 + $0x68] sm:$0xff]  ;;  %s6010_s24 = smov (!%p621_p3, %s3721_s24), 1  ;;  %vm679_vm0 = vcmask 523264   ;;  %v630_v43 = vlaneseq  ;;  %v4182_v56 = vmov 0.0  }
  0x11   : > { %686 = vmatpush.msra.mxu0 %v666_v1  ;;  %v674_v4 = vld [vmem:[%s5998_s3 + $0xb8] sm:$0xff]  ;;  %v663_v5 = vld [vmem:[%s5998_s3 + $0x60] sm:$0xff]  ;;  %v673_v6 = vld [vmem:[%s5998_s3 + $0xb0] sm:$0xff]  ;;  %s3950_s15 = sshll.u32 %s6010_s24, 5  ;;  %vm907_vm11 = vcmask 130048   ;;  %vm946_vm13 = vcmask 195584  }
  0x12   : > { %717 = vmatpush.msra.mxu1 %v674_v4  ;;  %v672_v7 = vld [vmem:[%s5998_s3 + $0xa8] sm:$0xff]  ;;  %v662_v8 = vld [vmem:[%s5998_s3 + $0x58] sm:$0xff]  ;;  %v671_v9 = vld [vmem:[%s5998_s3 + $0xa0] sm:$0xff]  ;;  %s625_s21 = scalar_lea.vmem %s5999_s0, %s3950_s15  ;;  %s6000_s15 = sld [smem:[#allocation6_spill]]  ;;  %v4426_v50 = vand.u32 127, %v630_v43 }
  0x13   : > { %687 = vmatpush.msra.mxu0 %v665_v2  ;;  %v661_v10 = vld [vmem:[%s5998_s3 + $0x50] sm:$0xff]  ;;  %v660_v11 = vld [vmem:[%s5998_s3 + $0x48] sm:$0xff]  ;;  %v670_v12 = vld [vmem:[%s5998_s3 + $0x98] sm:$0xff]  ;;  %s6008_s30 = smov 96  }
  0x14   : > { %718 = vmatpush.msra.mxu1 %v673_v6  ;;  %v669_v13 = vld [vmem:[%s5998_s3 + $0x90] sm:$0xff]  ;;  %v659_v14 = vld [vmem:[%s5998_s3 + $0x40] sm:$0xff]  ;;  %v668_v15 = vld [vmem:[%s5998_s3 + $0x88] sm:$0xff]  ;;  %vm632_vm1 = vcmp.lt.s32.totalorder %v4426_v50, 64  ;;  %vm635_vm12 = vcmp.lt.s32.totalorder %v4426_v50, 17 }
  0x15   : > { %688 = vmatpush.msra.mxu0 %v664_v3  ;;  %v658_v16 = vld [vmem:[%s5998_s3 + $0x38] sm:$0xff]  ;;  %v667_v17 = vld [vmem:[%s5998_s3 + $0x80] sm:$0xff]  ;;  %v657_v18 = vld [vmem:[%s5998_s3 + $0x30] sm:$0xff]  ;;  %v4438_v57 = vsel %vm632_vm1, 1.0, %v4182_v56 }
  0x16   : > { %719 = vmatpush.msra.mxu1 %v672_v7  ;;  %v648_v19 = vld [vmem:[%s625_s21 + $0x8] sm:$0xff]  ;;  %v655_v21 = vld [vmem:[%s5998_s3 + $0x20] sm:$0xff]  ;;  %v654_v22 = vld [vmem:[%s5998_s3 + $0x18] sm:$0xff] }
  0x17   : > { %689 = vmatpush.msra.mxu0 %v663_v5  ;;  %v656_v20 = vld [vmem:[%s5998_s3 + $0x28] sm:$0xff]  ;;  %v653_v23 = vld [vmem:[%s5998_s3 + $0x10] sm:$0xff]  ;;  %v650_v24 = vld [vmem:[%s625_s21 + $0x18] sm:$0xff] }
  0x18   : > { %720 = vmatpush.msra.mxu1 %v671_v9  ;;  %v652_v25 = vld [vmem:[%s5998_s3 + $0x8] sm:$0xff]  ;;  %v651_v26 = vld [vmem:[%s5998_s3] sm:$0xff]  ;;  %v649_v28 = vld [vmem:[%s625_s21 + $0x10] sm:$0xff] }
  0x19   : > { %690 = vmatpush.msra.mxu0 %v662_v8  ;;  %v647_v27 = vld [vmem:[%s625_s21] sm:$0xff]  ;;  %v4389_v29 = vld [vmem:[%s6000_s15 + $0x10] sm:$0xff]  ;;  %v733_v40 = vld [vmem:[%s6000_s15 + $0x8] sm:$0xff] }
  0x1a   : > { %721 = vmatpush.msra.mxu1 %v670_v12  ;;  %742 = vadd.xlane.f32.xlu1 %v4389_v29  ;;  %v4005_v30 = vld [vmem:[%s6001_s29] ss:$0 sm:$0xff]  ;;  %v831_v44 = vld [vmem:[%s6002_s25 + $0xf0] sm:$0xff]  ;;  %v832_v45 = vld [vmem:[%s6002_s25 + $0xf8] sm:$0xff]  ;;  %s5991_s29 = smov 80  }
  0x1b   : > { %691 = vmatpush.msra.mxu0 %v661_v10  ;;  %v732_v34 = vld [vmem:[%s6000_s15] sm:$0xff]  ;;  %839 = vmatpush.msra.mxu2 %v831_v44  ;;  %v830_v47 = vld [vmem:[%s6002_s25 + $0xe8] sm:$0xff]  ;;  %v827_v48 = vld [vmem:[%s6002_s25 + $0xd0] sm:$0xff] }
  0x1c   : > { %722 = vmatpush.msra.mxu1 %v669_v13  ;;  %v829_v46 = vld [vmem:[%s6002_s25 + $0xe0] sm:$0xff]  ;;  %865 = vmatpush.msra.mxu3 %v832_v45  ;;  %v828_v49 = vld [vmem:[%s6002_s25 + $0xd8] sm:$0xff]  ;;  %v826_v52 = vld [vmem:[%s6002_s25 + $0xc8] sm:$0xff] }
  0x1d   : > { %692 = vmatpush.msra.mxu0 %v660_v11  ;;  %840 = vmatpush.msra.mxu2 %v829_v46  ;;  %v825_v51 = vld [vmem:[%s6002_s25 + $0xc0] sm:$0xff]  ;;  %v823_v6 = vld [vmem:[%s6002_s25 + $0xb0] sm:$0xff]  ;;  %v824_v7 = vld [vmem:[%s6002_s25 + $0xb8] sm:$0xff] }
  0x1e   : > { %723 = vmatpush.msra.mxu1 %v668_v15  ;;  %866 = vmatpush.msra.mxu3 %v830_v47  ;;  %v821_v8 = vld [vmem:[%s6002_s25 + $0xa0] sm:$0xff]  ;;  %v822_v9 = vld [vmem:[%s6002_s25 + $0xa8] sm:$0xff]  ;;  %v819_v10 = vld [vmem:[%s6002_s25 + $0x90] sm:$0xff] }
  0x1f   : > { %693 = vmatpush.msra.mxu0 %v659_v14  ;;  %841 = vmatpush.msra.mxu2 %v827_v48  ;;  %v820_v11 = vld [vmem:[%s6002_s25 + $0x98] sm:$0xff]  ;;  %v817_v12 = vld [vmem:[%s6002_s25 + $0x80] sm:$0xff]  ;;  %v818_v13 = vld [vmem:[%s6002_s25 + $0x88] sm:$0xff] }
  0x20   : > { %724 = vmatpush.msra.mxu1 %v667_v17  ;;  %867 = vmatpush.msra.mxu3 %v828_v49  ;;  %v815_v14 = vld [vmem:[%s6002_s25 + $0x70] sm:$0xff]  ;;  %v816_v15 = vld [vmem:[%s6002_s25 + $0x78] sm:$0xff]  ;;  %v814_v17 = vld [vmem:[%s6002_s25 + $0x68] sm:$0xff] }
  0x21   : > { %694 = vmatpush.msra.mxu0 %v658_v16  ;;  %3730 = vmatmul.msk.f32.vlgmr.msra.gmra.mxu1 %vm679_vm0, %v648_v19  ;;  %v813_v16 = vld [vmem:[%s6002_s25 + $0x60] sm:$0xff]  ;;  %v812_v19 = vld [vmem:[%s6002_s25 + $0x58] sm:$0xff] }
  0x22   : > { %842 = vmatpush.msra.mxu2 %v825_v51  ;;  %868 = vmatpush.msra.mxu3 %v826_v52 }
  0x23   : > { %695 = vmatpush.msra.mxu0 %v657_v18  ;;  %v811_v18 = vld [vmem:[%s6002_s25 + $0x50] sm:$0xff] }
  0x24   : > { %843 = vmatpush.msra.mxu2 %v823_v6  ;;  %869 = vmatpush.msra.mxu3 %v824_v7  ;;  %v833_v7 = vld [vmem:[%s5962_s5] sm:$0x3] }
  0x25   : > { %696 = vmatpush.msra.mxu0 %v656_v20  ;;  %v809_v20 = vld [vmem:[%s6002_s25 + $0x40] sm:$0xff] }
  0x26   : > { %844 = vmatpush.msra.mxu2 %v821_v8  ;;  %870 = vmatpush.msra.mxu3 %v822_v9  ;;  %v835_v8 = vperm.slane %v833_v7, 0 }
  0x27   : > { %697 = vmatpush.msra.mxu0 %v655_v21  ;;  %v810_v21 = vld [vmem:[%s6002_s25 + $0x48] sm:$0xff] }
  0x28   : > { %845 = vmatpush.msra.mxu2 %v819_v10  ;;  %871 = vmatpush.msra.mxu3 %v820_v11 }
  0x29   : > { %698 = vmatpush.msra.mxu0 %v654_v22  ;;  %3731 = vmatmul.msk.f32.gmra.mxu1 %vm679_vm0, %v650_v24  ;;  %v807_v22 = vld [vmem:[%s6002_s25 + $0x30] sm:$0xff]  ;;  %v805_v24 = vld [vmem:[%s6002_s25 + $0x20] sm:$0xff] }
  0x2a   : > { %846 = vmatpush.msra.mxu2 %v817_v12  ;;  %872 = vmatpush.msra.mxu3 %v818_v13 }
  0x2b   : > { %699 = vmatpush.msra.mxu0 %v653_v23  ;;  %v808_v23 = vld [vmem:[%s6002_s25 + $0x38] sm:$0xff] }
  0x2c   : > { %847 = vmatpush.msra.mxu2 %v815_v14  ;;  %873 = vmatpush.msra.mxu3 %v816_v15 }
  0x2d   : > { %700 = vmatpush.msra.mxu0 %v652_v25  ;;  %v806_v25 = vld [vmem:[%s6002_s25 + $0x28] sm:$0xff] }
  0x2e   : > { %848 = vmatpush.msra.mxu2 %v813_v16  ;;  %874 = vmatpush.msra.mxu3 %v814_v17 }
  0x2f   : > { %701 = vmatpush.msra.mxu0 %v651_v26  ;;  %v803_v26 = vld [vmem:[%s6002_s25 + $0x10] sm:$0xff] }
  0x30   : > { %702 = vmatmul.f32.vlgmr.msra.gmra.mxu0 %v647_v27  ;;  %849 = vmatpush.msra.mxu2 %v811_v18  ;;  %v804_v27 = vld [vmem:[%s6002_s25 + $0x18] sm:$0xff] }
  0x31   : > { %875 = vmatpush.msra.mxu3 %v812_v19 }
  0x32   : > { %850 = vmatpush.msra.mxu2 %v809_v20 }
  0x33   : > { %876 = vmatpush.msra.mxu3 %v810_v21 }
  0x34   : > { %851 = vmatpush.msra.mxu2 %v807_v22 }
  0x35   : > { %877 = vmatpush.msra.mxu3 %v808_v23 }
  0x36   : > { %852 = vmatpush.msra.mxu2 %v805_v24 }
  0x37   : > { %878 = vmatpush.msra.mxu3 %v806_v25 }
  0x38   : > { %705 = vmatmul.f32.gmra.mxu0 %v649_v28  ;;  %853 = vmatpush.msra.mxu2 %v803_v26  ;;  %v801_v28 = vld [vmem:[%s6002_s25] sm:$0xff] }
  0x39   : > { %879 = vmatpush.msra.mxu3 %v804_v27 }
  0x3a   : > { %854 = vmatpush.msra.mxu2 %v801_v28 }
  0x8d   : > { %v743_v59 = vpop.xlane.xlu1 %742 }
  0x8e   : > { %v746_v63 = vmul.f32 0.015625, %v743_v59 }
  0x90   : > { %v4447_v1 = vsub.f32 %v4389_v29, %v746_v63 }
  0x92   : > { %v752_v4 = vmul.f32 %v4447_v1, %v4447_v1 }
  0x94   : > { %v755_v5 = vmul.f32 %v4438_v57, %v752_v4 }
  0x9e   : > { %v726_v31 = vpop.f32.mrf.mxu1 }
  0xa6   : > { %v729_v38 = vpop.f32.mrf.mxu1 }
  0xad   : > { %v703_v32 = vpop.f32.mrf.mxu0 }
  0xae   : > { %v704_v33 = vadd.f32 %v4005_v30, %v703_v32 }
  0xb0   : > { %v727_v35 = vadd.f32 %v726_v31, %v704_v33 }
  0xb2   : > { %v4398_v36 = vadd.f32 %v732_v34, %v727_v35 }
  0xb4   : > { %738 = vadd.xlane.f32.xlu0 %v4398_v36 }
  0xb5   : > { %v706_v37 = vpop.f32.mrf.mxu0 }
  0xb6   : > { %v707_v39 = vadd.f32 %v4005_v30, %v706_v37  ;;  %v802_v30 = vld [vmem:[%s6002_s25 + $0x8] sm:$0xff] }
  0xb7   : > { %880 = vmatpush.msra.mxu3 %v802_v30 }
  0xb8   : > { %v730_v41 = vadd.f32 %v729_v38, %v707_v39 }
  0xba   : > { %v4404_v42 = vadd.f32 %v733_v40, %v730_v41 }
  0xbc   : > { %740 = vadd.xlane.f32.xlu0 %v4404_v42 }
 0x127   : > { %v739_v53 = vpop.xlane.xlu0 %738 }
 0x128   : > { %v744_v54 = vmul.f32 0.015625, %v739_v53 }
 0x12a   : > { %v4436_v55 = vsub.f32 %v4398_v36, %v744_v54 }
 0x12c   : > { %v750_v58 = vmul.f32 %v4436_v55, %v4436_v55 }
 0x12e   : > { %v753_v60 = vmul.f32 %v4438_v57, %v750_v58 }
 0x12f   : > { %v741_v61 = vpop.xlane.xlu0 %740 }
 0x130   : > { %v745_v62 = vmul.f32 0.015625, %v741_v61  ;;  %756 = vadd.xlane.f32.xlu1 %v753_v60 }
 0x132   : > { %v4444_v0 = vsub.f32 %v4404_v42, %v745_v62 }
 0x134   : > { %v751_v2 = vmul.f32 %v4444_v0, %v4444_v0 }
 0x136   : > { %v754_v3 = vmul.f32 %v4438_v57, %v751_v2 }
 0x138   : > { %758 = vadd.xlane.f32.xlu2 %v754_v3 }
 0x140   : > { %760 = vadd.xlane.f32.xlu2 %v755_v5 }
 0x1a3   : > { %v757_v31 = vpop.xlane.xlu1 %756 }
 0x1a4   : > { %v762_v32 = vmul.f32 0.015625, %v757_v31  ;;  %v4186_v31 = vmov -1e+30  }
 0x1a6   : > { %v765_v33 = vadd.f32 1e-06, %v762_v32  ;;  %v4580_v32 = vsel %vm635_vm12, 0.0, %v4186_v31 }
 0x1a8   : > { %4014 = vrsqrt.f32 %v765_v33  ;;  %vm774_vm3 = vweird.f32 %v765_v33 }
 0x1ab   : > { %v759_v34 = vpop.xlane.xlu2 %758 }
 0x1ac   : > { %v763_v35 = vmul.f32 0.015625, %v759_v34 }
 0x1ae   : > { %v4015_v37 = vpop.eup %4014  ;;  %v766_v38 = vadd.f32 1e-06, %v763_v35 }
 0x1af   : > { %v769_v39 = vmul.f32 %v4015_v37, %v765_v33  ;;  %vm775_vm2 = vweird.f32 %v4015_v37 }
 0x1b0   : > { %4016 = vrsqrt.f32 %v766_v38  ;;  %vm776_vm4 = vmor %vm774_vm3, %vm775_vm2  ;;  %vm784_vm6 = vweird.f32 %v766_v38 }
 0x1b1   : > { %v770_v40 = vmul.f32 %v4015_v37, %v769_v39 }
 0x1b3   : > { %v771_v41 = vmul.f32 0.5, %v770_v40  ;;  %v761_v44 = vpop.xlane.xlu2 %760 }
 0x1b4   : > { %v764_v45 = vmul.f32 0.015625, %v761_v44 }
 0x1b5   : > { %v772_v46 = vsub.f32 1.5, %v771_v41 }
 0x1b6   : > { %v4017_v47 = vpop.eup %4016  ;;  %v767_v48 = vadd.f32 1e-06, %v764_v45 }
 0x1b7   : > { %v779_v49 = vmul.f32 %v4017_v47, %v766_v38  ;;  %v773_v51 = vmul.f32 %v4015_v37, %v772_v46  ;;  %vm785_vm5 = vweird.f32 %v4017_v47 }
 0x1b8   : > { %4018 = vrsqrt.f32 %v767_v48  ;;  %vm786_vm7 = vmor %vm784_vm6, %vm785_vm5  ;;  %vm794_vm9 = vweird.f32 %v767_v48 }
 0x1b9   : > { %v780_v52 = vmul.f32 %v4017_v47, %v779_v49  ;;  %v777_v53 = vsel %vm776_vm4, %v4015_v37, %v773_v51 }
 0x1ba   : > { %v798_v54 = vmul.f32 %v777_v53, %v4436_v55 }
 0x1bb   : > { %v781_v56 = vmul.f32 0.5, %v780_v52 }
 0x1bc   : > { %855 = vmatmul.f32.vlgmr.msra.gmra.mxu2 %v798_v54  ;;  %881 = vmatmul.f32.vlgmr.msra.gmra.mxu3 %v798_v54 }
 0x1bd   : > { %v782_v58 = vsub.f32 1.5, %v781_v56 }
 0x1be   : > { %v4019_v59 = vpop.eup %4018 }
 0x1bf   : > { %v789_v60 = vmul.f32 %v4019_v59, %v767_v48  ;;  %v783_v61 = vmul.f32 %v4017_v47, %v782_v58  ;;  %vm795_vm8 = vweird.f32 %v4019_v59 }
 0x1c0   : > { %vm796_vm10 = vmor %vm794_vm9, %vm795_vm8 }
 0x1c1   : > { %v790_v62 = vmul.f32 %v4019_v59, %v789_v60  ;;  %v787_v63 = vsel %vm786_vm7, %v4017_v47, %v783_v61 }
 0x1c2   : > { %v799_v2 = vmul.f32 %v787_v63, %v4444_v0 }
 0x1c3   : > { %v791_v3 = vmul.f32 0.5, %v790_v62 }
 0x1c4   : > { %858 = vmatmul.f32.gmra.mxu2 %v799_v2  ;;  %884 = vmatmul.f32.gmra.mxu3 %v799_v2 }
 0x1c5   : > { %v792_v4 = vsub.f32 1.5, %v791_v3 }
 0x1c7   : > { %v793_v55 = vmul.f32 %v4019_v59, %v792_v4 }
 0x1c9   : > { %v797_v5 = vsel %vm796_vm10, %v4019_v59, %v793_v55 }
 0x1ca   : > { %v800_v6 = vmul.f32 %v797_v5, %v4447_v1  ;;  %v836_v1 = vperm.slane %v833_v7, 1 }
 0x1cc   : > { %861 = vmatmul.f32.gmra.mxu2 %v800_v6  ;;  %887 = vmatmul.f32.gmra.mxu3 %v800_v6 }
 0x23f   : > { %v856_v9 = vpop.f32.mrf.mxu2  ;;  %v882_v0 = vpop.f32.mrf.mxu3 }
 0x240   : > { %v4533_v10 = vadd.f32 %v856_v9, %v835_v8  ;;  %v4553_v20 = vadd.f32 %v882_v0, %v836_v1 }
 0x242   : > { %901 = vrot.lane.b32.xlu2 %v4533_v10, %s4183_s22 }
 0x247   : > { %v859_v11 = vpop.f32.mrf.mxu2  ;;  %v885_v12 = vpop.f32.mrf.mxu3 }
 0x248   : > { %v4537_v13 = vadd.f32 %v859_v11, %v835_v8  ;;  %v886_v16 = vadd.f32 %v885_v12, %v836_v1 }
 0x24a   : > { %1063 = vrot.lane.b32.xlu2 %v4537_v13, %s5987_s2  ;;  %903 = vrot.lane.b32.xlu1 %v4537_v13, %s4183_s22 }
 0x24f   : > { %v862_v14 = vpop.f32.mrf.mxu2  ;;  %v888_v15 = vpop.f32.mrf.mxu3 }
 0x250   : > { %v4543_v17 = vadd.f32 %v862_v14, %v835_v8  ;;  %v889_v18 = vadd.f32 %v888_v15, %v836_v1 }
 0x252   : > { %1057 = vrot.lane.b32.xlu2 %v4537_v13, %s5985_s26  ;;  %1061 = vrot.lane.b32.xlu1 %v4533_v10, %s5987_s2  ;;  %v4549_v19 = vpack.i.bf16 %v886_v16, %v889_v18 }
 0x253   : > { %1002 = vmatpush.msrb.mxu0 %v889_v18  ;;  %3951 = vmatpush.msrb.mxu3 %v889_v18 }
 0x254   : > { %905 = vrot.lane.b32.xlu0 %v4543_v17, %s4183_s22 }
 0x255   : > { %1003 = vmatpush.msrb.mxu0 %v886_v16  ;;  %3952 = vmatpush.msrb.mxu3 %v886_v16 }
 0x257   : > { %1004 = vmatpush.msrb.mxu0 %v4553_v20  ;;  %3953 = vmatpush.msrb.mxu3 %v4553_v20 }
 0x25a   : > { %1059 = vrot.lane.b32.xlu1 %v4543_v17, %s5985_s26 }
 0x25c   : > { %1065 = vrot.lane.b32.xlu0 %v4543_v17, %s5987_s2  ;;  %s6003_s2 = smov 48  }
 0x264   : > { %1055 = vrot.lane.b32.xlu0 %v4533_v10, %s5985_s26 }
 0x29c   : > { %v902_v22 = vpop.permute.xlu2 %901 }
 0x2a4   : > { %v1064_v25 = vpop.permute.xlu2 %1063 }
 0x2ac   : > { %v1058_v28 = vpop.permute.xlu2 %1057 }
 0x2bc   : > { %v904_v23 = vpop.permute.xlu1 %903 }
 0x2c4   : > { %v1062_v26 = vpop.permute.xlu1 %1061 }
 0x2c6   : > { %v906_v21 = vpop.permute.xlu0 %905 }
 0x2c7   : > { %3732 = vmatpush.xpose.msk.msrb.mxu1 %vm907_vm11, %v906_v21 }
 0x2cb   : > { %3733 = vmatpush.xpose.msk.msrb.mxu1 %vm907_vm11, %v904_v23 }
 0x2cc   : > { %v1060_v30 = vpop.permute.xlu1 %1059 }
 0x2ce   : > { %v1066_v24 = vpop.permute.xlu0 %1065 }
 0x2cf   : > { %3734 = vmatpush.xpose.msk.msrb.mxu1 %vm907_vm11, %v902_v22  ;;  %3744 = vmatpush.xpose.msk.msrb.mxu2 %vm907_vm11, %v1066_v24 }
 0x2d2   : > { %3735 = vmatmul.msk.f32.vlgmr.msrb.gmra.mxu1 %vm907_vm11, %v4533_v10 }
 0x2d3   : > { %3745 = vmatpush.xpose.msk.msrb.mxu2 %vm907_vm11, %v1064_v25 }
 0x2d6   : > { %v1056_v27 = vpop.permute.xlu0 %1055 }
 0x2d7   : > { %3746 = vmatpush.xpose.msk.msrb.mxu2 %vm907_vm11, %v1062_v26 }
 0x2da   : > { %3736 = vmatmul.msk.f32.gmra.mxu1 %vm907_vm11, %v4537_v13  ;;  %3747 = vmatmul.msk.f32.vlgmr.msrb.gmra.mxu2 %vm907_vm11, %v1056_v27  ;;  %v1186_v27 = vld [vmem:[%s5963_s6 + $0x18] sm:$0xff] }
 0x2db   : > { %1210 = vmatpush.msra.mxu0 %v1186_v27 }
 0x2e2   : > { %3737 = vmatmul.msk.f32.gmra.mxu1 %vm907_vm11, %v4543_v17  ;;  %3748 = vmatmul.msk.f32.gmra.mxu2 %vm907_vm11, %v1058_v28 }
 0x2ea   : > { %3749 = vmatmul.msk.f32.gmra.mxu2 %vm907_vm11, %v1060_v30 }
 0x34f   : > { %v937_v33 = vpop.f32.mrf.mxu1 }
 0x350   : > { %v938_v34 = vadd.f32 %v937_v33, %v4580_v32 }
 0x352   : > { %v947_v35 = vsel %vm946_vm13, %v938_v34, -inf }
 0x353   : > { %948 = vmax.xlane.f32.xlu2 %v947_v35 }
 0x357   : > { %v940_v37 = vpop.f32.mrf.mxu1 }
 0x358   : > { %v941_v46 = vadd.f32 %v940_v37, %v4580_v32 }
 0x35a   : > { %v950_v49 = vsel %vm946_vm13, %v941_v46, -inf }
 0x35d   : > { %v1096_v38 = vpop.f32.mrf.mxu2 }
 0x35e   : > { %v1097_v39 = vadd.f32 %v1096_v38, %v4580_v32 }
 0x35f   : > { %v943_v40 = vpop.f32.mrf.mxu1 }
 0x360   : > { %v944_v41 = vadd.f32 %v943_v40, %v4580_v32  ;;  %v1105_v50 = vsel %vm946_vm13, %v1097_v39, -inf }
 0x361   : > { %1106 = vmax.xlane.f32.xlu1 %v1105_v50 }
 0x362   : > { %v953_v44 = vsel %vm946_vm13, %v944_v41, -inf }
 0x363   : > { %954 = vmax.xlane.f32.xlu0 %v953_v44 }
 0x365   : > { %v1099_v45 = vpop.f32.mrf.mxu2 }
 0x366   : > { %v1100_v47 = vadd.f32 %v1099_v45, %v4580_v32 }
 0x368   : > { %v1108_v48 = vsel %vm946_vm13, %v1100_v47, -inf }
 0x369   : > { %1109 = vmax.xlane.f32.xlu2 %v1108_v48 }
 0x36b   : > { %951 = vmax.xlane.f32.xlu0 %v950_v49 }
 0x36d   : > { %v1102_v51 = vpop.f32.mrf.mxu2 }
 0x36e   : > { %v1103_v52 = vadd.f32 %v1102_v51, %v4580_v32 }
 0x370   : > { %v1111_v53 = vsel %vm946_vm13, %v1103_v52, -inf }
 0x371   : > { %1112 = vmax.xlane.f32.xlu1 %v1111_v53 }
 0x3c6   : > { %v949_v54 = vpop.xlane.xlu2 %948 }
 0x3c7   : > { %v956_v56 = vsub.f32 %v938_v34, %v949_v54 }
 0x3c9   : > { %v959_v58 = vmul.f32 1.442695, %v956_v56 }
 0x3cb   : > { %4020 = vpow2.f32 %v959_v58 }
 0x3d1   : > { %v4021_v59 = vpop.eup %4020 }
 0x3d2   : > { %v965_v60 = vsel %vm946_vm13, %v4021_v59, 0.0 }
 0x3d3   : > { %966 = vadd.xlane.f32.xlu2 %v965_v60 }
 0x3d4   : > { %v1107_v61 = vpop.xlane.xlu1 %1106 }
 0x3d5   : > { %v1114_v62 = vsub.f32 %v1097_v39, %v1107_v61 }
 0x3d6   : > { %v955_v63 = vpop.xlane.xlu0 %954 }
 0x3d7   : > { %v1117_v2 = vmul.f32 1.442695, %v1114_v62  ;;  %v958_v3 = vsub.f32 %v944_v41, %v955_v63 }
 0x3d9   : > { %4022 = vpow2.f32 %v1117_v2  ;;  %v963_v4 = vmul.f32 1.442695, %v958_v3 }
 0x3db   : > { %4024 = vpow2.f32 %v963_v4 }
 0x3dc   : > { %v1110_v55 = vpop.xlane.xlu2 %1109 }
 0x3dd   : > { %v1115_v5 = vsub.f32 %v1100_v47, %v1110_v55 }
 0x3de   : > { %v952_v6 = vpop.xlane.xlu0 %951 }
 0x3df   : > { %v4595_v7 = vpop.eup %4022  ;;  %v1119_v8 = vmul.f32 1.442695, %v1115_v5  ;;  %v957_v9 = vsub.f32 %v941_v46, %v952_v6 }
 0x3e0   : > { %v1123_v0 = vsel %vm946_vm13, %v4595_v7, 0.0 }
 0x3e1   : > { %v4025_v11 = vpop.eup %4024  ;;  %4026 = vpow2.f32 %v1119_v8  ;;  %v961_v12 = vmul.f32 1.442695, %v957_v9  ;;  %1124 = vadd.xlane.f32.xlu1 %v1123_v0 }
 0x3e2   : > { %v971_v1 = vsel %vm946_vm13, %v4025_v11, 0.0 }
 0x3e3   : > { %4028 = vpow2.f32 %v961_v12  ;;  %972 = vadd.xlane.f32.xlu0 %v971_v1 }
 0x3e4   : > { %v1113_v14 = vpop.xlane.xlu1 %1112 }
 0x3e5   : > { %v1116_v15 = vsub.f32 %v1103_v52, %v1113_v14 }
 0x3e7   : > { %v4600_v16 = vpop.eup %4026  ;;  %v1121_v18 = vmul.f32 1.442695, %v1116_v15 }
 0x3e8   : > { %v1126_v21 = vsel %vm946_vm13, %v4600_v16, 0.0 }
 0x3e9   : > { %v4029_v22 = vpop.eup %4028  ;;  %4030 = vpow2.f32 %v1121_v18  ;;  %1127 = vadd.xlane.f32.xlu1 %v1126_v21  ;;  %v4684_v21 = vld [vmem:[%s5964_s7] ss:$0 sm:$0xff] }
 0x3ea   : > { %v968_v23 = vsel %vm946_vm13, %v4029_v22, 0.0 }
 0x3eb   : > { %969 = vadd.xlane.f32.xlu2 %v968_v23  ;;  %v896_v23 = vadd.f32 %v4684_v21, %v4404_v42 }
 0x3ef   : > { %v4605_v24 = vpop.eup %4030 }
 0x3f0   : > { %v1129_v25 = vsel %vm946_vm13, %v4605_v24, 0.0 }
 0x3f1   : > { %1130 = vadd.xlane.f32.xlu1 %v1129_v25 }
 0x3f7   : > { %3973 = vrot.lane.b32.xlu0 %v4549_v19, %s5985_s26 }
 0x3ff   : > { %1235 = vrot.lane.b32.xlu0 %v4543_v17, %s5981_s27 }
 0x403   : > { %1141 = vrot.lane.b32.xlu2 %v4553_v20, %s5985_s26  ;;  %s6004_s26 = smov 112  }
 0x407   : > { %1231 = vrot.lane.b32.xlu0 %v4533_v10, %s5981_s27 }
 0x40a   : > { %1233 = vrot.lane.b32.xlu1 %v4537_v13, %s5981_s27  ;;  %s6006_s27 = smov 32  }
 0x40b   : > { %1402 = vrot.lane.b32.xlu2 %v4543_v17, %s5983_s28 }
 0x40f   : > { %1225 = vrot.lane.b32.xlu0 %v4533_v10, %s5989_s4 }
 0x412   : > { %1227 = vrot.lane.b32.xlu1 %v4537_v13, %s5989_s4 }
 0x413   : > { %1400 = vrot.lane.b32.xlu2 %v4537_v13, %s5983_s28 }
 0x417   : > { %1398 = vrot.lane.b32.xlu0 %v4533_v10, %s5983_s28  ;;  %s6007_s28 = smov 80  }
 0x41a   : > { %1394 = vrot.lane.b32.xlu1 %v4537_v13, %s5991_s29  ;;  %v1185_v13 = vld [vmem:[%s5963_s6 + $0x10] sm:$0xff] }
 0x41b   : > { %1392 = vrot.lane.b32.xlu2 %v4533_v10, %s5991_s29  ;;  %1211 = vmatpush.msra.mxu0 %v1185_v13  ;;  %v1016_v10 = vld [vmem:[%s5963_s6 + $0x8] sm:$0xff]  ;;  %v897_v13 = vadd.f32 %v4684_v21, %v4389_v29 }
 0x41c   : > { %1040 = vmatpush.msra.mxu1 %v1016_v10 }
 0x41f   : > { %1229 = vrot.lane.b32.xlu0 %v4543_v17, %s5989_s4 }
 0x423   : > { %1396 = vrot.lane.b32.xlu2 %v4543_v17, %s5991_s29  ;;  %v1015_v17 = vld [vmem:[%s5963_s6] sm:$0xff] }
 0x424   : > { %1041 = vmatpush.msra.mxu1 %v1015_v17 }
 0x446   : > { %v967_v26 = vpop.xlane.xlu2 %966 }
 0x447   : > { %4032 = vrcp.f32 %v967_v26 }
 0x44d   : > { %v4033_v28 = vpop.eup %4032 }
 0x44e   : > { %v977_v30 = vmul.f32 %v4033_v28, %v4021_v59 }
 0x450   : > { %3738 = vmatmul.msk.f32.vlgmr.msrb.gmra.mxu0 %vm946_vm13, %v977_v30 }
 0x454   : > { %v1125_v38 = vpop.xlane.xlu1 %1124 }
 0x456   : > { %v973_v33 = vpop.xlane.xlu0 %972 }
 0x457   : > { %4034 = vrcp.f32 %v973_v33 }
 0x45c   : > { %v1128_v50 = vpop.xlane.xlu1 %1127 }
 0x45d   : > { %v4035_v34 = vpop.eup %4034 }
 0x45e   : > { %v970_v35 = vpop.xlane.xlu2 %969  ;;  %v979_v37 = vmul.f32 %v4035_v34, %v4025_v11 }
 0x45f   : > { %4036 = vrcp.f32 %v970_v35 }
 0x460   : > { %3740 = vmatmul.msk.f32.vlgmr.msrb.gmra.mxu3 %vm946_vm13, %v979_v37  ;;  %4038 = vrcp.f32 %v1125_v38 }
 0x461   : > { %4040 = vrcp.f32 %v1128_v50 }
 0x464   : > { %v1131_v52 = vpop.xlane.xlu1 %1130 }
 0x465   : > { %v4037_v39 = vpop.eup %4036  ;;  %4042 = vrcp.f32 %v1131_v52 }
 0x466   : > { %v1142_v40 = vpop.permute.xlu2 %1141  ;;  %v978_v41 = vmul.f32 %v4037_v39, %v4029_v22  ;;  %v4039_v46 = vpop.eup %4038 }
 0x467   : > { %v1135_v49 = vmul.f32 %v4039_v46, %v4595_v7  ;;  %v4041_v53 = vpop.eup %4040 }
 0x468   : > { %3739 = vmatmul.msk.f32.gmra.mxu0 %vm946_vm13, %v978_v41  ;;  %v1136_v56 = vmul.f32 %v4041_v53, %v4600_v16 }
 0x469   : > { %v3974_v44 = vpop.permute.xlu0 %3973 }
 0x46a   : > { %v3975_v45 = vunpack.i.l.bf16 %v3974_v44  ;;  %v3976_v47 = vunpack.i.h.bf16 %v3974_v44 }
 0x46b   : > { %v4043_v59 = vpop.eup %4042 }
 0x46c   : > { %1172 = vmatpush.msra.mxu3 %v3975_v45  ;;  %v1137_v61 = vmul.f32 %v4043_v59, %v4605_v24 }
 0x46e   : > { %1173 = vmatpush.msra.mxu3 %v3976_v47  ;;  %v1403_v48 = vpop.permute.xlu2 %1402 }
 0x46f   : > { %3768 = vmatpush.xpose.msk.msrb.mxu0 %vm907_vm11, %v1403_v48 }
 0x470   : > { %1174 = vmatpush.msra.mxu3 %v1142_v40 }
 0x471   : > { %v1236_v51 = vpop.permute.xlu0 %1235  ;;  %3750 = vmatmul.msk.f32.vlgmr.msra.gmra.mxu3 %vm946_vm13, %v1135_v49 }
 0x472   : > { %3756 = vmatpush.xpose.msk.msrb.mxu1 %vm907_vm11, %v1236_v51 }
 0x476   : > { %v1401_v54 = vpop.permute.xlu2 %1400 }
 0x477   : > { %3769 = vmatpush.xpose.msk.msrb.mxu0 %vm907_vm11, %v1401_v54 }
 0x479   : > { %v1232_v58 = vpop.permute.xlu0 %1231  ;;  %3751 = vmatmul.msk.f32.gmra.mxu3 %vm946_vm13, %v1136_v56 }
 0x47c   : > { %v1234_v60 = vpop.permute.xlu1 %1233 }
 0x47d   : > { %3757 = vmatpush.xpose.msk.msrb.mxu1 %vm907_vm11, %v1234_v60 }
 0x47e   : > { %v1393_v9 = vpop.permute.xlu2 %1392 }
 0x481   : > { %v1226_v62 = vpop.permute.xlu0 %1225  ;;  %3752 = vmatmul.msk.f32.gmra.mxu3 %vm946_vm13, %v1137_v61  ;;  %3758 = vmatpush.xpose.msk.msrb.mxu1 %vm907_vm11, %v1232_v58 }
 0x484   : > { %v1228_v6 = vpop.permute.xlu1 %1227 }
 0x486   : > { %v1397_v11 = vpop.permute.xlu2 %1396 }
 0x489   : > { %v1399_v63 = vpop.permute.xlu0 %1398 }
 0x48a   : > { %3770 = vmatpush.xpose.msk.msrb.mxu0 %vm907_vm11, %v1399_v63 }
 0x48c   : > { %v1395_v0 = vpop.permute.xlu1 %1394 }
 0x491   : > { %v1230_v8 = vpop.permute.xlu0 %1229 }
 0x4cd   : > { %v1006_v2 = vpop.f32.mrf.mxu0 }
 0x4ce   : > { %3741 = vmatmul.msk.f32.vlgmr.msra.gmra.mxu1 %vm907_vm11, %v1006_v2 }
 0x4e3   : > { %v1012_v4 = vpop.f32.mrf.mxu3 }
 0x4e5   : > { %v1009_v3 = vpop.f32.mrf.mxu0 }
 0x4e6   : > { %3742 = vmatmul.msk.f32.gmra.mxu1 %vm907_vm11, %v1009_v3 }
 0x4ee   : > { %3743 = vmatmul.msk.f32.gmra.mxu1 %vm907_vm11, %v1012_v4 }
 0x4f4   : > { %v1176_v55 = vpop.f32.mrf.mxu3 }
 0x4f5   : > { %3753 = vmatmul.msk.f32.vlgmr.msra.gmra.mxu0 %vm907_vm11, %v1176_v55 }
 0x4f6   : > { %3759 = vmatmul.msk.f32.vlgmr.msrb.gmra.mxu1 %vm907_vm11, %v1226_v62 }
 0x4fc   : > { %v1179_v5 = vpop.f32.mrf.mxu3 }
 0x4fd   : > { %3754 = vmatmul.msk.f32.gmra.mxu0 %vm907_vm11, %v1179_v5 }
 0x4fe   : > { %3760 = vmatmul.msk.f32.gmra.mxu1 %vm907_vm11, %v1228_v6 }
 0x504   : > { %v1182_v7 = vpop.f32.mrf.mxu3 }
 0x505   : > { %3755 = vmatmul.msk.f32.gmra.mxu0 %vm907_vm11, %v1182_v7 }
 0x506   : > { %3761 = vmatmul.msk.f32.gmra.mxu1 %vm907_vm11, %v1230_v8 }
 0x50d   : > { %3771 = vmatmul.msk.f32.vlgmr.msrb.gmra.mxu0 %vm907_vm11, %v1393_v9 }
 0x515   : > { %3772 = vmatmul.msk.f32.gmra.mxu0 %vm907_vm11, %v1395_v0 }
 0x51d   : > { %3773 = vmatmul.msk.f32.gmra.mxu0 %vm907_vm11, %v1397_v11 }
 0x54b   : > { %v4676_v12 = vpop.f32.mrf.mxu1 }
 0x563   : > { %v1046_v1 = vpop.f32.mrf.mxu1 }
 0x564   : > { %v1053_v24 = vadd.f32 %v1046_v1, %v896_v23 }
 0x56b   : > { %v1049_v14 = vpop.f32.mrf.mxu1 }
 0x56c   : > { %v1054_v10 = vadd.f32 %v1049_v14, %v897_v13 }
 0x572   : > { %v4678_v15 = vpop.f32.mrf.mxu0 }
 0x573   : > { %v1266_v16 = vpop.f32.mrf.mxu1 }
 0x574   : > { %v1267_v18 = vadd.f32 %v1266_v16, %v4580_v32 }
 0x576   : > { %v1275_v22 = vsel %vm946_vm13, %v1267_v18, -inf }
 0x577   : > { %1276 = vmax.xlane.f32.xlu0 %v1275_v22 }
 0x57a   : > { %v1216_v25 = vpop.f32.mrf.mxu0 }
 0x57b   : > { %v4689_v26 = vadd.f32 %v1216_v25, %v1053_v24  ;;  %v1269_v27 = vpop.f32.mrf.mxu1 }
 0x57c   : > { %v1270_v28 = vadd.f32 %v1269_v27, %v4580_v32 }
 0x57e   : > { %v1278_v30 = vsel %vm946_vm13, %v1270_v28, -inf }
 0x57f   : > { %1279 = vmax.xlane.f32.xlu1 %v1278_v30 }
 0x582   : > { %v1219_v17 = vpop.f32.mrf.mxu0 }
 0x583   : > { %v4695_v33 = vadd.f32 %v1219_v17, %v1054_v10  ;;  %v1272_v34 = vpop.f32.mrf.mxu1 }
 0x584   : > { %v1273_v42 = vadd.f32 %v1272_v34, %v4580_v32 }
 0x586   : > { %v1281_v35 = vsel %vm946_vm13, %v1273_v42, -inf }
 0x587   : > { %1282 = vmax.xlane.f32.xlu0 %v1281_v35 }
 0x58a   : > { %v1433_v37 = vpop.f32.mrf.mxu0 }
 0x58b   : > { %v1434_v38 = vadd.f32 %v1433_v37, %v4580_v32 }
 0x58d   : > { %v1442_v39 = vsel %vm946_vm13, %v1434_v38, -inf }
 0x58e   : > { %1443 = vmax.xlane.f32.xlu2 %v1442_v39 }
 0x592   : > { %v1436_v29 = vpop.f32.mrf.mxu0 }
 0x593   : > { %v1437_v40 = vadd.f32 %v1436_v29, %v4580_v32 }
 0x595   : > { %v1445_v41 = vsel %vm946_vm13, %v1437_v40, -inf }
 0x596   : > { %1446 = vmax.xlane.f32.xlu1 %v1445_v41 }
 0x59a   : > { %v1439_v50 = vpop.f32.mrf.mxu0 }
 0x59b   : > { %3983 = vrot.lane.b32.xlu0 %v4549_v19, %s5991_s29  ;;  %v1440_v44 = vadd.f32 %v1439_v50, %v4580_v32 }
 0x59d   : > { %v1448_v45 = vsel %vm946_vm13, %v1440_v44, -inf }
 0x5a6   : > { %1308 = vrot.lane.b32.xlu2 %v4553_v20, %s5989_s4 }
 0x5af   : > { %3978 = vrot.lane.b32.xlu1 %v4549_v19, %s5989_s4 }
 0x5cf   : > { %1449 = vmax.xlane.f32.xlu2 %v1448_v45  ;;  %v1353_v45 = vld [vmem:[%s5963_s6 + $0x28] sm:$0xff] }
 0x5d0   : > { %1377 = vmatpush.msrb.mxu3 %v1353_v45  ;;  %v1637_v45 = vld [vmem:[%s5965_s8 + $0x78] sm:$0xff] }
 0x5ea   : > { %v1277_v46 = vpop.xlane.xlu0 %1276 }
 0x5eb   : > { %v1284_v47 = vsub.f32 %v1267_v18, %v1277_v46 }
 0x5ed   : > { %v1287_v48 = vmul.f32 1.442695, %v1284_v47 }
 0x5ef   : > { %4044 = vpow2.f32 %v1287_v48 }
 0x5f2   : > { %v1280_v49 = vpop.xlane.xlu1 %1279 }
 0x5f3   : > { %v1285_v51 = vsub.f32 %v1270_v28, %v1280_v49  ;;  %v1352_v49 = vld [vmem:[%s5963_s6 + $0x20] sm:$0xff] }
 0x5f4   : > { %1378 = vmatpush.msrb.mxu3 %v1352_v49  ;;  %v1633_v49 = vld [vmem:[%s5965_s8 + $0x58] sm:$0xff] }
 0x5f5   : > { %v4045_v52 = vpop.eup %4044  ;;  %v1289_v53 = vmul.f32 1.442695, %v1285_v51  ;;  %v1520_v51 = vld [vmem:[%s5963_s6 + $0x38] sm:$0xff] }
 0x5f6   : > { %v1293_v54 = vsel %vm946_vm13, %v4045_v52, 0.0 }
 0x5f7   : > { %4046 = vpow2.f32 %v1289_v53  ;;  %1294 = vadd.xlane.f32.xlu0 %v1293_v54 }
 0x5fa   : > { %v1283_v56 = vpop.xlane.xlu0 %1282 }
 0x5fb   : > { %v1286_v19 = vsub.f32 %v1273_v42, %v1283_v56 }
 0x5fd   : > { %v4047_v58 = vpop.eup %4046  ;;  %v1291_v59 = vmul.f32 1.442695, %v1286_v19 }
 0x5fe   : > { %v1296_v60 = vsel %vm946_vm13, %v4047_v58, 0.0 }
 0x5ff   : > { %4048 = vpow2.f32 %v1291_v59  ;;  %1297 = vadd.xlane.f32.xlu2 %v1296_v60  ;;  %v895_v60 = vadd.f32 %v4684_v21, %v4398_v36 }
 0x601   : > { %v1444_v61 = vpop.xlane.xlu2 %1443 }
 0x602   : > { %v1451_v62 = vsub.f32 %v1434_v38, %v1444_v61 }
 0x604   : > { %v1454_v63 = vmul.f32 1.442695, %v1451_v62  ;;  %v1052_v62 = vadd.f32 %v4676_v12, %v895_v60  ;;  %v1622_v60 = vld [vmem:[%s5965_s8] sm:$0xff] }
 0x605   : > { %v4049_v2 = vpop.eup %4048 }
 0x606   : > { %4050 = vpow2.f32 %v1454_v63  ;;  %v1299_v3 = vsel %vm946_vm13, %v4049_v2, 0.0  ;;  %v1222_v63 = vadd.f32 %v4678_v15, %v1052_v62 }
 0x607   : > { %1300 = vadd.xlane.f32.xlu1 %v1299_v3 }
 0x609   : > { %v1447_v4 = vpop.xlane.xlu1 %1446  ;;  %v1309_v22 = vpop.permute.xlu2 %1308 }
 0x60a   : > { %v1452_v55 = vsub.f32 %v1437_v40, %v1447_v4 }
 0x60c   : > { %v4051_v5 = vpop.eup %4050  ;;  %v1456_v6 = vmul.f32 1.442695, %v1452_v55 }
 0x60d   : > { %v3984_v7 = vpop.permute.xlu0 %3983  ;;  %v1460_v8 = vsel %vm946_vm13, %v4051_v5, 0.0 }
 0x60e   : > { %4052 = vpow2.f32 %v1456_v6  ;;  %v3985_v9 = vunpack.i.l.bf16 %v3984_v7  ;;  %1461 = vadd.xlane.f32.xlu0 %v1460_v8  ;;  %v3986_v0 = vunpack.i.h.bf16 %v3984_v7 }
 0x610   : > { %1506 = vmatpush.msra.mxu1 %v3985_v9 }
 0x612   : > { %1507 = vmatpush.msra.mxu1 %v3986_v0 }
 0x614   : > { %v4053_v11 = vpop.eup %4052 }
 0x615   : > { %v1463_v1 = vsel %vm946_vm13, %v4053_v11, 0.0 }
 0x616   : > { %1464 = vadd.xlane.f32.xlu0 %v1463_v1 }
 0x617   : > { %1475 = vrot.lane.b32.xlu2 %v4553_v20, %s5991_s29  ;;  %s3728_s29 = sshll.u32 %s6010_s24, 3 }
 0x621   : > { %v3979_v14 = vpop.permute.xlu1 %3978 }
 0x622   : > { %v3980_v16 = vunpack.i.l.bf16 %v3979_v14  ;;  %v3981_v18 = vunpack.i.h.bf16 %v3979_v14 }
 0x624   : > { %1339 = vmatpush.msra.mxu2 %v3980_v16 }
 0x626   : > { %1340 = vmatpush.msra.mxu2 %v3981_v18 }
 0x628   : > { %1341 = vmatpush.msra.mxu2 %v1309_v22  ;;  %v1652_v22 = vld [vmem:[%s5965_s8 + $0xf0] sm:$0xff] }
 0x629   : > { %1660 = vmatpush.msra.mxu3 %v1652_v22 }
 0x62a   : > { %1544 = vmatpush.msrb.mxu2 %v1520_v51  ;;  %v1630_v51 = vld [vmem:[%s5965_s8 + $0x40] sm:$0xff] }
 0x642   : > { %v1450_v23 = vpop.xlane.xlu2 %1449 }
 0x643   : > { %v1453_v24 = vsub.f32 %v1440_v44, %v1450_v23  ;;  %v1653_v23 = vld [vmem:[%s5965_s8 + $0xf8] sm:$0xff] }
 0x644   : > { %1686 = vmatpush.msra.mxu0 %v1653_v23 }
 0x645   : > { %v1458_v25 = vmul.f32 1.442695, %v1453_v24  ;;  %v1650_v24 = vld [vmem:[%s5965_s8 + $0xe0] sm:$0xff] }
 0x646   : > { %1661 = vmatpush.msra.mxu3 %v1650_v24 }
 0x647   : > { %4054 = vpow2.f32 %v1458_v25  ;;  %v1651_v25 = vld [vmem:[%s5965_s8 + $0xe8] sm:$0xff] }
 0x648   : > { %1687 = vmatpush.msra.mxu0 %v1651_v25 }
 0x64d   : > { %v4055_v27 = vpop.eup %4054 }
 0x64e   : > { %v1466_v28 = vsel %vm946_vm13, %v4055_v27, 0.0 }
 0x64f   : > { %1467 = vadd.xlane.f32.xlu2 %v1466_v28  ;;  %v1649_v28 = vld [vmem:[%s5965_s8 + $0xd8] sm:$0xff] }
 0x650   : > { %1688 = vmatpush.msra.mxu0 %v1649_v28 }
 0x66a   : > { %v1295_v13 = vpop.xlane.xlu0 %1294 }
 0x66b   : > { %4056 = vrcp.f32 %v1295_v13  ;;  %v1646_v13 = vld [vmem:[%s5965_s8 + $0xc0] sm:$0xff] }
 0x671   : > { %v4057_v30 = vpop.eup %4056 }
 0x672   : > { %v1305_v10 = vmul.f32 %v4057_v30, %v4045_v52  ;;  %v1298_v20 = vpop.xlane.xlu2 %1297  ;;  %v1519_v52 = vld [vmem:[%s5963_s6 + $0x30] sm:$0xff]  ;;  %v1647_v30 = vld [vmem:[%s5965_s8 + $0xc8] sm:$0xff] }
 0x673   : > { %4058 = vrcp.f32 %v1298_v20  ;;  %1545 = vmatpush.msrb.mxu2 %v1519_v52  ;;  %1689 = vmatpush.msra.mxu0 %v1647_v30  ;;  %v1631_v52 = vld [vmem:[%s5965_s8 + $0x48] sm:$0xff] }
 0x674   : > { %3762 = vmatmul.msk.f32.vlgmr.msra.gmra.mxu2 %vm946_vm13, %v1305_v10 }
 0x679   : > { %v4059_v17 = vpop.eup %4058 }
 0x67a   : > { %v1301_v34 = vpop.xlane.xlu1 %1300  ;;  %v1476_v42 = vpop.permute.xlu2 %1475  ;;  %v1306_v35 = vmul.f32 %v4059_v17, %v4047_v58 }
 0x67b   : > { %4060 = vrcp.f32 %v1301_v34  ;;  %1508 = vmatpush.msra.mxu1 %v1476_v42 }
 0x67c   : > { %3763 = vmatmul.msk.f32.gmra.mxu2 %vm946_vm13, %v1306_v35  ;;  %v1644_v35 = vld [vmem:[%s5965_s8 + $0xb0] sm:$0xff] }
 0x681   : > { %v4061_v37 = vpop.eup %4060  ;;  %v1462_v38 = vpop.xlane.xlu0 %1461 }
 0x682   : > { %4062 = vrcp.f32 %v1462_v38  ;;  %v1307_v39 = vmul.f32 %v4061_v37, %v4049_v2  ;;  %v1645_v37 = vld [vmem:[%s5965_s8 + $0xb8] sm:$0xff]  ;;  %v1642_v38 = vld [vmem:[%s5965_s8 + $0xa0] sm:$0xff] }
 0x683   : > { %1690 = vmatpush.msra.mxu0 %v1645_v37 }
 0x684   : > { %3764 = vmatmul.msk.f32.gmra.mxu2 %vm946_vm13, %v1307_v39  ;;  %v1643_v39 = vld [vmem:[%s5965_s8 + $0xa8] sm:$0xff] }
 0x685   : > { %1691 = vmatpush.msra.mxu0 %v1643_v39  ;;  %v2006_v39 = vld [vmem:[%s5967_s10 + $0xf0] sm:$0xff] }
 0x688   : > { %v4063_v29 = vpop.eup %4062 }
 0x689   : > { %v1472_v40 = vmul.f32 %v4063_v29, %v4051_v5  ;;  %v1465_v41 = vpop.xlane.xlu0 %1464  ;;  %v1640_v29 = vld [vmem:[%s5965_s8 + $0x90] sm:$0xff] }
 0x68a   : > { %4064 = vrcp.f32 %v1465_v41  ;;  %v1638_v41 = vld [vmem:[%s5965_s8 + $0x80] sm:$0xff] }
 0x68b   : > { %3774 = vmatmul.msk.f32.vlgmr.msra.gmra.mxu1 %vm946_vm13, %v1472_v40  ;;  %v1641_v40 = vld [vmem:[%s5965_s8 + $0x98] sm:$0xff] }
 0x68c   : > { %1692 = vmatpush.msra.mxu0 %v1641_v40  ;;  %v1991_v40 = vld [vmem:[%s5967_s10 + $0x78] sm:$0xff] }
 0x68d   : > { %2008 = vmatpush.msrb.mxu1 %v1991_v40  ;;  %v1981_v40 = vld [vmem:[%s5967_s10 + $0x28] sm:$0xff] }
 0x690   : > { %v4065_v50 = vpop.eup %4064 }
 0x691   : > { %v1473_v44 = vmul.f32 %v4065_v50, %v4053_v11  ;;  %v1639_v50 = vld [vmem:[%s5965_s8 + $0x88] sm:$0xff] }
 0x692   : > { %1693 = vmatpush.msra.mxu0 %v1639_v50 }
 0x693   : > { %3775 = vmatmul.msk.f32.gmra.mxu1 %vm946_vm13, %v1473_v44  ;;  %v1636_v44 = vld [vmem:[%s5965_s8 + $0x70] sm:$0xff] }
 0x694   : > { %1694 = vmatpush.msra.mxu0 %v1637_v45  ;;  %v1990_v45 = vld [vmem:[%s5967_s10 + $0x70] sm:$0xff] }
 0x695   : > { %2009 = vmatpush.msrb.mxu1 %v1990_v45 }
 0x6c2   : > { %v1468_v46 = vpop.xlane.xlu2 %1467 }
 0x6c3   : > { %4066 = vrcp.f32 %v1468_v46  ;;  %v1634_v46 = vld [vmem:[%s5965_s8 + $0x60] sm:$0xff] }
 0x6c9   : > { %v4067_v47 = vpop.eup %4066 }
 0x6ca   : > { %v1474_v48 = vmul.f32 %v4067_v47, %v4055_v27  ;;  %v1648_v27 = vld [vmem:[%s5965_s8 + $0xd0] sm:$0xff]  ;;  %v1635_v47 = vld [vmem:[%s5965_s8 + $0x68] sm:$0xff] }
 0x6cb   : > { %1662 = vmatpush.msra.mxu3 %v1648_v27  ;;  %1695 = vmatpush.msra.mxu0 %v1635_v47 }
 0x6cc   : > { %3776 = vmatmul.msk.f32.gmra.mxu1 %vm946_vm13, %v1474_v48  ;;  %v1632_v48 = vld [vmem:[%s5965_s8 + $0x50] sm:$0xff] }
 0x6cd   : > { %1663 = vmatpush.msra.mxu3 %v1646_v13  ;;  %1696 = vmatpush.msra.mxu0 %v1633_v49  ;;  %v1989_v49 = vld [vmem:[%s5967_s10 + $0x68] sm:$0xff] }
 0x6ce   : > { %2010 = vmatpush.msrb.mxu1 %v1989_v49 }
 0x6cf   : > { %1664 = vmatpush.msra.mxu3 %v1644_v35  ;;  %1697 = vmatpush.msra.mxu0 %v1631_v52 }
 0x6d1   : > { %1665 = vmatpush.msra.mxu3 %v1642_v38  ;;  %v1654_v38 = vld [vmem:[%s5966_s9] sm:$0x3] }
 0x6d3   : > { %1666 = vmatpush.msra.mxu3 %v1640_v29  ;;  %v4884_v29 = vperm.slane %v1654_v38, 1 }
 0x6d5   : > { %1667 = vmatpush.msra.mxu3 %v1638_v41  ;;  %v2004_v41 = vld [vmem:[%s5967_s10 + $0xe0] sm:$0xff] }
 0x6d7   : > { %1668 = vmatpush.msra.mxu3 %v1636_v44 }
 0x6d9   : > { %1669 = vmatpush.msra.mxu3 %v1634_v46  ;;  %v2003_v46 = vld [vmem:[%s5967_s10 + $0xd8] sm:$0xff] }
 0x6db   : > { %1670 = vmatpush.msra.mxu3 %v1632_v48  ;;  %v4907_v48 = vperm.slane %v1654_v38, 0 }
 0x6dd   : > { %1671 = vmatpush.msra.mxu3 %v1630_v51  ;;  %v2002_v51 = vld [vmem:[%s5967_s10 + $0xd0] sm:$0xff] }
 0x6f7   : > { %v1343_v53 = vpop.f32.mrf.mxu2 }
 0x6f8   : > { %3765 = vmatmul.msk.f32.vlgmr.msrb.gmra.mxu3 %vm907_vm11, %v1343_v53  ;;  %v1628_v53 = vld [vmem:[%s5965_s8 + $0x30] sm:$0xff] }
 0x6f9   : > { %1672 = vmatpush.msra.mxu3 %v1628_v53  ;;  %v1988_v53 = vld [vmem:[%s5967_s10 + $0x60] sm:$0xff] }
 0x6fa   : > { %2011 = vmatpush.msrb.mxu1 %v1988_v53  ;;  %v1980_v53 = vld [vmem:[%s5967_s10 + $0x20] sm:$0xff] }
 0x6ff   : > { %v1346_v54 = vpop.f32.mrf.mxu2 }
 0x700   : > { %3766 = vmatmul.msk.f32.gmra.mxu3 %vm907_vm11, %v1346_v54  ;;  %v1629_v54 = vld [vmem:[%s5965_s8 + $0x38] sm:$0xff] }
 0x701   : > { %1698 = vmatpush.msra.mxu0 %v1629_v54  ;;  %v2001_v54 = vld [vmem:[%s5967_s10 + $0xc8] sm:$0xff] }
 0x707   : > { %v1349_v56 = vpop.f32.mrf.mxu2 }
 0x708   : > { %3767 = vmatmul.msk.f32.gmra.mxu3 %vm907_vm11, %v1349_v56  ;;  %v1510_v19 = vpop.f32.mrf.mxu1  ;;  %v1626_v56 = vld [vmem:[%s5965_s8 + $0x20] sm:$0xff] }
 0x709   : > { %3777 = vmatmul.msk.f32.vlgmr.msrb.gmra.mxu2 %vm907_vm11, %v1510_v19  ;;  %v1627_v19 = vld [vmem:[%s5965_s8 + $0x28] sm:$0xff]  ;;  %1673 = vmatpush.msra.mxu3 %v1626_v56 }
 0x70a   : > { %1699 = vmatpush.msra.mxu0 %v1627_v19 }
 0x710   : > { %v1513_v58 = vpop.f32.mrf.mxu1 }
 0x711   : > { %3778 = vmatmul.msk.f32.gmra.mxu2 %vm907_vm11, %v1513_v58  ;;  %v1624_v58 = vld [vmem:[%s5965_s8 + $0x10] sm:$0xff] }
 0x712   : > { %1674 = vmatpush.msra.mxu3 %v1624_v58 }
 0x714   : > { %1675 = vmatpush.msra.mxu3 %v1622_v60  ;;  %v2000_v60 = vld [vmem:[%s5967_s10 + $0xc0] sm:$0xff] }
 0x749   : > { %v1516_v59 = vpop.f32.mrf.mxu1 }
 0x74a   : > { %3779 = vmatmul.msk.f32.gmra.mxu2 %vm907_vm11, %v1516_v59  ;;  %v1625_v59 = vld [vmem:[%s5965_s8 + $0x18] sm:$0xff] }
 0x74b   : > { %1700 = vmatpush.msra.mxu0 %v1625_v59  ;;  %v1987_v59 = vld [vmem:[%s5967_s10 + $0x58] sm:$0xff] }
 0x74c   : > { %2012 = vmatpush.msrb.mxu1 %v1987_v59 }
 0x77b   : > { %v1380_v61 = vpop.f32.mrf.mxu3 }
 0x77c   : > { %v1389_v2 = vadd.f32 %v1380_v61, %v1222_v63  ;;  %v1623_v61 = vld [vmem:[%s5965_s8 + $0x8] sm:$0xff] }
 0x77d   : > { %1701 = vmatpush.msra.mxu0 %v1623_v61 }
 0x783   : > { %v1383_v55 = vpop.f32.mrf.mxu3 }
 0x784   : > { %v1390_v5 = vadd.f32 %v1383_v55, %v4689_v26 }
 0x78b   : > { %v1386_v36 = vpop.f32.mrf.mxu3 }
 0x78c   : > { %v1547_v3 = vpop.f32.mrf.mxu2  ;;  %v1391_v21 = vadd.f32 %v1386_v36, %v4695_v33 }
 0x78d   : > { %v4747_v4 = vadd.f32 %v1547_v3, %v1389_v2 }
 0x78f   : > { %1559 = vadd.xlane.f32.xlu1 %v4747_v4 }
 0x794   : > { %v1550_v6 = vpop.f32.mrf.mxu2 }
 0x795   : > { %v4751_v7 = vadd.f32 %v1550_v6, %v1390_v5 }
 0x797   : > { %1561 = vadd.xlane.f32.xlu1 %v4751_v7 }
 0x7cd   : > { %v1553_v12 = vpop.f32.mrf.mxu2 }
 0x7ce   : > { %v4755_v8 = vadd.f32 %v1553_v12, %v1391_v21 }
 0x7d0   : > { %1563 = vadd.xlane.f32.xlu0 %v4755_v8 }
 0x802   : > { %v1560_v15 = vpop.xlane.xlu1 %1559 }
 0x803   : > { %v1565_v9 = vmul.f32 0.015625, %v1560_v15 }
 0x805   : > { %v4759_v0 = vsub.f32 %v4747_v4, %v1565_v9 }
 0x807   : > { %v1571_v26 = vmul.f32 %v4759_v0, %v4759_v0 }
 0x809   : > { %v1574_v11 = vmul.f32 %v4438_v57, %v1571_v26 }
 0x80a   : > { %v1562_v1 = vpop.xlane.xlu1 %1561 }
 0x80b   : > { %v1566_v14 = vmul.f32 0.015625, %v1562_v1  ;;  %1577 = vadd.xlane.f32.xlu1 %v1574_v11 }
 0x80d   : > { %v4765_v33 = vsub.f32 %v4751_v7, %v1566_v14 }
 0x80f   : > { %v1572_v16 = vmul.f32 %v4765_v33, %v4765_v33 }
 0x811   : > { %v1575_v18 = vmul.f32 %v4438_v57, %v1572_v16 }
 0x813   : > { %1579 = vadd.xlane.f32.xlu0 %v1575_v18 }
 0x843   : > { %v1564_v10 = vpop.xlane.xlu0 %1563 }
 0x844   : > { %v1567_v20 = vmul.f32 0.015625, %v1564_v10 }
 0x846   : > { %v4795_v17 = vsub.f32 %v4755_v8, %v1567_v20 }
 0x848   : > { %v1573_v34 = vmul.f32 %v4795_v17, %v4795_v17 }
 0x84a   : > { %v1576_v42 = vmul.f32 %v4438_v57, %v1573_v34 }
 0x84c   : > { %1581 = vadd.xlane.f32.xlu2 %v1576_v42 }
 0x87e   : > { %v1578_v62 = vpop.xlane.xlu1 %1577 }
 0x87f   : > { %v1583_v63 = vmul.f32 0.015625, %v1578_v62 }
 0x881   : > { %v1586_v2 = vadd.f32 1e-06, %v1583_v63 }
 0x883   : > { %4068 = vrsqrt.f32 %v1586_v2  ;;  %vm1595_vm15 = vweird.f32 %v1586_v2 }
 0x886   : > { %v1580_v3 = vpop.xlane.xlu0 %1579 }
 0x887   : > { %v1584_v55 = vmul.f32 0.015625, %v1580_v3  ;;  %v1986_v3 = vld [vmem:[%s5967_s10 + $0x50] sm:$0xff] }
 0x888   : > { %2013 = vmatpush.msrb.mxu1 %v1986_v3 }
 0x889   : > { %v4069_v5 = vpop.eup %4068  ;;  %v1587_v6 = vadd.f32 1e-06, %v1584_v55 }
 0x88a   : > { %v1590_v36 = vmul.f32 %v4069_v5, %v1586_v2  ;;  %vm1596_vm14 = vweird.f32 %v4069_v5 }
 0x88b   : > { %4070 = vrsqrt.f32 %v1587_v6  ;;  %vm1597_vm0 = vmor %vm1595_vm15, %vm1596_vm14  ;;  %vm1605_vm2 = vweird.f32 %v1587_v6 }
 0x88c   : > { %v1591_v21 = vmul.f32 %v4069_v5, %v1590_v36 }
 0x88e   : > { %v1592_v12 = vmul.f32 0.5, %v1591_v21  ;;  %v1985_v21 = vld [vmem:[%s5967_s10 + $0x48] sm:$0xff] }
 0x88f   : > { %2014 = vmatpush.msrb.mxu1 %v1985_v21 }
 0x890   : > { %v1593_v15 = vsub.f32 1.5, %v1592_v12 }
 0x891   : > { %v4071_v9 = vpop.eup %4070 }
 0x892   : > { %v1594_v26 = vmul.f32 %v4069_v5, %v1593_v15  ;;  %v1600_v11 = vmul.f32 %v4071_v9, %v1587_v6  ;;  %vm1606_vm1 = vweird.f32 %v4071_v9 }
 0x893   : > { %vm1607_vm3 = vmor %vm1605_vm2, %vm1606_vm1 }
 0x894   : > { %v1601_v1 = vmul.f32 %v4071_v9, %v1600_v11  ;;  %v1598_v14 = vsel %vm1597_vm0, %v4069_v5, %v1594_v26  ;;  %v1999_v5 = vld [vmem:[%s5967_s10 + $0xb8] sm:$0xff] }
 0x895   : > { %v1619_v16 = vmul.f32 %v1598_v14, %v4759_v0  ;;  %v1997_v14 = vld [vmem:[%s5967_s10 + $0xa8] sm:$0xff] }
 0x896   : > { %v1602_v18 = vmul.f32 0.5, %v1601_v1  ;;  %v1984_v1 = vld [vmem:[%s5967_s10 + $0x40] sm:$0xff] }
 0x897   : > { %1676 = vmatmul.f32.vlgmr.msra.gmra.mxu3 %v1619_v16  ;;  %1702 = vmatmul.f32.vlgmr.msra.gmra.mxu0 %v1619_v16 }
 0x898   : > { %v1603_v22 = vsub.f32 1.5, %v1602_v18  ;;  %2015 = vmatpush.msrb.mxu1 %v1984_v1 }
 0x89a   : > { %v1604_v23 = vmul.f32 %v4071_v9, %v1603_v22 }
 0x89c   : > { %v1608_v24 = vsel %vm1607_vm3, %v4071_v9, %v1604_v23  ;;  %v1998_v9 = vld [vmem:[%s5967_s10 + $0xb0] sm:$0xff] }
 0x89d   : > { %v1620_v25 = vmul.f32 %v1608_v24, %v4765_v33  ;;  %v2007_v33 = vld [vmem:[%s5967_s10 + $0xf8] sm:$0xff] }
 0x89e   : > { %2034 = vmatpush.msra.mxu2 %v2007_v33 }
 0x89f   : > { %1679 = vmatmul.f32.gmra.mxu3 %v1620_v25  ;;  %1705 = vmatmul.f32.gmra.mxu0 %v1620_v25 }
 0x8a0   : > { %2035 = vmatpush.msra.mxu2 %v2006_v39 }
 0x8bf   : > { %v1582_v27 = vpop.xlane.xlu2 %1581 }
 0x8c0   : > { %v1585_v28 = vmul.f32 0.015625, %v1582_v27  ;;  %v1983_v27 = vld [vmem:[%s5967_s10 + $0x38] sm:$0xff] }
 0x8c1   : > { %2016 = vmatpush.msrb.mxu1 %v1983_v27  ;;  %v1976_v27 = vld [vmem:[%s5967_s10] sm:$0xff] }
 0x8c2   : > { %v1588_v13 = vadd.f32 1e-06, %v1585_v28  ;;  %v1996_v28 = vld [vmem:[%s5967_s10 + $0xa0] sm:$0xff] }
 0x8c4   : > { %4072 = vrsqrt.f32 %v1588_v13  ;;  %vm1615_vm5 = vweird.f32 %v1588_v13 }
 0x8ca   : > { %v4073_v30 = vpop.eup %4072 }
 0x8cb   : > { %v1610_v10 = vmul.f32 %v4073_v30, %v1588_v13  ;;  %vm1616_vm4 = vweird.f32 %v4073_v30 }
 0x8cc   : > { %vm1617_vm6 = vmor %vm1615_vm5, %vm1616_vm4 }
 0x8cd   : > { %v1611_v0 = vmul.f32 %v4073_v30, %v1610_v10 }
 0x8cf   : > { %v1612_v20 = vmul.f32 0.5, %v1611_v0 }
 0x8d1   : > { %v1613_v34 = vsub.f32 1.5, %v1612_v20 }
 0x8d3   : > { %v1614_v42 = vmul.f32 %v4073_v30, %v1613_v34 }
 0x8d5   : > { %v1618_v35 = vsel %vm1617_vm6, %v4073_v30, %v1614_v42  ;;  %v1982_v42 = vld [vmem:[%s5967_s10 + $0x30] sm:$0xff] }
 0x8d6   : > { %v1621_v37 = vmul.f32 %v1618_v35, %v4795_v17  ;;  %v2005_v17 = vld [vmem:[%s5967_s10 + $0xe8] sm:$0xff]  ;;  %v1995_v35 = vld [vmem:[%s5967_s10 + $0x98] sm:$0xff]  ;;  %2017 = vmatpush.msrb.mxu1 %v1982_v42 }
 0x8d7   : > { %2036 = vmatpush.msra.mxu2 %v2005_v17 }
 0x8d8   : > { %1682 = vmatmul.f32.gmra.mxu3 %v1621_v37  ;;  %1708 = vmatmul.f32.gmra.mxu0 %v1621_v37 }
 0x8d9   : > { %2037 = vmatpush.msra.mxu2 %v2004_v41  ;;  %v1994_v41 = vld [vmem:[%s5967_s10 + $0x90] sm:$0xff]  ;;  %2018 = vmatpush.msrb.mxu1 %v1981_v40 }
 0x8db   : > { %2038 = vmatpush.msra.mxu2 %v2003_v46  ;;  %2019 = vmatpush.msrb.mxu1 %v1980_v53 }
 0x8dd   : > { %2039 = vmatpush.msra.mxu2 %v2002_v51 }
 0x8df   : > { %2040 = vmatpush.msra.mxu2 %v2001_v54  ;;  %v1993_v54 = vld [vmem:[%s5967_s10 + $0x88] sm:$0xff] }
 0x8e1   : > { %2041 = vmatpush.msra.mxu2 %v2000_v60 }
 0x8e3   : > { %2042 = vmatpush.msra.mxu2 %v1999_v5  ;;  %v1979_v5 = vld [vmem:[%s5967_s10 + $0x18] sm:$0xff] }
 0x8e4   : > { %2020 = vmatpush.msrb.mxu1 %v1979_v5 }
 0x8e5   : > { %2043 = vmatpush.msra.mxu2 %v1998_v9 }
 0x8e7   : > { %2044 = vmatpush.msra.mxu2 %v1997_v14 }
 0x8e9   : > { %2045 = vmatpush.msra.mxu2 %v1996_v28 }
 0x8eb   : > { %2046 = vmatpush.msra.mxu2 %v1995_v35 }
 0x8ed   : > { %2047 = vmatpush.msra.mxu2 %v1994_v41 }
 0x8ef   : > { %2048 = vmatpush.msra.mxu2 %v1993_v54 }
 0x914   : > { %v1703_v50 = vpop.f32.mrf.mxu0 }
 0x915   : > { %v4896_v44 = vadd.f32 %v1703_v50, %v4884_v29 }
 0x917   : > { %v4905_v47 = vmul.f32 0.70710677, %v4896_v44 }
 0x919   : > { %v1764_v52 = vmul.f32 %v4905_v47, %v4905_v47 }
 0x91a   : > { %v1677_v56 = vpop.f32.mrf.mxu3 }
 0x91b   : > { %v4923_v19 = vmin.f32 %v1764_v52, 16.0  ;;  %v4926_v58 = vadd.f32 %v1677_v56, %v4907_v48 }
 0x91c   : > { %v1706_v61 = vpop.f32.mrf.mxu0 }
 0x91d   : > { %v1766_v62 = vmul.f32 2.1237322e-06, %v4923_v19  ;;  %v1777_v63 = vmul.f32 3.8918573e-05, %v4923_v19  ;;  %v4937_v2 = vadd.f32 %v1706_v61, %v4884_v29  ;;  %v4943_v55 = vmul.f32 0.70710677, %v4926_v58 }
 0x91f   : > { %v1767_v6 = vadd.f32 0.00028619796, %v1766_v62  ;;  %v1778_v36 = vadd.f32 0.001143296, %v1777_v63  ;;  %v1724_v12 = vmul.f32 %v4943_v55, %v4943_v55  ;;  %v4954_v15 = vmul.f32 0.70710677, %v4937_v2 }
 0x921   : > { %v1768_v26 = vmul.f32 %v1767_v6, %v4923_v19  ;;  %v1779_v11 = vmul.f32 %v1778_v36, %v4923_v19  ;;  %v4967_v16 = vmin.f32 %v1724_v12, 16.0  ;;  %v1844_v18 = vmul.f32 %v4954_v15, %v4954_v15  ;;  %v1992_v6 = vld [vmem:[%s5967_s10 + $0x80] sm:$0xff] }
 0x922   : > { %v1680_v22 = vpop.f32.mrf.mxu3  ;;  %2049 = vmatpush.msra.mxu2 %v1992_v6 }
 0x923   : > { %v1769_v23 = vadd.f32 0.0036580483, %v1768_v26  ;;  %v1780_v24 = vadd.f32 0.014752088, %v1779_v11  ;;  %v4972_v25 = vadd.f32 %v1680_v22, %v4907_v48  ;;  %v1726_v13 = vmul.f32 2.1237322e-06, %v4967_v16 }
 0x924   : > { %v1737_v30 = vmul.f32 3.8918573e-05, %v4967_v16  ;;  %v4982_v10 = vmin.f32 %v1844_v18, 16.0  ;;  %v1978_v26 = vld [vmem:[%s5967_s10 + $0x10] sm:$0xff] }
 0x925   : > { %v1770_v0 = vmul.f32 %v1769_v23, %v4923_v19  ;;  %v1781_v20 = vmul.f32 %v1780_v24, %v4923_v19  ;;  %v4987_v34 = vmul.f32 0.70710677, %v4972_v25  ;;  %v1727_v37 = vadd.f32 0.00028619796, %v1726_v13  ;;  %2021 = vmatpush.msrb.mxu1 %v1978_v26  ;;  %v1977_v23 = vld [vmem:[%s5967_s10 + $0x8] sm:$0xff] }
 0x926   : > { %v1738_v33 = vadd.f32 0.001143296, %v1737_v30  ;;  %v1846_v38 = vmul.f32 2.1237322e-06, %v4982_v10  ;;  %v1857_v49 = vmul.f32 3.8918573e-05, %v4982_v10 }
 0x927   : > { %v1782_v39 = vadd.f32 0.112945676, %v1781_v20  ;;  %v1804_v17 = vmul.f32 %v4987_v34, %v4987_v34  ;;  %v1728_v50 = vmul.f32 %v1727_v37, %v4967_v16  ;;  %v1771_v51 = vadd.f32 0.05243302, %v1770_v0  ;;  %2022 = vmatpush.msrb.mxu1 %v1977_v23 }
 0x928   : > { %v1739_v45 = vmul.f32 %v1738_v33, %v4967_v16  ;;  %v1847_v46 = vadd.f32 0.00028619796, %v1846_v38  ;;  %v1858_v61 = vadd.f32 0.001143296, %v1857_v49 }
 0x929   : > { %v1783_v52 = vmul.f32 %v1782_v39, %v4923_v19  ;;  %v1729_v56 = vadd.f32 0.0036580483, %v1728_v50  ;;  %v5015_v63 = vmin.f32 %v1804_v17, 16.0  ;;  %v1772_v21 = vmul.f32 %v1771_v51, %v4923_v19  ;;  %2023 = vmatpush.msrb.mxu1 %v1976_v27 }
 0x92a   : > { %v1740_v59 = vadd.f32 0.014752088, %v1739_v45  ;;  %v1848_v60 = vmul.f32 %v1847_v46, %v4982_v10  ;;  %v1859_v36 = vmul.f32 %v1858_v61, %v4982_v10 }
 0x92b   : > { %v1784_v62 = vadd.f32 0.4994258, %v1783_v52  ;;  %v1730_v9 = vmul.f32 %v1729_v56, %v4967_v16  ;;  %v1806_v22 = vmul.f32 2.1237322e-06, %v5015_v63  ;;  %v1773_v13 = vadd.f32 0.18741608, %v1772_v21 }
 0x92c   : > { %v1741_v3 = vmul.f32 %v1740_v59, %v4967_v16  ;;  %v1849_v1 = vadd.f32 0.0036580483, %v1848_v60  ;;  %v1860_v14 = vadd.f32 0.014752088, %v1859_v36  ;;  %v1817_v0 = vmul.f32 3.8918573e-05, %v5015_v63 }
 0x92d   : > { %v1785_v12 = vmul.f32 %v1784_v62, %v4923_v19  ;;  %v1731_v30 = vadd.f32 0.05243302, %v1730_v9  ;;  %v1807_v35 = vadd.f32 0.00028619796, %v1806_v22  ;;  %v1774_v38 = vmul.f32 %v1773_v13, %v4923_v19 }
 0x92e   : > { %v1742_v11 = vadd.f32 0.112945676, %v1741_v3  ;;  %v1861_v28 = vmul.f32 %v1860_v14, %v4982_v10  ;;  %v1850_v42 = vmul.f32 %v1849_v1, %v4982_v10  ;;  %v1818_v40 = vadd.f32 0.001143296, %v1817_v0 }
 0x92f   : > { %v1786_v18 = vadd.f32 1.0, %v1785_v12  ;;  %v1732_v39 = vmul.f32 %v1731_v30, %v4967_v16  ;;  %v1808_v46 = vmul.f32 %v1807_v35, %v5015_v63  ;;  %v1775_v53 = vadd.f32 1.1283791, %v1774_v38 }
 0x930   : > { %v1743_v24 = vmul.f32 %v1742_v11, %v4967_v16  ;;  %v1862_v37 = vadd.f32 0.112945676, %v1861_v28  ;;  %v1851_v50 = vadd.f32 0.05243302, %v1850_v42  ;;  %v1819_v51 = vmul.f32 %v1818_v40, %v5015_v63 }
 0x931   : > { %4074 = vrcp.f32 %v1786_v18  ;;  %v1733_v54 = vadd.f32 0.18741608, %v1732_v39  ;;  %v1796_v61 = vand.u32 2147483647, %v1786_v18  ;;  %v1798_v62 = vand.u32 2147483648, %v1786_v18 }
 0x932   : > { %v1744_v20 = vadd.f32 0.4994258, %v1743_v24  ;;  %v1863_v17 = vmul.f32 %v1862_v37, %v4982_v10  ;;  %v1852_v19 = vmul.f32 %v1851_v50, %v4982_v10  ;;  %v1820_v60 = vadd.f32 0.014752088, %v1819_v51 }
 0x933   : > { %v1809_v3 = vadd.f32 0.0036580483, %v1808_v46  ;;  %v1734_v21 = vmul.f32 %v1733_v54, %v4967_v16  ;;  %vm1792_vm8 = vweird.f32 %v1786_v18  ;;  %v1799_v11 = vor.u32 1.1754944e-38, %v1798_v62 }
 0x934   : > { %v1745_v33 = vmul.f32 %v1744_v20, %v4967_v16  ;;  %v1864_v49 = vadd.f32 0.4994258, %v1863_v17  ;;  %v1821_v36 = vmul.f32 %v1820_v60, %v5015_v63  ;;  %v1853_v26 = vadd.f32 0.18741608, %v1852_v19 }
 0x935   : > { %v1810_v14 = vmul.f32 %v1809_v3, %v5015_v63  ;;  %v1776_v22 = vmul.f32 %v1775_v53, %v4905_v47  ;;  %vm1797_vm10 = vcmp.eq.f32.partialorder %v1796_v61, 8.507059e+37  ;;  %v1735_v28 = vadd.f32 1.1283791, %v1734_v21 }
 0x936   : > { %v1746_v41 = vadd.f32 1.0, %v1745_v33  ;;  %v1865_v59 = vmul.f32 %v1864_v49, %v4982_v10  ;;  %v1822_v24 = vadd.f32 0.112945676, %v1821_v36  ;;  %v1713_v33 = vmul.f32 0.5, %v4896_v44 }
 0x937   : > { %v4075_v45 = vpop.eup %4074  ;;  %v1811_v35 = vadd.f32 0.05243302, %v1810_v14  ;;  %v1736_v39 = vmul.f32 %v1735_v28, %v4943_v55  ;;  %v1712_v61 = vmul.f32 0.5, %v4926_v58 }
 0x938   : > { %v1788_v52 = vmul.f32 %v4075_v45, %v1786_v18  ;;  %4076 = vrcp.f32 %v1746_v41  ;;  %vm1793_vm7 = vweird.f32 %v4075_v45  ;;  %v5050_v6 = vadd.f32 1.0, %v1865_v59 }
 0x939   : > { %vm1794_vm9 = vmor %vm1792_vm8, %vm1793_vm7  ;;  %v1758_v30 = vand.u32 2147483648, %v1746_v41  ;;  %v1854_v18 = vmul.f32 %v1853_v26, %v4982_v10  ;;  %v1823_v0 = vmul.f32 %v1822_v24, %v5015_v63  ;;  %v1756_v42 = vand.u32 2147483647, %v1746_v41 }
 0x93a   : > { %v1789_v56 = vsub.f32 1.0, %v1788_v52  ;;  %4078 = vrcp.f32 %v5050_v6  ;;  %vm1752_vm14 = vweird.f32 %v1746_v41  ;;  %v1812_v51 = vmul.f32 %v1811_v35, %v5015_v63 }
 0x93b   : > { %v1824_v38 = vadd.f32 0.4994258, %v1823_v0  ;;  %v1759_v10 = vor.u32 1.1754944e-38, %v1758_v30  ;;  %vm1757_vm0 = vcmp.eq.f32.partialorder %v1756_v42, 8.507059e+37  ;;  %v1878_v54 = vand.u32 2147483648, %v5050_v6 }
 0x93c   : > { %v1790_v5 = vmul.f32 %v4075_v45, %v1789_v56  ;;  %v1876_v19 = vand.u32 2147483647, %v5050_v6  ;;  %vm1872_vm2 = vweird.f32 %v5050_v6  ;;  %v1813_v62 = vadd.f32 0.18741608, %v1812_v51 }
 0x93d   : > { %v1825_v46 = vmul.f32 %v1824_v38, %v5015_v63  ;;  %v1879_v3 = vor.u32 1.1754944e-38, %v1878_v54 }
 0x93e   : > { %v4077_v12 = vpop.eup %4076  ;;  %v1791_v9 = vadd.f32 %v4075_v45, %v1790_v5  ;;  %vm1877_vm4 = vcmp.eq.f32.partialorder %v1876_v19, 8.507059e+37 }
 0x93f   : > { %v1748_v1 = vmul.f32 %v4077_v12, %v1746_v41  ;;  %vm1753_vm12 = vweird.f32 %v4077_v12  ;;  %v1826_v55 = vadd.f32 1.0, %v1825_v46 }
 0x940   : > { %v1795_v23 = vsel %vm1794_vm9, %v4075_v45, %v1791_v9  ;;  %v4079_v37 = vpop.eup %4078  ;;  %vm1754_vm15 = vmor %vm1752_vm14, %vm1753_vm12  ;;  %v1855_v45 = vadd.f32 1.1283791, %v1854_v18 }
 0x941   : > { %v1800_v27 = vsel %vm1797_vm10, %v1799_v11, %v1795_v23  ;;  %v1749_v13 = vsub.f32 1.0, %v1748_v1  ;;  %v1868_v40 = vmul.f32 %v4079_v37, %v5050_v6  ;;  %vm1873_vm1 = vweird.f32 %v4079_v37 }
 0x942   : > { %v1801_v16 = vmul.f32 %v1800_v27, %v1776_v22  ;;  %4080 = vrcp.f32 %v1826_v55  ;;  %vm1874_vm3 = vmor %vm1872_vm2, %vm1873_vm1  ;;  %v1856_v36 = vmul.f32 %v1855_v45, %v4954_v15  ;;  %v1814_v1 = vmul.f32 %v1813_v62, %v5015_v63 }
 0x943   : > { %v1750_v20 = vmul.f32 %v4077_v12, %v1749_v13  ;;  %v1869_v52 = vsub.f32 1.0, %v1868_v40  ;;  %v1715_v6 = vmul.f32 0.5, %v4937_v2  ;;  %v1838_v27 = vand.u32 2147483648, %v1826_v55 }
 0x944   : > { %v3781_v47 = vclamps-f32 %v1801_v16, 1.0  ;;  %v1815_v24 = vadd.f32 1.1283791, %v1814_v1  ;;  %v1836_v16 = vand.u32 2147483647, %v1826_v55  ;;  %vm1832_vm6 = vweird.f32 %v1826_v55 }
 0x945   : > { %v1751_v17 = vadd.f32 %v4077_v12, %v1750_v20  ;;  %v1870_v41 = vmul.f32 %v4079_v37, %v1869_v52  ;;  %v1839_v2 = vor.u32 1.1754944e-38, %v1838_v27  ;;  %v1714_v40 = vmul.f32 0.5, %v4972_v25 }
 0x946   : > { %v1965_v50 = vadd.f32 1.0, %v3781_v47  ;;  %v1816_v0 = vmul.f32 %v1815_v24, %v4987_v34  ;;  %vm1837_vm8 = vcmp.eq.f32.partialorder %v1836_v16, 8.507059e+37 }
 0x947   : > { %v1755_v49 = vsel %vm1754_vm15, %v4077_v12, %v1751_v17  ;;  %v1871_v60 = vadd.f32 %v4079_v37, %v1870_v41 }
 0x948   : > { %v1971_v44 = vmul.f32 %v1965_v50, %v1713_v33  ;;  %v1760_v53 = vsel %vm1757_vm0, %v1759_v10, %v1755_v49  ;;  %v4081_v11 = vpop.eup %4080 }
 0x949   : > { %v1761_v56 = vmul.f32 %v1760_v53, %v1736_v39  ;;  %v1875_v21 = vsel %vm1874_vm3, %v4079_v37, %v1871_v60  ;;  %v1828_v22 = vmul.f32 %v4081_v11, %v1826_v55  ;;  %vm1833_vm5 = vweird.f32 %v4081_v11 }
 0x94a   : > { %2050 = vmatmul.f32.vlgmr.msra.gmra.mxu2 %v1971_v44  ;;  %v1880_v12 = vsel %vm1877_vm4, %v1879_v3, %v1875_v21  ;;  %vm1834_vm7 = vmor %vm1832_vm6, %vm1833_vm5 }
 0x94b   : > { %v3780_v59 = vclamps-f32 %v1761_v56, 1.0  ;;  %v1881_v26 = vmul.f32 %v1880_v12, %v1856_v36  ;;  %v1829_v23 = vsub.f32 1.0, %v1828_v22 }
 0x94d   : > { %v1964_v5 = vadd.f32 1.0, %v3780_v59  ;;  %v3783_v14 = vclamps-f32 %v1881_v26, 1.0  ;;  %v1830_v15 = vmul.f32 %v4081_v11, %v1829_v23 }
 0x94f   : > { %v1970_v9 = vmul.f32 %v1964_v5, %v1712_v61  ;;  %v1967_v58 = vadd.f32 1.0, %v3783_v14  ;;  %v1831_v18 = vadd.f32 %v4081_v11, %v1830_v15 }
 0x951   : > { %2024 = vmatmul.f32.vlgmr.msrb.gmra.mxu1 %v1970_v9  ;;  %v1973_v28 = vmul.f32 %v1967_v58, %v1715_v6  ;;  %v1835_v20 = vsel %vm1834_vm7, %v4081_v11, %v1831_v18 }
 0x952   : > { %v1840_v35 = vsel %vm1837_vm8, %v1839_v2, %v1835_v20 }
 0x953   : > { %2053 = vmatmul.f32.gmra.mxu2 %v1973_v28  ;;  %v1841_v37 = vmul.f32 %v1840_v35, %v1816_v0 }
 0x955   : > { %v1709_v13 = vpop.f32.mrf.mxu0  ;;  %v3782_v38 = vclamps-f32 %v1841_v37, 1.0 }
 0x956   : > { %v5072_v30 = vadd.f32 %v1709_v13, %v4884_v29 }
 0x957   : > { %v1966_v34 = vadd.f32 1.0, %v3782_v38 }
 0x958   : > { %v5075_v63 = vmul.f32 0.70710677, %v5072_v30 }
 0x959   : > { %v1972_v46 = vmul.f32 %v1966_v34, %v1714_v40 }
 0x95a   : > { %v1924_v42 = vmul.f32 %v5075_v63, %v5075_v63 }
 0x95b   : > { %v1683_v33 = vpop.f32.mrf.mxu3  ;;  %2027 = vmatmul.f32.gmra.mxu1 %v1972_v46 }
 0x95c   : > { %v1925_v29 = vmin.f32 %v1924_v42, 16.0  ;;  %v5081_v47 = vadd.f32 %v1683_v33, %v4907_v48 }
 0x95e   : > { %v1926_v39 = vmul.f32 2.1237322e-06, %v1925_v29  ;;  %v5084_v17 = vmul.f32 0.70710677, %v5081_v47  ;;  %v1937_v50 = vmul.f32 3.8918573e-05, %v1925_v29 }
 0x960   : > { %v1927_v10 = vadd.f32 0.00028619796, %v1926_v39  ;;  %v1884_v45 = vmul.f32 %v5084_v17, %v5084_v17  ;;  %v1938_v49 = vadd.f32 0.001143296, %v1937_v50 }
 0x962   : > { %v1928_v51 = vmul.f32 %v1927_v10, %v1925_v29  ;;  %v1885_v52 = vmin.f32 %v1884_v45, 16.0  ;;  %v1939_v48 = vmul.f32 %v1938_v49, %v1925_v29 }
 0x964   : > { %v1886_v44 = vmul.f32 2.1237322e-06, %v1885_v52  ;;  %v1897_v53 = vmul.f32 3.8918573e-05, %v1885_v52  ;;  %v1929_v54 = vadd.f32 0.0036580483, %v1928_v51 }
 0x965   : > { %v1940_v55 = vadd.f32 0.014752088, %v1939_v48 }
 0x966   : > { %v1887_v56 = vadd.f32 0.00028619796, %v1886_v44  ;;  %v1898_v41 = vadd.f32 0.001143296, %v1897_v53  ;;  %v1930_v60 = vmul.f32 %v1929_v54, %v1925_v29 }
 0x967   : > { %v1941_v19 = vmul.f32 %v1940_v55, %v1925_v29  ;;  %v1717_v55 = vmul.f32 0.5, %v5072_v30 }
 0x968   : > { %v1888_v25 = vmul.f32 %v1887_v56, %v1885_v52  ;;  %v1899_v59 = vmul.f32 %v1898_v41, %v1885_v52  ;;  %v1931_v21 = vadd.f32 0.05243302, %v1930_v60  ;;  %v1716_v60 = vmul.f32 0.5, %v5081_v47 }
 0x969   : > { %v1942_v61 = vadd.f32 0.112945676, %v1941_v19 }
 0x96a   : > { %v1889_v62 = vadd.f32 0.0036580483, %v1888_v25  ;;  %v1900_v3 = vadd.f32 0.014752088, %v1899_v59  ;;  %v1932_v14 = vmul.f32 %v1931_v21, %v1925_v29 }
 0x96b   : > { %v1943_v5 = vmul.f32 %v1942_v61, %v1925_v29 }
 0x96c   : > { %v1901_v36 = vmul.f32 %v1900_v3, %v1885_v52  ;;  %v1890_v9 = vmul.f32 %v1889_v62, %v1885_v52  ;;  %v1933_v24 = vadd.f32 0.18741608, %v1932_v14 }
 0x96d   : > { %v1944_v12 = vadd.f32 0.4994258, %v1943_v5 }
 0x96e   : > { %v1902_v26 = vadd.f32 0.112945676, %v1901_v36  ;;  %v1891_v6 = vadd.f32 0.05243302, %v1890_v9  ;;  %v1934_v15 = vmul.f32 %v1933_v24, %v1925_v29 }
 0x96f   : > { %v1945_v11 = vmul.f32 %v1944_v12, %v1925_v29 }
 0x970   : > { %v1903_v1 = vmul.f32 %v1902_v26, %v1885_v52  ;;  %v1892_v27 = vmul.f32 %v1891_v6, %v1885_v52  ;;  %v1935_v0 = vadd.f32 1.1283791, %v1934_v15 }
 0x971   : > { %v1946_v22 = vadd.f32 1.0, %v1945_v11 }
 0x972   : > { %v1904_v58 = vadd.f32 0.4994258, %v1903_v1  ;;  %v1893_v16 = vadd.f32 0.18741608, %v1892_v27  ;;  %v1936_v40 = vmul.f32 %v1935_v0, %v5075_v63  ;;  %v3814_v0 = vld [vmem:[%s6002_s25 + $0x1e0] sm:$0xff] }
 0x973   : > { %4082 = vrcp.f32 %v1946_v22  ;;  %v1958_v20 = vand.u32 2147483648, %v1946_v22  ;;  %v1956_v33 = vand.u32 2147483647, %v1946_v22  ;;  %vm1952_vm10 = vweird.f32 %v1946_v22 }
 0x974   : > { %v1905_v23 = vmul.f32 %v1904_v58, %v1885_v52  ;;  %v1894_v35 = vmul.f32 %v1893_v16, %v1885_v52 }
 0x975   : > { %v1959_v34 = vor.u32 1.1754944e-38, %v1958_v20  ;;  %vm1957_vm14 = vcmp.eq.f32.partialorder %v1956_v33, 8.507059e+37  ;;  %v3815_v20 = vld [vmem:[%s6002_s25 + $0x1e8] sm:$0xff] }
 0x976   : > { %v1906_v28 = vadd.f32 1.0, %v1905_v23  ;;  %v1895_v10 = vadd.f32 1.1283791, %v1894_v35  ;;  %v3813_v35 = vld [vmem:[%s6002_s25 + $0x1d8] sm:$0xff]  ;;  %v3811_v33 = vld [vmem:[%s6002_s25 + $0x1c8] sm:$0xff] }
 0x978   : > { %4084 = vrcp.f32 %v1906_v28  ;;  %v1918_v45 = vand.u32 2147483648, %v1906_v28  ;;  %v1916_v51 = vand.u32 2147483647, %v1906_v28  ;;  %vm1912_vm0 = vweird.f32 %v1906_v28 }
 0x979   : > { %v4083_v13 = vpop.eup %4082  ;;  %v1896_v54 = vmul.f32 %v1895_v10, %v5084_v17  ;;  %v4007_v17 = vld [vmem:[%s5968_s11] ss:$0 sm:$0xff]  ;;  %v3808_v10 = vld [vmem:[%s6002_s25 + $0x1b0] sm:$0xff] }
 0x97a   : > { %v1948_v18 = vmul.f32 %v4083_v13, %v1946_v22  ;;  %vm1953_vm9 = vweird.f32 %v4083_v13  ;;  %v1919_v53 = vor.u32 1.1754944e-38, %v1918_v45  ;;  %vm1917_vm2 = vcmp.eq.f32.partialorder %v1916_v51, 8.507059e+37  ;;  %v3806_v45 = vld [vmem:[%s6002_s25 + $0x1a0] sm:$0xff]  ;;  %v3805_v51 = vld [vmem:[%s6002_s25 + $0x198] sm:$0xff] }
 0x97b   : > { %vm1954_vm12 = vmor %vm1952_vm10, %vm1953_vm9 }
 0x97c   : > { %v1949_v2 = vsub.f32 1.0, %v1948_v18  ;;  %v3816_v18 = vld [vmem:[%s6002_s25 + $0x1f0] sm:$0xff] }
 0x97d   : > { %2173 = vmatpush.msrb.mxu3 %v3816_v18 }
 0x97e   : > { %v4085_v42 = vpop.eup %4084  ;;  %v1950_v37 = vmul.f32 %v4083_v13, %v1949_v2  ;;  %v3817_v2 = vld [vmem:[%s6002_s25 + $0x1f8] sm:$0xff] }
 0x97f   : > { %v1908_v38 = vmul.f32 %v4085_v42, %v1906_v28  ;;  %vm1913_vm15 = vweird.f32 %v4085_v42  ;;  %2199 = vmatpush.msrb.mxu0 %v3817_v2  ;;  %2174 = vmatpush.msrb.mxu3 %v3814_v0 }
 0x980   : > { %v1951_v39 = vadd.f32 %v4083_v13, %v1950_v37  ;;  %vm1914_vm1 = vmor %vm1912_vm0, %vm1913_vm15  ;;  %v3810_v37 = vld [vmem:[%s6002_s25 + $0x1c0] sm:$0xff] }
 0x981   : > { %v1909_v50 = vsub.f32 1.0, %v1908_v38  ;;  %2200 = vmatpush.msrb.mxu0 %v3815_v20 }
 0x982   : > { %v1955_v29 = vsel %vm1954_vm12, %v4083_v13, %v1951_v39 }
 0x983   : > { %v1960_v46 = vsel %vm1957_vm14, %v1959_v34, %v1955_v29  ;;  %v1910_v49 = vmul.f32 %v4085_v42, %v1909_v50  ;;  %2201 = vmatpush.msrb.mxu0 %v3813_v35  ;;  %v3809_v29 = vld [vmem:[%s6002_s25 + $0x1b8] sm:$0xff] }
 0x984   : > { %v1961_v52 = vmul.f32 %v1960_v46, %v1936_v40  ;;  %v3807_v46 = vld [vmem:[%s6002_s25 + $0x1a8] sm:$0xff] }
 0x985   : > { %v1911_v48 = vadd.f32 %v4085_v42, %v1910_v49  ;;  %2202 = vmatpush.msrb.mxu0 %v3811_v33  ;;  %v3804_v49 = vld [vmem:[%s6002_s25 + $0x190] sm:$0xff] }
 0x986   : > { %v3785_v44 = vclamps-f32 %v1961_v52, 1.0  ;;  %v3802_v52 = vld [vmem:[%s6002_s25 + $0x180] sm:$0xff] }
 0x987   : > { %v1915_v63 = vsel %vm1914_vm1, %v4085_v42, %v1911_v48  ;;  %v3812_v42 = vld [vmem:[%s6002_s25 + $0x1d0] sm:$0xff]  ;;  %2203 = vmatpush.msrb.mxu0 %v3809_v29  ;;  %v3803_v48 = vld [vmem:[%s6002_s25 + $0x188] sm:$0xff] }
 0x988   : > { %v1969_v56 = vadd.f32 1.0, %v3785_v44  ;;  %v1920_v41 = vsel %vm1917_vm2, %v1919_v53, %v1915_v63  ;;  %2175 = vmatpush.msrb.mxu3 %v3812_v42  ;;  %v3800_v44 = vld [vmem:[%s6002_s25 + $0x170] sm:$0xff]  ;;  %v3801_v53 = vld [vmem:[%s6002_s25 + $0x178] sm:$0xff]  ;;  %v3799_v63 = vld [vmem:[%s6002_s25 + $0x168] sm:$0xff] }
 0x989   : > { %v1921_v19 = vmul.f32 %v1920_v41, %v1896_v54  ;;  %2204 = vmatpush.msrb.mxu0 %v3807_v46  ;;  %v3798_v54 = vld [vmem:[%s6002_s25 + $0x160] sm:$0xff] }
 0x98a   : > { %v1975_v25 = vmul.f32 %v1969_v56, %v1717_v55  ;;  %2176 = vmatpush.msrb.mxu3 %v3810_v37  ;;  %v3796_v55 = vld [vmem:[%s6002_s25 + $0x150] sm:$0xff]  ;;  %v3797_v56 = vld [vmem:[%s6002_s25 + $0x158] sm:$0xff]  ;;  %v3794_v41 = vld [vmem:[%s6002_s25 + $0x140] sm:$0xff] }
 0x98b   : > { %v3784_v59 = vclamps-f32 %v1921_v19, 1.0  ;;  %2205 = vmatpush.msrb.mxu0 %v3805_v51  ;;  %v3795_v19 = vld [vmem:[%s6002_s25 + $0x148] sm:$0xff] }
 0x98c   : > { %2056 = vmatmul.f32.gmra.mxu2 %v1975_v25  ;;  %2177 = vmatpush.msrb.mxu3 %v3808_v10  ;;  %v3792_v25 = vld [vmem:[%s6002_s25 + $0x130] sm:$0xff] }
 0x98d   : > { %v1968_v61 = vadd.f32 1.0, %v3784_v59  ;;  %2206 = vmatpush.msrb.mxu0 %v3803_v48  ;;  %v3793_v59 = vld [vmem:[%s6002_s25 + $0x138] sm:$0xff] }
 0x98e   : > { %2178 = vmatpush.msrb.mxu3 %v3806_v45  ;;  %v3818_v45 = vld [vmem:[%s5962_s5 + $0x2] sm:$0x3] }
 0x98f   : > { %v1974_v62 = vmul.f32 %v1968_v61, %v1716_v60  ;;  %2207 = vmatpush.msrb.mxu0 %v3801_v53  ;;  %v3790_v60 = vld [vmem:[%s6002_s25 + $0x120] sm:$0xff]  ;;  %v3791_v61 = vld [vmem:[%s6002_s25 + $0x128] sm:$0xff]  ;;  %v2169_v46 = vperm.slane %v3818_v45, 0 }
 0x990   : > { %2179 = vmatpush.msrb.mxu3 %v3804_v49 }
 0x991   : > { %2030 = vmatmul.f32.gmra.mxu1 %v1974_v62  ;;  %2208 = vmatpush.msrb.mxu0 %v3799_v63  ;;  %v3788_v62 = vld [vmem:[%s6002_s25 + $0x110] sm:$0xff] }
 0x992   : > { %2180 = vmatpush.msrb.mxu3 %v3802_v52 }
 0x993   : > { %2209 = vmatpush.msrb.mxu0 %v3797_v56 }
 0x994   : > { %2181 = vmatpush.msrb.mxu3 %v3800_v44  ;;  %v2170_v44 = vperm.slane %v3818_v45, 1 }
 0x995   : > { %2210 = vmatpush.msrb.mxu0 %v3795_v19 }
 0x996   : > { %2182 = vmatpush.msrb.mxu3 %v3798_v54 }
 0x997   : > { %2211 = vmatpush.msrb.mxu0 %v3793_v59 }
 0x998   : > { %2183 = vmatpush.msrb.mxu3 %v3796_v55 }
 0x999   : > { %2212 = vmatpush.msrb.mxu0 %v3791_v61 }
 0x99a   : > { %2184 = vmatpush.msrb.mxu3 %v3794_v41 }
 0x99c   : > { %2185 = vmatpush.msrb.mxu3 %v3792_v25 }
 0x99e   : > { %2186 = vmatpush.msrb.mxu3 %v3790_v60 }
 0x9a0   : > { %2187 = vmatpush.msrb.mxu3 %v3788_v62 }
 0x9cd   : > { %v2051_v3 = vpop.f32.mrf.mxu2 }
 0x9ce   : > { %v2025_v5 = vpop.f32.mrf.mxu1 }
 0x9cf   : > { %v2052_v36 = vadd.f32 %v2051_v3, %v2025_v5  ;;  %v3789_v3 = vld [vmem:[%s6002_s25 + $0x118] sm:$0xff] }
 0x9d0   : > { %2213 = vmatpush.msrb.mxu0 %v3789_v3 }
 0x9d1   : > { %v2060_v30 = vadd.f32 %v2052_v36, %v4747_v4 }
 0x9d3   : > { %v5097_v21 = vadd.f32 %v4007_v17, %v2060_v30  ;;  %v3787_v30 = vld [vmem:[%s6002_s25 + $0x108] sm:$0xff] }
 0x9d4   : > { %2214 = vmatpush.msrb.mxu0 %v3787_v30 }
 0x9d5   : > { %2070 = vadd.xlane.f32.xlu1 %v5097_v21 }
 0x9d6   : > { %v2054_v12 = vpop.f32.mrf.mxu2 }
 0x9d8   : > { %v2028_v9 = vpop.f32.mrf.mxu1 }
 0x9d9   : > { %v2055_v26 = vadd.f32 %v2054_v12, %v2028_v9 }
 0x9db   : > { %v2061_v47 = vadd.f32 %v2055_v26, %v4751_v7 }
 0x9dd   : > { %v5101_v11 = vadd.f32 %v4007_v17, %v2061_v47 }
 0x9df   : > { %2072 = vadd.xlane.f32.xlu0 %v5101_v11 }
 0xa0e   : > { %v2031_v1 = vpop.f32.mrf.mxu1 }
 0xa0f   : > { %v2057_v14 = vpop.f32.mrf.mxu2 }
 0xa10   : > { %v2058_v22 = vadd.f32 %v2057_v14, %v2031_v1 }
 0xa12   : > { %v2062_v6 = vadd.f32 %v2058_v22, %v4755_v8 }
 0xa14   : > { %v5105_v58 = vadd.f32 %v4007_v17, %v2062_v6  ;;  %v3786_v17 = vld [vmem:[%s6002_s25 + $0x100] sm:$0xff] }
 0xa15   : > { %2188 = vmatpush.msrb.mxu3 %v3786_v17 }
 0xa16   : > { %2074 = vadd.xlane.f32.xlu2 %v5105_v58 }
 0xa48   : > { %v2071_v4 = vpop.xlane.xlu1 %2070 }
 0xa49   : > { %v2076_v23 = vmul.f32 0.015625, %v2071_v4 }
 0xa4b   : > { %v5109_v24 = vsub.f32 %v5097_v21, %v2076_v23 }
 0xa4d   : > { %v2082_v7 = vmul.f32 %v5109_v24, %v5109_v24 }
 0xa4f   : > { %v2085_v27 = vmul.f32 %v4438_v57, %v2082_v7 }
 0xa51   : > { %2088 = vadd.xlane.f32.xlu1 %v2085_v27 }
 0xa52   : > { %v2073_v28 = vpop.xlane.xlu0 %2072 }
 0xa53   : > { %v2077_v13 = vmul.f32 0.015625, %v2073_v28 }
 0xa55   : > { %v5115_v15 = vsub.f32 %v5101_v11, %v2077_v13 }
 0xa57   : > { %v2083_v8 = vmul.f32 %v5115_v15, %v5115_v15 }
 0xa59   : > { %v2086_v16 = vmul.f32 %v4438_v57, %v2083_v8 }
 0xa5b   : > { %2090 = vadd.xlane.f32.xlu0 %v2086_v16 }
 0xa89   : > { %v2075_v38 = vpop.xlane.xlu2 %2074 }
 0xa8a   : > { %v2078_v39 = vmul.f32 0.015625, %v2075_v38 }
 0xa8c   : > { %v5145_v40 = vsub.f32 %v5105_v58, %v2078_v39 }
 0xa8e   : > { %v2084_v34 = vmul.f32 %v5145_v40, %v5145_v40 }
 0xa90   : > { %v2087_v50 = vmul.f32 %v4438_v57, %v2084_v34 }
 0xa92   : > { %2092 = vadd.xlane.f32.xlu2 %v2087_v50 }
 0xac4   : > { %v2089_v5 = vpop.xlane.xlu1 %2088 }
 0xac5   : > { %v2094_v36 = vmul.f32 0.015625, %v2089_v5 }
 0xac7   : > { %v2097_v12 = vadd.f32 1e-06, %v2094_v36 }
 0xac9   : > { %4086 = vrsqrt.f32 %v2097_v12  ;;  %vm2106_vm4 = vweird.f32 %v2097_v12 }
 0xace   : > { %v2091_v22 = vpop.xlane.xlu0 %2090 }
 0xacf   : > { %v4087_v9 = vpop.eup %4086  ;;  %v2095_v6 = vmul.f32 0.015625, %v2091_v22 }
 0xad0   : > { %v2101_v26 = vmul.f32 %v4087_v9, %v2097_v12  ;;  %vm2107_vm3 = vweird.f32 %v4087_v9 }
 0xad1   : > { %vm2108_vm5 = vmor %vm2106_vm4, %vm2107_vm3  ;;  %v2098_v23 = vadd.f32 1e-06, %v2095_v6 }
 0xad2   : > { %v2102_v47 = vmul.f32 %v4087_v9, %v2101_v26 }
 0xad3   : > { %4088 = vrsqrt.f32 %v2098_v23  ;;  %vm2116_vm7 = vweird.f32 %v2098_v23 }
 0xad4   : > { %v2103_v1 = vmul.f32 0.5, %v2102_v47 }
 0xad6   : > { %v2104_v14 = vsub.f32 1.5, %v2103_v1 }
 0xad8   : > { %v2105_v4 = vmul.f32 %v4087_v9, %v2104_v14 }
 0xad9   : > { %v4089_v28 = vpop.eup %4088 }
 0xada   : > { %v2109_v7 = vsel %vm2108_vm5, %v4087_v9, %v2105_v4  ;;  %v2111_v13 = vmul.f32 %v4089_v28, %v2098_v23  ;;  %vm2117_vm6 = vweird.f32 %v4089_v28 }
 0xadb   : > { %v2130_v27 = vmul.f32 %v2109_v7, %v5109_v24  ;;  %vm2118_vm8 = vmor %vm2116_vm7, %vm2117_vm6 }
 0xadc   : > { %v2112_v8 = vmul.f32 %v4089_v28, %v2111_v13 }
 0xadd   : > { %2189 = vmatmul.f32.vlgmr.msrb.gmra.mxu3 %v2130_v27  ;;  %2215 = vmatmul.f32.vlgmr.msrb.gmra.mxu0 %v2130_v27 }
 0xade   : > { %v2113_v16 = vmul.f32 0.5, %v2112_v8 }
 0xae0   : > { %v2114_v18 = vsub.f32 1.5, %v2113_v16 }
 0xae2   : > { %v2115_v2 = vmul.f32 %v4089_v28, %v2114_v18 }
 0xae4   : > { %v2119_v0 = vsel %vm2118_vm8, %v4089_v28, %v2115_v2 }
 0xae5   : > { %v2131_v20 = vmul.f32 %v2119_v0, %v5115_v15 }
 0xae7   : > { %2192 = vmatmul.f32.gmra.mxu3 %v2131_v20  ;;  %2218 = vmatmul.f32.gmra.mxu0 %v2131_v20 }
 0xb05   : > { %v2093_v42 = vpop.xlane.xlu2 %2092 }
 0xb06   : > { %v2096_v35 = vmul.f32 0.015625, %v2093_v42 }
 0xb08   : > { %v2099_v37 = vadd.f32 1e-06, %v2096_v35 }
 0xb0a   : > { %4090 = vrsqrt.f32 %v2099_v37  ;;  %vm2126_vm10 = vweird.f32 %v2099_v37 }
 0xb10   : > { %v4091_v24 = vpop.eup %4090 }
 0xb11   : > { %v2121_v33 = vmul.f32 %v4091_v24, %v2099_v37  ;;  %vm2127_vm9 = vweird.f32 %v4091_v24 }
 0xb12   : > { %vm2128_vm12 = vmor %vm2126_vm10, %vm2127_vm9 }
 0xb13   : > { %v2122_v38 = vmul.f32 %v4091_v24, %v2121_v33 }
 0xb15   : > { %v2123_v39 = vmul.f32 0.5, %v2122_v38 }
 0xb17   : > { %v2124_v34 = vsub.f32 1.5, %v2123_v39 }
 0xb19   : > { %v2125_v50 = vmul.f32 %v4091_v24, %v2124_v34 }
 0xb1b   : > { %v2129_v10 = vsel %vm2128_vm12, %v4091_v24, %v2125_v50 }
 0xb1c   : > { %v2132_v29 = vmul.f32 %v2129_v10, %v5145_v40 }
 0xb1e   : > { %2195 = vmatmul.f32.gmra.mxu3 %v2132_v29  ;;  %2221 = vmatmul.f32.gmra.mxu0 %v2132_v29 }
 0xb5a   : > { %v2216_v40 = vpop.f32.mrf.mxu0 }
 0xb5b   : > { %v5238_v56 = vadd.f32 %v2216_v40, %v2170_v44 }
 0xb60   : > { %v2190_v15 = vpop.f32.mrf.mxu3 }
 0xb61   : > { %v5232_v52 = vadd.f32 %v2190_v15, %v2169_v46 }
 0xb64   : > { %v2219_v48 = vpop.f32.mrf.mxu0 }
 0xb65   : > { %v2220_v54 = vadd.f32 %v2219_v48, %v2170_v44 }
 0xb6a   : > { %v2193_v49 = vpop.f32.mrf.mxu3 }
 0xb6b   : > { %v5228_v51 = vadd.f32 %v2193_v49, %v2169_v46 }
 0xb6d   : > { %2238 = vrot.lane.b32.xlu2 %v5228_v51, %s4183_s22 }
 0xb75   : > { %2395 = vrot.lane.b32.xlu2 %v5232_v52, %s6003_s2 }
 0xb9b   : > { %v2222_v53 = vpop.f32.mrf.mxu0 }
 0xb9c   : > { %v2223_v63 = vadd.f32 %v2222_v53, %v2170_v44 }
 0xb9e   : > { %2335 = vmatpush.msrb.mxu2 %v2223_v63  ;;  %v5236_v55 = vpack.i.bf16 %v2220_v54, %v2223_v63 }
 0xba0   : > { %2336 = vmatpush.msrb.mxu2 %v2220_v54 }
 0xba1   : > { %v2196_v41 = vpop.f32.mrf.mxu3 }
 0xba2   : > { %v5240_v19 = vadd.f32 %v2196_v41, %v2169_v46  ;;  %2337 = vmatpush.msrb.mxu2 %v5238_v56 }
 0xba4   : > { %2393 = vrot.lane.b32.xlu2 %v5240_v19, %s6004_s26  ;;  %2399 = vrot.lane.b32.xlu0 %v5240_v19, %s6003_s2 }
 0xba5   : > { %2240 = vrot.lane.b32.xlu1 %v5240_v19, %s4183_s22 }
 0xbac   : > { %2397 = vrot.lane.b32.xlu0 %v5228_v51, %s6003_s2 }
 0xbad   : > { %2236 = vrot.lane.b32.xlu1 %v5232_v52, %s4183_s22  ;;  %s6005_s22 = smov 16  }
 0xbb4   : > { %2389 = vrot.lane.b32.xlu0 %v5232_v52, %s6004_s26 }
 0xbb5   : > { %2391 = vrot.lane.b32.xlu1 %v5228_v51, %s6004_s26 }
 0xbc7   : > { %v2239_v60 = vpop.permute.xlu2 %2238 }
 0xbcf   : > { %v2396_v3 = vpop.permute.xlu2 %2395 }
 0xbfe   : > { %v2394_v17 = vpop.permute.xlu2 %2393 }
 0xc16   : > { %v2400_v25 = vpop.permute.xlu0 %2399 }
 0xc17   : > { %v2241_v59 = vpop.permute.xlu1 %2240  ;;  %3834 = vmatpush.xpose.msk.msra.mxu0 %vm907_vm11, %v2400_v25 }
 0xc18   : > { %3820 = vmatpush.xpose.msk.msra.mxu1 %vm907_vm11, %v2241_v59 }
 0xc1c   : > { %3821 = vmatpush.xpose.msk.msra.mxu1 %vm907_vm11, %v2239_v60 }
 0xc1e   : > { %v2398_v61 = vpop.permute.xlu0 %2397 }
 0xc1f   : > { %v2237_v62 = vpop.permute.xlu1 %2236  ;;  %3835 = vmatpush.xpose.msk.msra.mxu0 %vm907_vm11, %v2398_v61 }
 0xc20   : > { %3822 = vmatpush.xpose.msk.msra.mxu1 %vm907_vm11, %v2237_v62 }
 0xc23   : > { %3823 = vmatmul.msk.f32.vlgmr.msra.gmra.mxu1 %vm907_vm11, %v5232_v52  ;;  %3836 = vmatpush.xpose.msk.msra.mxu0 %vm907_vm11, %v2396_v3 }
 0xc26   : > { %v2390_v5 = vpop.permute.xlu0 %2389 }
 0xc27   : > { %3837 = vmatmul.msk.f32.vlgmr.msra.gmra.mxu0 %vm907_vm11, %v2390_v5  ;;  %v2392_v36 = vpop.permute.xlu1 %2391 }
 0xc2b   : > { %3824 = vmatmul.msk.f32.gmra.mxu1 %vm907_vm11, %v5228_v51 }
 0xc2f   : > { %3838 = vmatmul.msk.f32.gmra.mxu0 %vm907_vm11, %v2392_v36 }
 0xc33   : > { %3825 = vmatmul.msk.f32.gmra.mxu1 %vm907_vm11, %v5240_v19 }
 0xc37   : > { %3839 = vmatmul.msk.f32.gmra.mxu0 %vm907_vm11, %v2394_v17  ;;  %v3844_v17 = vld [vmem:[%s5963_s6 + $0x98] sm:$0xff] }
 0xc38   : > { %2544 = vmatpush.msra.mxu2 %v3844_v17 }
 0xca0   : > { %v2271_v30 = vpop.f32.mrf.mxu1 }
 0xca1   : > { %v2272_v12 = vadd.f32 %v2271_v30, %v4580_v32  ;;  %v3829_v30 = vld [vmem:[%s5963_s6 + $0x80] sm:$0xff] }
 0xca3   : > { %v2280_v9 = vsel %vm946_vm13, %v2272_v12, -inf }
 0xca4   : > { %2281 = vmax.xlane.f32.xlu0 %v2280_v9  ;;  %v2430_v26 = vpop.f32.mrf.mxu0 }
 0xca5   : > { %v2431_v47 = vadd.f32 %v2430_v26, %v4580_v32 }
 0xca7   : > { %v2439_v1 = vsel %vm946_vm13, %v2431_v47, -inf }
 0xca8   : > { %v2274_v14 = vpop.f32.mrf.mxu1  ;;  %2440 = vmax.xlane.f32.xlu1 %v2439_v1 }
 0xca9   : > { %v2275_v22 = vadd.f32 %v2274_v14, %v4580_v32 }
 0xcab   : > { %v2283_v6 = vsel %vm946_vm13, %v2275_v22, -inf }
 0xcac   : > { %2284 = vmax.xlane.f32.xlu2 %v2283_v6  ;;  %v2433_v4 = vpop.f32.mrf.mxu0 }
 0xcad   : > { %v2434_v23 = vadd.f32 %v2433_v4, %v4580_v32 }
 0xcaf   : > { %v2442_v7 = vsel %vm946_vm13, %v2434_v23, -inf }
 0xcb0   : > { %v2277_v27 = vpop.f32.mrf.mxu1  ;;  %2443 = vmax.xlane.f32.xlu0 %v2442_v7 }
 0xcb1   : > { %v2278_v28 = vadd.f32 %v2277_v27, %v4580_v32 }
 0xcb3   : > { %v2286_v13 = vsel %vm946_vm13, %v2278_v28, -inf }
 0xcb4   : > { %2287 = vmax.xlane.f32.xlu1 %v2286_v13  ;;  %v2436_v8 = vpop.f32.mrf.mxu0 }
 0xcb5   : > { %v2437_v16 = vadd.f32 %v2436_v8, %v4580_v32 }
 0xcb7   : > { %v2445_v18 = vsel %vm946_vm13, %v2437_v16, -inf }
 0xcb8   : > { %2446 = vmax.xlane.f32.xlu2 %v2445_v18 }
 0xcd0   : > { %3988 = vrot.lane.b32.xlu2 %v5236_v55, %s6004_s26 }
 0xcd8   : > { %2736 = vrot.lane.b32.xlu2 %v5240_v19, %s6005_s22 }
 0xce0   : > { %2567 = vrot.lane.b32.xlu2 %v5228_v51, %s6006_s27 }
 0xce8   : > { %2726 = vrot.lane.b32.xlu2 %v5232_v52, %s6007_s28 }
 0xcf0   : > { %2559 = vrot.lane.b32.xlu2 %v5232_v52, %s6008_s30 }
 0xcf8   : > { %2561 = vrot.lane.b32.xlu2 %v5228_v51, %s6008_s30 }
 0xd17   : > { %v2282_v2 = vpop.xlane.xlu0 %2281 }
 0xd18   : > { %v2289_v0 = vsub.f32 %v2272_v12, %v2282_v2 }
 0xd1a   : > { %v2292_v20 = vmul.f32 1.442695, %v2289_v0 }
 0xd1b   : > { %v2441_v42 = vpop.xlane.xlu1 %2440 }
 0xd1c   : > { %4092 = vpow2.f32 %v2292_v20  ;;  %v2448_v35 = vsub.f32 %v2431_v47, %v2441_v42 }
 0xd1e   : > { %v2451_v37 = vmul.f32 1.442695, %v2448_v35 }
 0xd1f   : > { %v2285_v24 = vpop.xlane.xlu2 %2284 }
 0xd20   : > { %4094 = vpow2.f32 %v2451_v37  ;;  %v2290_v33 = vsub.f32 %v2275_v22, %v2285_v24 }
 0xd22   : > { %v4093_v38 = vpop.eup %4092  ;;  %v2294_v39 = vmul.f32 1.442695, %v2290_v33 }
 0xd23   : > { %v2298_v34 = vsel %vm946_vm13, %v4093_v38, 0.0  ;;  %v2444_v50 = vpop.xlane.xlu0 %2443 }
 0xd24   : > { %4096 = vpow2.f32 %v2294_v39  ;;  %2299 = vadd.xlane.f32.xlu0 %v2298_v34  ;;  %v2449_v10 = vsub.f32 %v2434_v23, %v2444_v50 }
 0xd26   : > { %v5297_v29 = vpop.eup %4094  ;;  %v2453_v15 = vmul.f32 1.442695, %v2449_v10 }
 0xd27   : > { %v2288_v45 = vpop.xlane.xlu1 %2287  ;;  %v2457_v46 = vsel %vm946_vm13, %v5297_v29, 0.0 }
 0xd28   : > { %4098 = vpow2.f32 %v2453_v15  ;;  %v2291_v49 = vsub.f32 %v2278_v28, %v2288_v45  ;;  %2458 = vadd.xlane.f32.xlu1 %v2457_v46 }
 0xd2a   : > { %v4097_v40 = vpop.eup %4096  ;;  %v2296_v48 = vmul.f32 1.442695, %v2291_v49 }
 0xd2b   : > { %v2301_v44 = vsel %vm946_vm13, %v4097_v40, 0.0  ;;  %v2447_v53 = vpop.xlane.xlu2 %2446 }
 0xd2c   : > { %2302 = vadd.xlane.f32.xlu0 %v2301_v44  ;;  %4100 = vpow2.f32 %v2296_v48  ;;  %v2450_v63 = vsub.f32 %v2437_v16, %v2447_v53  ;;  %v4008_v44 = vld [vmem:[%s5964_s7 + $0x1] ss:$0 sm:$0xff] }
 0xd2d   : > { %v2230_v53 = vadd.f32 %v4008_v44, %v5097_v21 }
 0xd2e   : > { %v5302_v54 = vpop.eup %4098  ;;  %v2455_v25 = vmul.f32 1.442695, %v2450_v63 }
 0xd2f   : > { %v2460_v41 = vsel %vm946_vm13, %v5302_v54, 0.0 }
 0xd30   : > { %2461 = vadd.xlane.f32.xlu1 %v2460_v41  ;;  %4102 = vpow2.f32 %v2455_v25 }
 0xd32   : > { %v4101_v60 = vpop.eup %4100 }
 0xd33   : > { %v3989_v59 = vpop.permute.xlu2 %3988  ;;  %v2304_v3 = vsel %vm946_vm13, %v4101_v60, 0.0 }
 0xd34   : > { %v3990_v61 = vunpack.i.l.bf16 %v3989_v59  ;;  %v3991_v62 = vunpack.i.h.bf16 %v3989_v59  ;;  %v2231_v59 = vadd.f32 %v4008_v44, %v5101_v11 }
 0xd36   : > { %2506 = vmatpush.msrb.mxu1 %v3990_v61  ;;  %v4103_v5 = vpop.eup %4102 }
 0xd37   : > { %v2463_v36 = vsel %vm946_vm13, %v4103_v5, 0.0 }
 0xd38   : > { %2305 = vadd.xlane.f32.xlu1 %v2304_v3  ;;  %2507 = vmatpush.msrb.mxu1 %v3991_v62 }
 0xd3b   : > { %v2737_v1 = vpop.permute.xlu2 %2736 }
 0xd40   : > { %2475 = vrot.lane.b32.xlu0 %v5238_v56, %s6004_s26  ;;  %2464 = vadd.xlane.f32.xlu1 %v2463_v36 }
 0xd43   : > { %v2568_v0 = vpop.permute.xlu2 %2567 }
 0xd48   : > { %2569 = vrot.lane.b32.xlu0 %v5240_v19, %s6006_s27 }
 0xd4b   : > { %v2727_v34 = vpop.permute.xlu2 %2726 }
 0xd50   : > { %2732 = vrot.lane.b32.xlu0 %v5232_v52, %s6005_s22 }
 0xd58   : > { %2565 = vrot.lane.b32.xlu0 %v5232_v52, %s6006_s27  ;;  %v3843_v52 = vld [vmem:[%s5963_s6 + $0x90] sm:$0xff] }
 0xd59   : > { %2734 = vrot.lane.b32.xlu1 %v5228_v51, %s6005_s22  ;;  %2545 = vmatpush.msra.mxu2 %v3843_v52  ;;  %s629_s22 = scalar_lea.vmem %s5977_s20, %s3728_s29 }
 0xd60   : > { %2728 = vrot.lane.b32.xlu0 %v5228_v51, %s6007_s28  ;;  %v3830_v51 = vld [vmem:[%s5963_s6 + $0x88] sm:$0xff] }
 0xd61   : > { %2730 = vrot.lane.b32.xlu1 %v5240_v19, %s6007_s28  ;;  %2374 = vmatpush.msra.mxu3 %v3830_v51 }
 0xd63   : > { %2375 = vmatpush.msra.mxu3 %v3829_v30 }
 0xd68   : > { %2563 = vrot.lane.b32.xlu0 %v5240_v19, %s6008_s30 }
 0xd97   : > { %v2300_v19 = vpop.xlane.xlu0 %2299 }
 0xd98   : > { %4104 = vrcp.f32 %v2300_v19 }
 0xd9b   : > { %v2459_v12 = vpop.xlane.xlu1 %2458 }
 0xd9e   : > { %v4105_v9 = vpop.eup %4104 }
 0xd9f   : > { %v2310_v26 = vmul.f32 %v4105_v9, %v4093_v38  ;;  %v2303_v47 = vpop.xlane.xlu0 %2302 }
 0xda0   : > { %4106 = vrcp.f32 %v2303_v47 }
 0xda1   : > { %3826 = vmatmul.msk.f32.vlgmr.msrb.gmra.mxu2 %vm946_vm13, %v2310_v26  ;;  %4108 = vrcp.f32 %v2459_v12 }
 0xda2   : > { %3862 = vmatpush.xpose.msk.msrb.mxu2 %vm907_vm11, %v2737_v1 }
 0xda3   : > { %v2462_v14 = vpop.xlane.xlu1 %2461 }
 0xda6   : > { %v4107_v22 = vpop.eup %4106 }
 0xda7   : > { %v2311_v6 = vmul.f32 %v4107_v22, %v4097_v40  ;;  %v4109_v23 = vpop.eup %4108 }
 0xda8   : > { %v2469_v27 = vmul.f32 %v4109_v23, %v5297_v29  ;;  %v2560_v29 = vpop.permute.xlu2 %2559 }
 0xda9   : > { %3827 = vmatmul.msk.f32.gmra.mxu2 %vm946_vm13, %v2311_v6 }
 0xdab   : > { %v2306_v4 = vpop.xlane.xlu1 %2305 }
 0xdac   : > { %4110 = vrcp.f32 %v2306_v4 }
 0xdad   : > { %4112 = vrcp.f32 %v2462_v14 }
 0xdb0   : > { %v2562_v46 = vpop.permute.xlu2 %2561 }
 0xdb2   : > { %v4111_v7 = vpop.eup %4110  ;;  %v2476_v28 = vpop.permute.xlu0 %2475 }
 0xdb3   : > { %2508 = vmatpush.msrb.mxu1 %v2476_v28  ;;  %v2312_v13 = vmul.f32 %v4111_v7, %v4101_v60  ;;  %v2465_v8 = vpop.xlane.xlu1 %2464  ;;  %v4113_v16 = vpop.eup %4112 }
 0xdb4   : > { %3840 = vmatmul.msk.f32.vlgmr.msrb.gmra.mxu1 %vm946_vm13, %v2469_v27  ;;  %4114 = vrcp.f32 %v2465_v8  ;;  %v2470_v2 = vmul.f32 %v4113_v16, %v5302_v54 }
 0xdb5   : > { %3828 = vmatmul.msk.f32.gmra.mxu2 %vm946_vm13, %v2312_v13 }
 0xdba   : > { %v2570_v18 = vpop.permute.xlu0 %2569  ;;  %v4115_v20 = vpop.eup %4114 }
 0xdbb   : > { %3848 = vmatpush.xpose.msk.msrb.mxu3 %vm907_vm11, %v2570_v18  ;;  %v2471_v35 = vmul.f32 %v4115_v20, %v4103_v5  ;;  %v2232_v5 = vadd.f32 %v4008_v44, %v5105_v58 }
 0xdbc   : > { %3841 = vmatmul.msk.f32.gmra.mxu1 %vm946_vm13, %v2470_v2 }
 0xdbf   : > { %3849 = vmatpush.xpose.msk.msrb.mxu3 %vm907_vm11, %v2568_v0 }
 0xdc2   : > { %v2733_v42 = vpop.permute.xlu0 %2732 }
 0xdc4   : > { %3842 = vmatmul.msk.f32.gmra.mxu1 %vm946_vm13, %v2471_v35 }
 0xdca   : > { %v2566_v37 = vpop.permute.xlu0 %2565 }
 0xdcb   : > { %3850 = vmatpush.xpose.msk.msrb.mxu3 %vm907_vm11, %v2566_v37  ;;  %v2735_v24 = vpop.permute.xlu1 %2734 }
 0xdcc   : > { %3863 = vmatpush.xpose.msk.msrb.mxu2 %vm907_vm11, %v2735_v24 }
 0xdd0   : > { %3864 = vmatpush.xpose.msk.msrb.mxu2 %vm907_vm11, %v2733_v42 }
 0xdd2   : > { %v2729_v45 = vpop.permute.xlu0 %2728 }
 0xdd3   : > { %v2731_v40 = vpop.permute.xlu1 %2730 }
 0xdda   : > { %v2564_v49 = vpop.permute.xlu0 %2563 }
 0xe24   : > { %v2339_v33 = vpop.f32.mrf.mxu2 }
 0xe25   : > { %3831 = vmatmul.msk.f32.vlgmr.msra.gmra.mxu3 %vm907_vm11, %v2339_v33 }
 0xe2c   : > { %v2342_v38 = vpop.f32.mrf.mxu2 }
 0xe2d   : > { %3832 = vmatmul.msk.f32.gmra.mxu3 %vm907_vm11, %v2342_v38 }
 0xe31   : > { %v2510_v39 = vpop.f32.mrf.mxu1 }
 0xe32   : > { %3845 = vmatmul.msk.f32.vlgmr.msra.gmra.mxu2 %vm907_vm11, %v2510_v39 }
 0xe38   : > { %v2345_v50 = vpop.f32.mrf.mxu2 }
 0xe39   : > { %v2513_v10 = vpop.f32.mrf.mxu1  ;;  %3833 = vmatmul.msk.f32.gmra.mxu3 %vm907_vm11, %v2345_v50 }
 0xe3a   : > { %3846 = vmatmul.msk.f32.gmra.mxu2 %vm907_vm11, %v2513_v10 }
 0xe41   : > { %v2516_v15 = vpop.f32.mrf.mxu1  ;;  %3851 = vmatmul.msk.f32.vlgmr.msrb.gmra.mxu3 %vm907_vm11, %v2560_v29 }
 0xe42   : > { %3847 = vmatmul.msk.f32.gmra.mxu2 %vm907_vm11, %v2516_v15 }
 0xe49   : > { %3852 = vmatmul.msk.f32.gmra.mxu3 %vm907_vm11, %v2562_v46 }
 0xe4a   : > { %3865 = vmatmul.msk.f32.vlgmr.msrb.gmra.mxu2 %vm907_vm11, %v2727_v34 }
 0xe51   : > { %3853 = vmatmul.msk.f32.gmra.mxu3 %vm907_vm11, %v2564_v49 }
 0xe52   : > { %3866 = vmatmul.msk.f32.gmra.mxu2 %vm907_vm11, %v2729_v45 }
 0xe5a   : > { %3867 = vmatmul.msk.f32.gmra.mxu2 %vm907_vm11, %v2731_v40 }
 0xea8   : > { %v2377_v48 = vpop.f32.mrf.mxu3 }
 0xea9   : > { %v2386_v54 = vadd.f32 %v2377_v48, %v2230_v53 }
 0xeb0   : > { %v2380_v63 = vpop.f32.mrf.mxu3 }
 0xeb1   : > { %v2387_v60 = vadd.f32 %v2380_v63, %v2231_v59 }
 0xeb5   : > { %v2547_v41 = vpop.f32.mrf.mxu2 }
 0xeb6   : > { %v5366_v25 = vadd.f32 %v2547_v41, %v2386_v54 }
 0xebc   : > { %v2383_v61 = vpop.f32.mrf.mxu3 }
 0xebd   : > { %v2550_v62 = vpop.f32.mrf.mxu2  ;;  %v2388_v36 = vadd.f32 %v2383_v61, %v2232_v5 }
 0xebe   : > { %v5369_v3 = vadd.f32 %v2550_v62, %v2387_v60 }
 0xec4   : > { %v2600_v17 = vpop.f32.mrf.mxu3 }
 0xec5   : > { %v2553_v52 = vpop.f32.mrf.mxu2  ;;  %v2601_v51 = vadd.f32 %v2600_v17, %v4580_v32 }
 0xec6   : > { %v5373_v21 = vadd.f32 %v2553_v52, %v2388_v36 }
 0xec7   : > { %v2609_v30 = vsel %vm946_vm13, %v2601_v51, -inf }
 0xec8   : > { %2610 = vmax.xlane.f32.xlu1 %v2609_v30 }
 0xecc   : > { %v2603_v12 = vpop.f32.mrf.mxu3 }
 0xecd   : > { %v2767_v19 = vpop.f32.mrf.mxu2  ;;  %v2604_v26 = vadd.f32 %v2603_v12, %v4580_v32 }
 0xece   : > { %v2768_v11 = vadd.f32 %v2767_v19, %v4580_v32 }
 0xecf   : > { %v2612_v14 = vsel %vm946_vm13, %v2604_v26, -inf }
 0xed0   : > { %v2776_v9 = vsel %vm946_vm13, %v2768_v11, -inf }
 0xed1   : > { %2777 = vmax.xlane.f32.xlu2 %v2776_v9 }
 0xed4   : > { %v2606_v22 = vpop.f32.mrf.mxu3 }
 0xed5   : > { %v2770_v58 = vpop.f32.mrf.mxu2  ;;  %v2607_v6 = vadd.f32 %v2606_v22, %v4580_v32 }
 0xed6   : > { %v2771_v47 = vadd.f32 %v2770_v58, %v4580_v32 }
 0xed7   : > { %v2615_v27 = vsel %vm946_vm13, %v2607_v6, -inf }
 0xed8   : > { %v2779_v1 = vsel %vm946_vm13, %v2771_v47, -inf }
 0xed9   : > { %2780 = vmax.xlane.f32.xlu0 %v2779_v1  ;;  %2613 = vmax.xlane.f32.xlu2 %v2612_v14 }
 0xedd   : > { %v2773_v4 = vpop.f32.mrf.mxu2 }
 0xede   : > { %v2774_v23 = vadd.f32 %v2773_v4, %v4580_v32  ;;  %v3858_v4 = vld [vmem:[%s5963_s6 + $0xa8] sm:$0xff] }
 0xedf   : > { %2711 = vmatpush.msra.mxu1 %v3858_v4  ;;  %v3884_v4 = vld [vmem:[%s5965_s8 + $0x140] sm:$0xff] }
 0xee0   : > { %v2782_v7 = vsel %vm946_vm13, %v2774_v23, -inf }
 0xee1   : > { %2783 = vmax.xlane.f32.xlu1 %v2782_v7  ;;  %2616 = vmax.xlane.f32.xlu2 %v2615_v27 }
 0xeed   : > { %2809 = vrot.lane.b32.xlu0 %v5238_v56, %s6007_s28 }
 0xef9   : > { %3993 = vrot.lane.b32.xlu2 %v5236_v55, %s6007_s28 }
 0xefa   : > { %3998 = vrot.lane.b32.xlu1 %v5236_v55, %s6008_s30 }
 0xf3b   : > { %v2611_v28 = vpop.xlane.xlu1 %2610 }
 0xf3c   : > { %v2618_v13 = vsub.f32 %v2601_v51, %v2611_v28  ;;  %v3871_v28 = vld [vmem:[%s5963_s6 + $0xb0] sm:$0xff] }
 0xf3e   : > { %v2621_v8 = vmul.f32 1.442695, %v2618_v13  ;;  %v3857_v13 = vld [vmem:[%s5963_s6 + $0xa0] sm:$0xff] }
 0xf3f   : > { %2712 = vmatpush.msra.mxu1 %v3857_v13  ;;  %v3881_v13 = vld [vmem:[%s5965_s8 + $0x128] sm:$0xff] }
 0xf40   : > { %4116 = vpow2.f32 %v2621_v8 }
 0xf44   : > { %v2778_v32 = vpop.xlane.xlu2 %2777 }
 0xf45   : > { %v2785_v16 = vsub.f32 %v2768_v11, %v2778_v32 }
 0xf46   : > { %v4117_v18 = vpop.eup %4116 }
 0xf47   : > { %v2788_v2 = vmul.f32 1.442695, %v2785_v16  ;;  %v2627_v0 = vsel %vm946_vm13, %v4117_v18, 0.0 }
 0xf48   : > { %2628 = vadd.xlane.f32.xlu1 %v2627_v0 }
 0xf49   : > { %4118 = vpow2.f32 %v2788_v2 }
 0xf4c   : > { %v2781_v20 = vpop.xlane.xlu0 %2780  ;;  %v2614_v42 = vpop.xlane.xlu2 %2613 }
 0xf4d   : > { %v2786_v35 = vsub.f32 %v2771_v47, %v2781_v20  ;;  %v2619_v37 = vsub.f32 %v2604_v26, %v2614_v42 }
 0xf4f   : > { %v4119_v24 = vpop.eup %4118  ;;  %v2790_v33 = vmul.f32 1.442695, %v2786_v35  ;;  %v2623_v38 = vmul.f32 1.442695, %v2619_v37 }
 0xf50   : > { %v2794_v55 = vsel %vm946_vm13, %v4119_v24, 0.0 }
 0xf51   : > { %4120 = vpow2.f32 %v2790_v33  ;;  %2795 = vadd.xlane.f32.xlu0 %v2794_v55 }
 0xf52   : > { %4122 = vpow2.f32 %v2623_v38 }
 0xf54   : > { %v2784_v39 = vpop.xlane.xlu1 %2783  ;;  %v2617_v34 = vpop.xlane.xlu2 %2616 }
 0xf55   : > { %v2787_v50 = vsub.f32 %v2774_v23, %v2784_v39  ;;  %v2620_v60 = vsub.f32 %v2607_v6, %v2617_v34  ;;  %v3872_v6 = vld [vmem:[%s5963_s6 + $0xb8] sm:$0xff] }
 0xf57   : > { %v4121_v10 = vpop.eup %4120  ;;  %v2792_v29 = vmul.f32 1.442695, %v2787_v50  ;;  %v2625_v61 = vmul.f32 1.442695, %v2620_v60  ;;  %v3900_v60 = vld [vmem:[%s5965_s8 + $0x1c0] sm:$0xff] }
 0xf58   : > { %v4123_v15 = vpop.eup %4122  ;;  %v2797_v45 = vsel %vm946_vm13, %v4121_v10, 0.0 }
 0xf59   : > { %4124 = vpow2.f32 %v2792_v29  ;;  %2798 = vadd.xlane.f32.xlu0 %v2797_v45  ;;  %v2630_v46 = vsel %vm946_vm13, %v4123_v15, 0.0 }
 0xf5a   : > { %2631 = vadd.xlane.f32.xlu2 %v2630_v46  ;;  %4126 = vpow2.f32 %v2625_v61  ;;  %v3901_v61 = vld [vmem:[%s5965_s8 + $0x1c8] sm:$0xff] }
 0xf5c   : > { %v3994_v49 = vpop.permute.xlu2 %3993 }
 0xf5d   : > { %v3995_v40 = vunpack.i.l.bf16 %v3994_v49  ;;  %v3996_v44 = vunpack.i.h.bf16 %v3994_v49 }
 0xf5f   : > { %v4125_v48 = vpop.eup %4124  ;;  %2840 = vmatpush.msra.mxu3 %v3995_v40  ;;  %v2810_v54 = vpop.permute.xlu0 %2809 }
 0xf60   : > { %v2800_v53 = vsel %vm946_vm13, %v4125_v48, 0.0  ;;  %v4127_v62 = vpop.eup %4126 }
 0xf61   : > { %2801 = vadd.xlane.f32.xlu0 %v2800_v53  ;;  %2841 = vmatpush.msra.mxu3 %v3996_v44  ;;  %v2633_v5 = vsel %vm946_vm13, %v4127_v62, 0.0  ;;  %v3906_v44 = vld [vmem:[%s5965_s8 + $0x1f0] sm:$0xff]  ;;  %v3907_v53 = vld [vmem:[%s5965_s8 + $0x1f8] sm:$0xff] }
 0xf62   : > { %2642 = vrot.lane.b32.xlu1 %v5238_v56, %s6008_s30  ;;  %2996 = vmatpush.msrb.mxu1 %v3906_v44 }
 0xf63   : > { %2842 = vmatpush.msra.mxu3 %v2810_v54  ;;  %v3904_v54 = vld [vmem:[%s5965_s8 + $0x1e0] sm:$0xff]  ;;  %3022 = vmatpush.msra.mxu2 %v3907_v53 }
 0xf64   : > { %2997 = vmatpush.msrb.mxu1 %v3904_v54 }
 0xf6c   : > { %v3999_v63 = vpop.permute.xlu1 %3998 }
 0xf6d   : > { %v4000_v41 = vunpack.i.l.bf16 %v3999_v63  ;;  %v4001_v59 = vunpack.i.h.bf16 %v3999_v63  ;;  %v3905_v63 = vld [vmem:[%s5965_s8 + $0x1e8] sm:$0xff] }
 0xf6e   : > { %3023 = vmatpush.msra.mxu2 %v3905_v63 }
 0xf6f   : > { %2673 = vmatpush.msrb.mxu0 %v4000_v41  ;;  %v3902_v41 = vld [vmem:[%s5965_s8 + $0x1d0] sm:$0xff] }
 0xf70   : > { %2998 = vmatpush.msrb.mxu1 %v3902_v41 }
 0xf71   : > { %2674 = vmatpush.msrb.mxu0 %v4001_v59  ;;  %v3903_v59 = vld [vmem:[%s5965_s8 + $0x1d8] sm:$0xff] }
 0xf72   : > { %3024 = vmatpush.msra.mxu2 %v3903_v59  ;;  %2999 = vmatpush.msrb.mxu1 %v3900_v60 }
 0xf74   : > { %3025 = vmatpush.msra.mxu2 %v3901_v61 }
 0xf8c   : > { %2634 = vadd.xlane.f32.xlu1 %v2633_v5 }
 0xfbb   : > { %v2629_v17 = vpop.xlane.xlu1 %2628 }
 0xfc4   : > { %v2796_v36 = vpop.xlane.xlu0 %2795 }
 0xfc5   : > { %4128 = vrcp.f32 %v2796_v36 }
 0xfc6   : > { %4130 = vrcp.f32 %v2629_v17 }
 0xfcb   : > { %v4129_v52 = vpop.eup %4128 }
 0xfcc   : > { %v2806_v51 = vmul.f32 %v4129_v52, %v4119_v24  ;;  %v2799_v56 = vpop.xlane.xlu0 %2798  ;;  %v4131_v19 = vpop.eup %4130 }
 0xfcd   : > { %4132 = vrcp.f32 %v2799_v56  ;;  %v2632_v30 = vpop.xlane.xlu2 %2631  ;;  %v2639_v12 = vmul.f32 %v4131_v19, %v4117_v18  ;;  %v3899_v56 = vld [vmem:[%s5965_s8 + $0x1b8] sm:$0xff]  ;;  %v3897_v19 = vld [vmem:[%s5965_s8 + $0x1a8] sm:$0xff] }
 0xfce   : > { %3868 = vmatmul.msk.f32.vlgmr.msra.gmra.mxu3 %vm946_vm13, %v2806_v51  ;;  %4134 = vrcp.f32 %v2632_v30  ;;  %v3898_v51 = vld [vmem:[%s5965_s8 + $0x1b0] sm:$0xff]  ;;  %3026 = vmatpush.msra.mxu2 %v3899_v56  ;;  %v3896_v30 = vld [vmem:[%s5965_s8 + $0x1a0] sm:$0xff] }
 0xfcf   : > { %3000 = vmatpush.msrb.mxu1 %v3898_v51 }
 0xfd0   : > { %3027 = vmatpush.msra.mxu2 %v3897_v19 }
 0xfd1   : > { %3001 = vmatpush.msrb.mxu1 %v3896_v30  ;;  %v3930_v30 = vld [vmem:[%s5967_s10 + $0x178] sm:$0xff] }
 0xfd2   : > { %3345 = vmatpush.msrb.mxu3 %v3930_v30  ;;  %v3920_v30 = vld [vmem:[%s5967_s10 + $0x128] sm:$0xff] }
 0xfd3   : > { %v4133_v11 = vpop.eup %4132 }
 0xfd4   : > { %v2643_v9 = vpop.permute.xlu1 %2642  ;;  %v2802_v26 = vpop.xlane.xlu0 %2801  ;;  %v2807_v58 = vmul.f32 %v4133_v11, %v4121_v10  ;;  %v3894_v11 = vld [vmem:[%s5965_s8 + $0x190] sm:$0xff] }
 0xfd5   : > { %4136 = vrcp.f32 %v2802_v26  ;;  %2675 = vmatpush.msrb.mxu0 %v2643_v9  ;;  %v4135_v47 = vpop.eup %4134  ;;  %3002 = vmatpush.msrb.mxu1 %v3894_v11  ;;  %v3892_v9 = vld [vmem:[%s5965_s8 + $0x180] sm:$0xff]  ;;  %v3893_v26 = vld [vmem:[%s5965_s8 + $0x188] sm:$0xff] }
 0xfd6   : > { %3854 = vmatmul.msk.f32.vlgmr.msrb.gmra.mxu0 %vm946_vm13, %v2639_v12  ;;  %3869 = vmatmul.msk.f32.gmra.mxu3 %vm946_vm13, %v2807_v58  ;;  %v2640_v14 = vmul.f32 %v4135_v47, %v4123_v15  ;;  %v3895_v12 = vld [vmem:[%s5965_s8 + $0x198] sm:$0xff]  ;;  %v3890_v58 = vld [vmem:[%s5965_s8 + $0x170] sm:$0xff] }
 0xfd7   : > { %2878 = vmatpush.msra.mxu0 %v3872_v6  ;;  %3028 = vmatpush.msra.mxu2 %v3895_v12  ;;  %v3891_v47 = vld [vmem:[%s5965_s8 + $0x178] sm:$0xff] }
 0xfd8   : > { %3003 = vmatpush.msrb.mxu1 %v3892_v9  ;;  %v3887_v6 = vld [vmem:[%s5965_s8 + $0x158] sm:$0xff] }
 0xfd9   : > { %2879 = vmatpush.msra.mxu0 %v3871_v28  ;;  %3029 = vmatpush.msra.mxu2 %v3893_v26  ;;  %v3880_v28 = vld [vmem:[%s5965_s8 + $0x120] sm:$0xff]  ;;  %v3928_v26 = vld [vmem:[%s5967_s10 + $0x168] sm:$0xff] }
 0xfda   : > { %3004 = vmatpush.msrb.mxu1 %v3890_v58 }
 0xfdb   : > { %v4137_v1 = vpop.eup %4136  ;;  %3030 = vmatpush.msra.mxu2 %v3891_v47  ;;  %v3927_v47 = vld [vmem:[%s5967_s10 + $0x160] sm:$0xff] }
 0xfdc   : > { %v2808_v22 = vmul.f32 %v4137_v1, %v4125_v48  ;;  %v3888_v1 = vld [vmem:[%s5965_s8 + $0x160] sm:$0xff] }
 0xfdd   : > { %3005 = vmatpush.msrb.mxu1 %v3888_v1  ;;  %v3946_v1 = vld [vmem:[%s5967_s10 + $0x1f8] sm:$0xff] }
 0xfde   : > { %3855 = vmatmul.msk.f32.gmra.mxu0 %vm946_vm13, %v2640_v14  ;;  %3870 = vmatmul.msk.f32.gmra.mxu3 %vm946_vm13, %v2808_v22  ;;  %v3889_v14 = vld [vmem:[%s5965_s8 + $0x168] sm:$0xff]  ;;  %v3886_v22 = vld [vmem:[%s5965_s8 + $0x150] sm:$0xff] }
 0xfdf   : > { %3031 = vmatpush.msra.mxu2 %v3889_v14  ;;  %3006 = vmatpush.msrb.mxu1 %v3886_v22 }
 0xfe0   : > { %3371 = vmatpush.msrb.mxu0 %v3946_v1  ;;  %v3938_v1 = vld [vmem:[%s5967_s10 + $0x1b8] sm:$0xff] }
 0xfe1   : > { %3032 = vmatpush.msra.mxu2 %v3887_v6  ;;  %3007 = vmatpush.msrb.mxu1 %v3884_v4  ;;  %v3926_v4 = vld [vmem:[%s5967_s10 + $0x158] sm:$0xff] }
 0xfff   : > { %v2635_v23 = vpop.xlane.xlu1 %2634 }
0x1000   : > { %4138 = vrcp.f32 %v2635_v23  ;;  %v3885_v23 = vld [vmem:[%s5965_s8 + $0x148] sm:$0xff] }
0x1001   : > { %3033 = vmatpush.msra.mxu2 %v3885_v23  ;;  %v3945_v23 = vld [vmem:[%s5967_s10 + $0x1f0] sm:$0xff] }
0x1002   : > { %3372 = vmatpush.msrb.mxu0 %v3945_v23 }
0x1006   : > { %v4139_v7 = vpop.eup %4138 }
0x1007   : > { %v2641_v27 = vmul.f32 %v4139_v7, %v4127_v62  ;;  %v3882_v7 = vld [vmem:[%s5965_s8 + $0x130] sm:$0xff] }
0x1008   : > { %3008 = vmatpush.msrb.mxu1 %v3882_v7 }
0x1009   : > { %3856 = vmatmul.msk.f32.gmra.mxu0 %vm946_vm13, %v2641_v27  ;;  %v3883_v27 = vld [vmem:[%s5965_s8 + $0x138] sm:$0xff] }
0x100a   : > { %3034 = vmatpush.msra.mxu2 %v3883_v27  ;;  %3009 = vmatpush.msrb.mxu1 %v3880_v28 }
0x100c   : > { %3035 = vmatpush.msra.mxu2 %v3881_v13 }
0x1051   : > { %v2844_v8 = vpop.f32.mrf.mxu3 }
0x1052   : > { %3873 = vmatmul.msk.f32.vlgmr.msra.gmra.mxu0 %vm907_vm11, %v2844_v8  ;;  %v3878_v8 = vld [vmem:[%s5965_s8 + $0x110] sm:$0xff] }
0x1053   : > { %v2677_v32 = vpop.f32.mrf.mxu0  ;;  %3010 = vmatpush.msrb.mxu1 %v3878_v8  ;;  %v3925_v8 = vld [vmem:[%s5967_s10 + $0x150] sm:$0xff] }
0x1054   : > { %3859 = vmatmul.msk.f32.vlgmr.msra.gmra.mxu1 %vm907_vm11, %v2677_v32  ;;  %v3879_v32 = vld [vmem:[%s5965_s8 + $0x118] sm:$0xff] }
0x1055   : > { %3036 = vmatpush.msra.mxu2 %v3879_v32 }
0x1059   : > { %v2847_v16 = vpop.f32.mrf.mxu3 }
0x105a   : > { %3874 = vmatmul.msk.f32.gmra.mxu0 %vm907_vm11, %v2847_v16  ;;  %v3876_v16 = vld [vmem:[%s5965_s8 + $0x100] sm:$0xff] }
0x105b   : > { %v2680_v18 = vpop.f32.mrf.mxu0  ;;  %3011 = vmatpush.msrb.mxu1 %v3876_v16  ;;  %v3944_v16 = vld [vmem:[%s5967_s10 + $0x1e8] sm:$0xff] }
0x105c   : > { %3860 = vmatmul.msk.f32.gmra.mxu1 %vm907_vm11, %v2680_v18  ;;  %v3877_v18 = vld [vmem:[%s5965_s8 + $0x108] sm:$0xff]  ;;  %3373 = vmatpush.msrb.mxu0 %v3944_v16 }
0x105d   : > { %3037 = vmatpush.msra.mxu2 %v3877_v18 }
0x1061   : > { %v2850_v2 = vpop.f32.mrf.mxu3 }
0x1062   : > { %3875 = vmatmul.msk.f32.gmra.mxu0 %vm907_vm11, %v2850_v2 }
0x1086   : > { %v2683_v0 = vpop.f32.mrf.mxu0 }
0x1087   : > { %3861 = vmatmul.msk.f32.gmra.mxu1 %vm907_vm11, %v2683_v0 }
0x10cf   : > { %v2881_v20 = vpop.f32.mrf.mxu0 }
0x10d1   : > { %v2714_v42 = vpop.f32.mrf.mxu1 }
0x10d2   : > { %v2723_v35 = vadd.f32 %v2714_v42, %v5366_v25 }
0x10d4   : > { %v5425_v37 = vadd.f32 %v2881_v20, %v2723_v35 }
0x10d6   : > { %2893 = vadd.xlane.f32.xlu2 %v5425_v37 }
0x10d7   : > { %v2884_v38 = vpop.f32.mrf.mxu0 }
0x10d9   : > { %v2717_v24 = vpop.f32.mrf.mxu1 }
0x10da   : > { %v2724_v33 = vadd.f32 %v2717_v24, %v5369_v3 }
0x10dc   : > { %v5429_v55 = vadd.f32 %v2884_v38, %v2724_v33 }
0x10de   : > { %2895 = vadd.xlane.f32.xlu0 %v5429_v55 }
0x10df   : > { %v2887_v50 = vpop.f32.mrf.mxu0 }
0x1104   : > { %v2720_v39 = vpop.f32.mrf.mxu1 }
0x1105   : > { %v2725_v34 = vadd.f32 %v2720_v39, %v5373_v21 }
0x1107   : > { %v5433_v10 = vadd.f32 %v2887_v50, %v2725_v34 }
0x1109   : > { %2897 = vadd.xlane.f32.xlu2 %v5433_v10 }
0x1149   : > { %v2894_v25 = vpop.xlane.xlu2 %2893 }
0x114a   : > { %v2899_v29 = vmul.f32 0.015625, %v2894_v25 }
0x114c   : > { %v5437_v15 = vsub.f32 %v5425_v37, %v2899_v29 }
0x114e   : > { %v2905_v3 = vmul.f32 %v5437_v15, %v5437_v15 }
0x1150   : > { %v2908_v45 = vmul.f32 %v4438_v57, %v2905_v3 }
0x1151   : > { %v2896_v46 = vpop.xlane.xlu0 %2895 }
0x1152   : > { %v2900_v49 = vmul.f32 0.015625, %v2896_v46  ;;  %2911 = vadd.xlane.f32.xlu1 %v2908_v45 }
0x1154   : > { %v5443_v21 = vsub.f32 %v5429_v55, %v2900_v49 }
0x1156   : > { %v2906_v40 = vmul.f32 %v5443_v21, %v5443_v21 }
0x1158   : > { %v2909_v48 = vmul.f32 %v4438_v57, %v2906_v40 }
0x115a   : > { %2913 = vadd.xlane.f32.xlu0 %v2909_v48 }
0x117c   : > { %v2898_v62 = vpop.xlane.xlu2 %2897 }
0x117d   : > { %v2901_v5 = vmul.f32 0.015625, %v2898_v62 }
0x117f   : > { %v5473_v36 = vsub.f32 %v5433_v10, %v2901_v5 }
0x1181   : > { %v2907_v17 = vmul.f32 %v5473_v36, %v5473_v36 }
0x1183   : > { %v2910_v52 = vmul.f32 %v4438_v57, %v2907_v17 }
0x1185   : > { %2915 = vadd.xlane.f32.xlu2 %v2910_v52 }
0x11c5   : > { %v2912_v2 = vpop.xlane.xlu1 %2911 }
0x11c6   : > { %v2917_v0 = vmul.f32 0.015625, %v2912_v2 }
0x11c8   : > { %v2920_v20 = vadd.f32 1e-06, %v2917_v0  ;;  %v3924_v0 = vld [vmem:[%s5967_s10 + $0x148] sm:$0xff] }
0x11ca   : > { %4140 = vrsqrt.f32 %v2920_v20  ;;  %vm2929_vm13 = vweird.f32 %v2920_v20 }
0x11cd   : > { %v2914_v42 = vpop.xlane.xlu0 %2913 }
0x11ce   : > { %v2918_v35 = vmul.f32 0.015625, %v2914_v42 }
0x11d0   : > { %v4141_v24 = vpop.eup %4140  ;;  %v2921_v33 = vadd.f32 1e-06, %v2918_v35  ;;  %v3943_v35 = vld [vmem:[%s5967_s10 + $0x1e0] sm:$0xff] }
0x11d1   : > { %v2924_v38 = vmul.f32 %v4141_v24, %v2920_v20  ;;  %vm2930_vm11 = vweird.f32 %v4141_v24  ;;  %3374 = vmatpush.msrb.mxu0 %v3943_v35 }
0x11d2   : > { %4142 = vrsqrt.f32 %v2921_v33  ;;  %vm2931_vm14 = vmor %vm2929_vm13, %vm2930_vm11  ;;  %vm2939_vm0 = vweird.f32 %v2921_v33 }
0x11d3   : > { %v2925_v39 = vmul.f32 %v4141_v24, %v2924_v38  ;;  %v3923_v38 = vld [vmem:[%s5967_s10 + $0x140] sm:$0xff] }
0x11d5   : > { %v2926_v34 = vmul.f32 0.5, %v2925_v39  ;;  %v3942_v39 = vld [vmem:[%s5967_s10 + $0x1d8] sm:$0xff] }
0x11d6   : > { %3375 = vmatpush.msrb.mxu0 %v3942_v39 }
0x11d7   : > { %v2927_v50 = vsub.f32 1.5, %v2926_v34 }
0x11d8   : > { %v4143_v25 = vpop.eup %4142 }
0x11d9   : > { %v2928_v29 = vmul.f32 %v4141_v24, %v2927_v50  ;;  %v2934_v3 = vmul.f32 %v4143_v25, %v2921_v33  ;;  %vm2940_vm15 = vweird.f32 %v4143_v25 }
0x11da   : > { %vm2941_vm1 = vmor %vm2939_vm0, %vm2940_vm15 }
0x11db   : > { %v2932_v45 = vsel %vm2931_vm14, %v4141_v24, %v2928_v29  ;;  %v2935_v46 = vmul.f32 %v4143_v25, %v2934_v3 }
0x11dc   : > { %v2953_v49 = vmul.f32 %v2932_v45, %v5437_v15 }
0x11dd   : > { %v2936_v40 = vmul.f32 0.5, %v2935_v46  ;;  %v3922_v46 = vld [vmem:[%s5967_s10 + $0x138] sm:$0xff] }
0x11de   : > { %3012 = vmatmul.f32.vlgmr.msrb.gmra.mxu1 %v2953_v49  ;;  %3038 = vmatmul.f32.vlgmr.msra.gmra.mxu2 %v2953_v49  ;;  %v3941_v49 = vld [vmem:[%s5967_s10 + $0x1d0] sm:$0xff] }
0x11df   : > { %v2937_v48 = vsub.f32 1.5, %v2936_v40  ;;  %3376 = vmatpush.msrb.mxu0 %v3941_v49 }
0x11e1   : > { %v2938_v44 = vmul.f32 %v4143_v25, %v2937_v48 }
0x11e3   : > { %v2942_v53 = vsel %vm2941_vm1, %v4143_v25, %v2938_v44 }
0x11e4   : > { %v2954_v54 = vmul.f32 %v2942_v53, %v5443_v21  ;;  %v3908_v21 = vld [vmem:[%s5966_s9 + $0x2] sm:$0x3] }
0x11e5   : > { %v5556_v56 = vperm.slane %v3908_v21, 0  ;;  %v5570_v9 = vperm.slane %v3908_v21, 1 }
0x11e6   : > { %3015 = vmatmul.f32.gmra.mxu1 %v2954_v54  ;;  %3041 = vmatmul.f32.gmra.mxu2 %v2954_v54 }
0x11f8   : > { %v2916_v63 = vpop.xlane.xlu2 %2915 }
0x11f9   : > { %v2919_v41 = vmul.f32 0.015625, %v2916_v63  ;;  %v3921_v63 = vld [vmem:[%s5967_s10 + $0x130] sm:$0xff] }
0x11fb   : > { %v2922_v59 = vadd.f32 1e-06, %v2919_v41  ;;  %v3940_v41 = vld [vmem:[%s5967_s10 + $0x1c8] sm:$0xff] }
0x11fc   : > { %3377 = vmatpush.msrb.mxu0 %v3940_v41 }
0x11fd   : > { %4144 = vrsqrt.f32 %v2922_v59  ;;  %vm2949_vm3 = vweird.f32 %v2922_v59 }
0x1203   : > { %v4145_v60 = vpop.eup %4144 }
0x1204   : > { %v2944_v61 = vmul.f32 %v4145_v60, %v2922_v59  ;;  %vm2950_vm2 = vweird.f32 %v4145_v60 }
0x1205   : > { %vm2951_vm4 = vmor %vm2949_vm3, %vm2950_vm2 }
0x1206   : > { %v2945_v15 = vmul.f32 %v4145_v60, %v2944_v61 }
0x1208   : > { %v2946_v62 = vmul.f32 0.5, %v2945_v15 }
0x120a   : > { %v2947_v5 = vsub.f32 1.5, %v2946_v62 }
0x120c   : > { %v2948_v17 = vmul.f32 %v4145_v60, %v2947_v5 }
0x120e   : > { %v2952_v52 = vsel %vm2951_vm4, %v4145_v60, %v2948_v17 }
0x120f   : > { %v2955_v51 = vmul.f32 %v2952_v52, %v5473_v36  ;;  %v3929_v36 = vld [vmem:[%s5967_s10 + $0x170] sm:$0xff] }
0x1210   : > { %3346 = vmatpush.msrb.mxu3 %v3929_v36 }
0x1211   : > { %3018 = vmatmul.f32.gmra.mxu1 %v2955_v51  ;;  %3044 = vmatmul.f32.gmra.mxu2 %v2955_v51 }
0x1212   : > { %3347 = vmatpush.msrb.mxu3 %v3928_v26 }
0x1214   : > { %3348 = vmatpush.msrb.mxu3 %v3927_v47  ;;  %v3919_v47 = vld [vmem:[%s5967_s10 + $0x120] sm:$0xff] }
0x1216   : > { %3349 = vmatpush.msrb.mxu3 %v3926_v4 }
0x1218   : > { %3350 = vmatpush.msrb.mxu3 %v3925_v8 }
0x121a   : > { %3351 = vmatpush.msrb.mxu3 %v3924_v0  ;;  %v3937_v0 = vld [vmem:[%s5967_s10 + $0x1b0] sm:$0xff] }
0x121c   : > { %3352 = vmatpush.msrb.mxu3 %v3923_v38  ;;  %v3936_v38 = vld [vmem:[%s5967_s10 + $0x1a8] sm:$0xff] }
0x121e   : > { %3353 = vmatpush.msrb.mxu3 %v3922_v46 }
0x1220   : > { %3354 = vmatpush.msrb.mxu3 %v3921_v63 }
0x1222   : > { %3355 = vmatpush.msrb.mxu3 %v3920_v30 }
0x1224   : > { %3356 = vmatpush.msrb.mxu3 %v3919_v47 }
0x125b   : > { %v3013_v19 = vpop.f32.mrf.mxu1 }
0x125c   : > { %v5562_v11 = vadd.f32 %v3013_v19, %v5556_v56  ;;  %v3939_v19 = vld [vmem:[%s5967_s10 + $0x1c0] sm:$0xff] }
0x125d   : > { %3378 = vmatpush.msrb.mxu0 %v3939_v19 }
0x125e   : > { %v5568_v12 = vmul.f32 0.70710677, %v5562_v11 }
0x125f   : > { %3379 = vmatpush.msrb.mxu0 %v3938_v1 }
0x1260   : > { %v3060_v58 = vmul.f32 %v5568_v12, %v5568_v12 }
0x1261   : > { %v3039_v14 = vpop.f32.mrf.mxu2  ;;  %3380 = vmatpush.msrb.mxu0 %v3937_v0 }
0x1262   : > { %v5583_v22 = vmin.f32 %v3060_v58, 16.0  ;;  %v5586_v6 = vadd.f32 %v3039_v14, %v5570_v9 }
0x1263   : > { %v3016_v7 = vpop.f32.mrf.mxu1  ;;  %3381 = vmatpush.msrb.mxu0 %v3936_v38 }
0x1264   : > { %v3062_v27 = vmul.f32 2.1237322e-06, %v5583_v22  ;;  %v3073_v28 = vmul.f32 3.8918573e-05, %v5583_v22  ;;  %v5597_v13 = vadd.f32 %v3016_v7, %v5556_v56  ;;  %v5603_v32 = vmul.f32 0.70710677, %v5586_v6 }
0x1266   : > { %v3063_v18 = vadd.f32 0.00028619796, %v3062_v27  ;;  %v3074_v2 = vadd.f32 0.001143296, %v3073_v28  ;;  %v3100_v20 = vmul.f32 %v5603_v32, %v5603_v32  ;;  %v5614_v42 = vmul.f32 0.70710677, %v5597_v13 }
0x1268   : > { %v3064_v24 = vmul.f32 %v3063_v18, %v5583_v22  ;;  %v3075_v33 = vmul.f32 %v3074_v2, %v5583_v22  ;;  %v5627_v34 = vmin.f32 %v3100_v20, 16.0  ;;  %v3140_v50 = vmul.f32 %v5614_v42, %v5614_v42  ;;  %v3918_v2 = vld [vmem:[%s5967_s10 + $0x118] sm:$0xff] }
0x1269   : > { %v3042_v25 = vpop.f32.mrf.mxu2  ;;  %3357 = vmatpush.msrb.mxu3 %v3918_v2 }
0x126a   : > { %v3065_v29 = vadd.f32 0.0036580483, %v3064_v24  ;;  %v3076_v3 = vadd.f32 0.014752088, %v3075_v33  ;;  %v5632_v45 = vadd.f32 %v3042_v25, %v5570_v9  ;;  %v3102_v40 = vmul.f32 2.1237322e-06, %v5627_v34 }
0x126b   : > { %v3113_v48 = vmul.f32 3.8918573e-05, %v5627_v34  ;;  %v5642_v44 = vmin.f32 %v3140_v50, 16.0  ;;  %v3917_v33 = vld [vmem:[%s5967_s10 + $0x110] sm:$0xff] }
0x126c   : > { %v3077_v53 = vmul.f32 %v3076_v3, %v5583_v22  ;;  %v5646_v54 = vmul.f32 0.70710677, %v5632_v45  ;;  %v3066_v59 = vmul.f32 %v3065_v29, %v5583_v22  ;;  %v3103_v60 = vadd.f32 0.00028619796, %v3102_v40  ;;  %3358 = vmatpush.msrb.mxu3 %v3917_v33  ;;  %v3916_v40 = vld [vmem:[%s5967_s10 + $0x108] sm:$0xff] }
0x126d   : > { %v3114_v61 = vadd.f32 0.001143296, %v3113_v48  ;;  %v3142_v15 = vmul.f32 2.1237322e-06, %v5642_v44  ;;  %v3153_v5 = vmul.f32 3.8918573e-05, %v5642_v44 }
0x126e   : > { %v3078_v62 = vadd.f32 0.112945676, %v3077_v53  ;;  %v3180_v17 = vmul.f32 %v5646_v54, %v5646_v54  ;;  %v3104_v52 = vmul.f32 %v3103_v60, %v5627_v34  ;;  %v3067_v14 = vadd.f32 0.05243302, %v3066_v59  ;;  %v3935_v48 = vld [vmem:[%s5967_s10 + $0x1a0] sm:$0xff]  ;;  %3359 = vmatpush.msrb.mxu3 %v3916_v40  ;;  %v3934_v60 = vld [vmem:[%s5967_s10 + $0x198] sm:$0xff] }
0x126f   : > { %v3115_v51 = vmul.f32 %v3114_v61, %v5627_v34  ;;  %v3143_v21 = vadd.f32 0.00028619796, %v3142_v15  ;;  %v3154_v26 = vadd.f32 0.001143296, %v3153_v5  ;;  %3382 = vmatpush.msrb.mxu0 %v3935_v48  ;;  %v3915_v59 = vld [vmem:[%s5967_s10 + $0x100] sm:$0xff] }
0x1270   : > { %v3079_v36 = vmul.f32 %v3078_v62, %v5583_v22  ;;  %v5668_v58 = vmin.f32 %v3180_v17, 16.0  ;;  %v3105_v4 = vadd.f32 0.0036580483, %v3104_v52  ;;  %v3068_v29 = vmul.f32 %v3067_v14, %v5583_v22  ;;  %3360 = vmatpush.msrb.mxu3 %v3915_v59  ;;  %v3933_v52 = vld [vmem:[%s5967_s10 + $0x190] sm:$0xff] }
0x1271   : > { %v3116_v23 = vadd.f32 0.014752088, %v3115_v51  ;;  %v3144_v27 = vmul.f32 %v3143_v21, %v5642_v44  ;;  %v3155_v28 = vmul.f32 %v3154_v26, %v5642_v44  ;;  %3383 = vmatpush.msrb.mxu0 %v3934_v60 }
0x1272   : > { %v3080_v7 = vadd.f32 0.4994258, %v3079_v36  ;;  %v3182_v8 = vmul.f32 2.1237322e-06, %v5668_v58  ;;  %v3193_v18 = vmul.f32 3.8918573e-05, %v5668_v58  ;;  %v3106_v35 = vmul.f32 %v3105_v4, %v5627_v34 }
0x1273   : > { %v3117_v16 = vmul.f32 %v3116_v23, %v5627_v34  ;;  %v3156_v24 = vadd.f32 0.014752088, %v3155_v28  ;;  %v3145_v46 = vadd.f32 0.0036580483, %v3144_v27  ;;  %v3069_v62 = vadd.f32 0.18741608, %v3068_v29  ;;  %3384 = vmatpush.msrb.mxu0 %v3933_v52 }
0x1274   : > { %v3081_v20 = vmul.f32 %v3080_v7, %v5583_v22  ;;  %v3183_v50 = vadd.f32 0.00028619796, %v3182_v8  ;;  %v3194_v25 = vadd.f32 0.001143296, %v3193_v18  ;;  %v3107_v63 = vadd.f32 0.05243302, %v3106_v35 }
0x1275   : > { %v3118_v39 = vadd.f32 0.112945676, %v3117_v16  ;;  %v3157_v49 = vmul.f32 %v3156_v24, %v5642_v44  ;;  %v3146_v5 = vmul.f32 %v3145_v46, %v5642_v44  ;;  %v3932_v36 = vld [vmem:[%s5967_s10 + $0x188] sm:$0xff]  ;;  %v3070_v14 = vmul.f32 %v3069_v62, %v5583_v22  ;;  %v3931_v27 = vld [vmem:[%s5967_s10 + $0x180] sm:$0xff] }
0x1276   : > { %v5696_v3 = vadd.f32 1.0, %v3081_v20  ;;  %v3195_v41 = vmul.f32 %v3194_v25, %v5668_v58  ;;  %v3184_v15 = vmul.f32 %v3183_v50, %v5668_v58  ;;  %v3108_v21 = vmul.f32 %v3107_v63, %v5627_v34  ;;  %3385 = vmatpush.msrb.mxu0 %v3932_v36 }
0x1277   : > { %v3119_v53 = vmul.f32 %v3118_v39, %v5627_v34  ;;  %v3158_v17 = vadd.f32 0.112945676, %v3157_v49  ;;  %v3147_v4 = vadd.f32 0.05243302, %v3146_v5  ;;  %v3071_v0 = vadd.f32 1.1283791, %v3070_v14 }
0x1278   : > { %4146 = vrcp.f32 %v5696_v3  ;;  %v3196_v19 = vadd.f32 0.014752088, %v3195_v41  ;;  %v3185_v47 = vadd.f32 0.0036580483, %v3184_v15  ;;  %v3109_v8 = vadd.f32 0.18741608, %v3108_v21  ;;  %3386 = vmatpush.msrb.mxu0 %v3931_v27 }
0x1279   : > { %v3120_v61 = vadd.f32 0.4994258, %v3119_v53  ;;  %v3159_v30 = vmul.f32 %v3158_v17, %v5642_v44  ;;  %v3092_v20 = vand.u32 2147483647, %v5696_v3  ;;  %v3094_v35 = vand.u32 2147483648, %v5696_v3 }
0x127a   : > { %v3197_v7 = vmul.f32 %v3196_v19, %v5668_v58  ;;  %v3186_v22 = vmul.f32 %v3185_v47, %v5668_v58  ;;  %v3148_v24 = vmul.f32 %v3147_v4, %v5642_v44  ;;  %v3110_v50 = vmul.f32 %v3109_v8, %v5627_v34 }
0x127b   : > { %v3121_v51 = vmul.f32 %v3120_v61, %v5627_v34  ;;  %v3160_v23 = vadd.f32 0.4994258, %v3159_v30  ;;  %vm3088_vm6 = vweird.f32 %v5696_v3  ;;  %v3095_v49 = vor.u32 1.1754944e-38, %v3094_v35 }
0x127c   : > { %v3198_v2 = vadd.f32 0.112945676, %v3197_v7  ;;  %v3187_v46 = vadd.f32 0.05243302, %v3186_v22  ;;  %v3149_v48 = vadd.f32 0.18741608, %v3148_v24  ;;  %v3072_v53 = vmul.f32 %v3071_v0, %v5568_v12 }
0x127d   : > { %v5725_v26 = vadd.f32 1.0, %v3121_v51  ;;  %v3161_v18 = vmul.f32 %v3160_v23, %v5642_v44  ;;  %vm3093_vm8 = vcmp.eq.f32.partialorder %v3092_v20, 8.507059e+37  ;;  %v3111_v60 = vadd.f32 1.1283791, %v3110_v50 }
0x127e   : > { %v4147_v1 = vpop.eup %4146  ;;  %v3199_v39 = vmul.f32 %v3198_v2, %v5668_v58  ;;  %v3150_v52 = vmul.f32 %v3149_v48, %v5642_v44  ;;  %v3048_v51 = vmul.f32 0.5, %v5562_v11  ;;  %v3049_v24 = vmul.f32 0.5, %v5586_v6 }
0x127f   : > { %v3084_v28 = vmul.f32 %v4147_v1, %v5696_v3  ;;  %4148 = vrcp.f32 %v5725_v26  ;;  %vm3089_vm5 = vweird.f32 %v4147_v1  ;;  %v5739_v38 = vadd.f32 1.0, %v3161_v18 }
0x1280   : > { %vm3090_vm7 = vmor %vm3088_vm6, %vm3089_vm5  ;;  %v3200_v41 = vadd.f32 0.4994258, %v3199_v39  ;;  %v3134_v15 = vand.u32 2147483648, %v5725_v26  ;;  %v3188_v3 = vmul.f32 %v3187_v46, %v5668_v58  ;;  %v3132_v17 = vand.u32 2147483647, %v5725_v26 }
0x1281   : > { %v3085_v16 = vsub.f32 1.0, %v3084_v28  ;;  %4150 = vrcp.f32 %v5739_v38  ;;  %v3112_v19 = vmul.f32 %v3111_v60, %v5603_v32  ;;  %vm3128_vm10 = vweird.f32 %v5725_v26 }
0x1282   : > { %v3201_v62 = vmul.f32 %v3200_v41, %v5668_v58  ;;  %v3135_v14 = vor.u32 1.1754944e-38, %v3134_v15  ;;  %v3189_v4 = vadd.f32 0.18741608, %v3188_v3  ;;  %vm3133_vm11 = vcmp.eq.f32.partialorder %v3132_v17, 8.507059e+37 }
0x1283   : > { %v3086_v33 = vmul.f32 %v4147_v1, %v3085_v16  ;;  %v3151_v23 = vadd.f32 1.1283791, %v3150_v52  ;;  %v3174_v32 = vand.u32 2147483648, %v5739_v38  ;;  %v3172_v18 = vand.u32 2147483647, %v5739_v38 }
0x1284   : > { %v5753_v30 = vadd.f32 1.0, %v3201_v62  ;;  %v3190_v22 = vmul.f32 %v3189_v4, %v5668_v58  ;;  %vm3168_vm14 = vweird.f32 %v5739_v38 }
0x1285   : > { %v4149_v25 = vpop.eup %4148  ;;  %v3087_v29 = vadd.f32 %v4147_v1, %v3086_v33  ;;  %v3175_v33 = vor.u32 1.1754944e-38, %v3174_v32  ;;  %vm3173_vm0 = vcmp.eq.f32.partialorder %v3172_v18, 8.507059e+37 }
0x1286   : > { %v3124_v40 = vmul.f32 %v4149_v25, %v5725_v26  ;;  %vm3129_vm9 = vweird.f32 %v4149_v25  ;;  %4152 = vrcp.f32 %v5753_v30  ;;  %vm3208_vm2 = vweird.f32 %v5753_v30 }
0x1287   : > { %v3091_v63 = vsel %vm3090_vm7, %v4147_v1, %v3087_v29  ;;  %v4151_v12 = vpop.eup %4150  ;;  %vm3130_vm12 = vmor %vm3128_vm10, %vm3129_vm9 }
0x1288   : > { %v3096_v59 = vsel %vm3093_vm8, %v3095_v49, %v3091_v63  ;;  %v3125_v34 = vsub.f32 1.0, %v3124_v40  ;;  %v3164_v47 = vmul.f32 %v4151_v12, %v5739_v38  ;;  %vm3169_vm13 = vweird.f32 %v4151_v12 }
0x1289   : > { %v3097_v61 = vmul.f32 %v3096_v59, %v3072_v53  ;;  %vm3170_vm15 = vmor %vm3168_vm14, %vm3169_vm13  ;;  %v3191_v49 = vadd.f32 1.1283791, %v3190_v22  ;;  %v3212_v53 = vand.u32 2147483647, %v5753_v30  ;;  %v3214_v63 = vand.u32 2147483648, %v5753_v30 }
0x128a   : > { %v3126_v5 = vmul.f32 %v4149_v25, %v3125_v34  ;;  %v3165_v11 = vsub.f32 1.0, %v3164_v47 }
0x128b   : > { %v3909_v21 = vclamps-f32 %v3097_v61, 1.0  ;;  %v3192_v52 = vmul.f32 %v3191_v49, %v5646_v54  ;;  %vm3213_vm4 = vcmp.eq.f32.partialorder %v3212_v53, 8.507059e+37 }
0x128c   : > { %v3127_v36 = vadd.f32 %v4149_v25, %v3126_v5  ;;  %v3166_v16 = vmul.f32 %v4151_v12, %v3165_v11  ;;  %v4153_v35 = vpop.eup %4152 }
0x128d   : > { %v3300_v1 = vadd.f32 1.0, %v3909_v21  ;;  %vm3209_vm1 = vweird.f32 %v4153_v35 }
0x128e   : > { %v3131_v44 = vsel %vm3130_vm12, %v4149_v25, %v3127_v36  ;;  %v3019_v7 = vpop.f32.mrf.mxu1  ;;  %v3167_v20 = vadd.f32 %v4151_v12, %v3166_v16  ;;  %v3204_v25 = vmul.f32 %v4153_v35, %v5753_v30  ;;  %vm3210_vm3 = vmor %vm3208_vm2, %vm3209_vm1 }
0x128f   : > { %v3306_v27 = vmul.f32 %v3300_v1, %v3048_v51  ;;  %v3136_v28 = vsel %vm3133_vm11, %v3135_v14, %v3131_v44  ;;  %v5761_v8 = vadd.f32 %v3019_v7, %v5556_v56  ;;  %v3152_v56 = vmul.f32 %v3151_v23, %v5614_v42 }
0x1290   : > { %v3137_v26 = vmul.f32 %v3136_v28, %v3112_v19  ;;  %v3171_v58 = vsel %vm3170_vm15, %v4151_v12, %v3167_v20  ;;  %v3205_v48 = vsub.f32 1.0, %v3204_v25  ;;  %v3215_v12 = vor.u32 1.1754944e-38, %v3214_v63 }
0x1291   : > { %v5766_v2 = vmul.f32 0.70710677, %v5761_v8  ;;  %3361 = vmatmul.f32.vlgmr.msrb.gmra.mxu3 %v3306_v27  ;;  %v3176_v46 = vsel %vm3173_vm0, %v3175_v33, %v3171_v58  ;;  %v3051_v27 = vmul.f32 0.5, %v5632_v45 }
0x1292   : > { %v3910_v0 = vclamps-f32 %v3137_v26, 1.0  ;;  %v3177_v42 = vmul.f32 %v3176_v46, %v3152_v56  ;;  %v3206_v60 = vmul.f32 %v4153_v35, %v3205_v48 }
0x1293   : > { %v3220_v39 = vmul.f32 %v5766_v2, %v5766_v2 }
0x1294   : > { %v3301_v50 = vadd.f32 1.0, %v3910_v0  ;;  %v3045_v29 = vpop.f32.mrf.mxu2  ;;  %v3911_v61 = vclamps-f32 %v3177_v42, 1.0  ;;  %v3207_v62 = vadd.f32 %v4153_v35, %v3206_v60 }
0x1295   : > { %v5774_v40 = vmin.f32 %v3220_v39, 16.0  ;;  %v5777_v38 = vadd.f32 %v3045_v29, %v5570_v9  ;;  %v3050_v9 = vmul.f32 0.5, %v5597_v13 }
0x1296   : > { %v3307_v6 = vmul.f32 %v3301_v50, %v3049_v24  ;;  %v3302_v17 = vadd.f32 1.0, %v3911_v61  ;;  %v3211_v19 = vsel %vm3210_vm3, %v4153_v35, %v3207_v62 }
0x1297   : > { %v3222_v41 = vmul.f32 2.1237322e-06, %v5774_v40  ;;  %v3233_v59 = vmul.f32 3.8918573e-05, %v5774_v40  ;;  %v5784_v34 = vmul.f32 0.70710677, %v5777_v38  ;;  %v3216_v47 = vsel %vm3213_vm4, %v3215_v12, %v3211_v19 }
0x1298   : > { %3387 = vmatmul.f32.vlgmr.msrb.gmra.mxu0 %v3307_v6  ;;  %v3308_v36 = vmul.f32 %v3302_v17, %v3050_v9  ;;  %v3217_v14 = vmul.f32 %v3216_v47, %v3192_v52 }
0x1299   : > { %v3223_v15 = vadd.f32 0.00028619796, %v3222_v41  ;;  %v3234_v3 = vadd.f32 0.001143296, %v3233_v59  ;;  %v3260_v5 = vmul.f32 %v5784_v34, %v5784_v34 }
0x129a   : > { %3364 = vmatmul.f32.gmra.mxu3 %v3308_v36  ;;  %v3912_v7 = vclamps-f32 %v3217_v14, 1.0 }
0x129b   : > { %v3224_v51 = vmul.f32 %v3223_v15, %v5774_v40  ;;  %v3235_v21 = vmul.f32 %v3234_v3, %v5774_v40  ;;  %v3261_v13 = vmin.f32 %v3260_v5, 16.0 }
0x129c   : > { %v3303_v18 = vadd.f32 1.0, %v3912_v7 }
0x129d   : > { %v3236_v1 = vadd.f32 0.014752088, %v3235_v21  ;;  %v3225_v30 = vadd.f32 0.0036580483, %v3224_v51  ;;  %v3262_v4 = vmul.f32 2.1237322e-06, %v3261_v13 }
0x129e   : > { %v3273_v44 = vmul.f32 3.8918573e-05, %v3261_v13  ;;  %v3309_v20 = vmul.f32 %v3303_v18, %v3051_v27 }
0x129f   : > { %v3237_v23 = vmul.f32 %v3236_v1, %v5774_v40  ;;  %v3263_v54 = vadd.f32 0.00028619796, %v3262_v4  ;;  %v3226_v32 = vmul.f32 %v3225_v30, %v5774_v40 }
0x12a0   : > { %v3274_v11 = vadd.f32 0.001143296, %v3273_v44  ;;  %3390 = vmatmul.f32.gmra.mxu0 %v3309_v20 }
0x12a1   : > { %v3238_v28 = vadd.f32 0.112945676, %v3237_v23  ;;  %v3264_v26 = vmul.f32 %v3263_v54, %v3261_v13  ;;  %v3227_v56 = vadd.f32 0.05243302, %v3226_v32  ;;  %v3052_v54 = vmul.f32 0.5, %v5761_v8 }
0x12a2   : > { %v3275_v16 = vmul.f32 %v3274_v11, %v3261_v13 }
0x12a3   : > { %v3239_v22 = vmul.f32 %v3238_v28, %v5774_v40  ;;  %v3265_v24 = vadd.f32 0.0036580483, %v3264_v26  ;;  %v3228_v25 = vmul.f32 %v3227_v56, %v5774_v40 }
0x12a4   : > { %v3276_v0 = vadd.f32 0.014752088, %v3275_v16  ;;  %v3053_v16 = vmul.f32 0.5, %v5777_v38 }
0x12a5   : > { %v3240_v35 = vadd.f32 0.4994258, %v3239_v22  ;;  %v3266_v45 = vmul.f32 %v3265_v24, %v3261_v13  ;;  %v3229_v6 = vadd.f32 0.18741608, %v3228_v25 }
0x12a6   : > { %v3277_v33 = vmul.f32 %v3276_v0, %v3261_v13 }
0x12a7   : > { %v3241_v39 = vmul.f32 %v3240_v35, %v5774_v40  ;;  %v3267_v49 = vadd.f32 0.05243302, %v3266_v45  ;;  %v3230_v41 = vmul.f32 %v3229_v6, %v5774_v40  ;;  %v4009_v35 = vld [vmem:[%s5968_s11 + $0x1] ss:$0 sm:$0xff] }
0x12a8   : > { %v3278_v50 = vadd.f32 0.112945676, %v3277_v33 }
0x12a9   : > { %v3242_v58 = vadd.f32 1.0, %v3241_v39  ;;  %v3268_v63 = vmul.f32 %v3267_v49, %v3261_v13  ;;  %v3231_v15 = vadd.f32 1.1283791, %v3230_v41 }
0x12aa   : > { %v3279_v29 = vmul.f32 %v3278_v50, %v3261_v13 }
0x12ab   : > { %4154 = vrcp.f32 %v3242_v58  ;;  %v3254_v61 = vand.u32 2147483648, %v3242_v58  ;;  %v3269_v9 = vadd.f32 0.18741608, %v3268_v63  ;;  %v3252_v62 = vand.u32 2147483647, %v3242_v58 }
0x12ac   : > { %v3280_v46 = vadd.f32 0.4994258, %v3279_v29  ;;  %vm3248_vm6 = vweird.f32 %v3242_v58  ;;  %v3232_v21 = vmul.f32 %v3231_v15, %v5766_v2 }
0x12ad   : > { %v3255_v52 = vor.u32 1.1754944e-38, %v3254_v61  ;;  %v3270_v12 = vmul.f32 %v3269_v9, %v3261_v13  ;;  %vm3253_vm8 = vcmp.eq.f32.partialorder %v3252_v62, 8.507059e+37 }
0x12ae   : > { %v3281_v42 = vmul.f32 %v3280_v46, %v3261_v13 }
0x12af   : > { %v3271_v14 = vadd.f32 1.1283791, %v3270_v12 }
0x12b0   : > { %v3282_v48 = vadd.f32 1.0, %v3281_v42 }
0x12b1   : > { %v4155_v53 = vpop.eup %4154  ;;  %v3272_v2 = vmul.f32 %v3271_v14, %v5784_v34 }
0x12b2   : > { %v3244_v59 = vmul.f32 %v4155_v53, %v3242_v58  ;;  %4156 = vrcp.f32 %v3282_v48  ;;  %vm3249_vm5 = vweird.f32 %v4155_v53  ;;  %v3294_v1 = vand.u32 2147483648, %v3282_v48 }
0x12b3   : > { %vm3250_vm7 = vmor %vm3248_vm6, %vm3249_vm5  ;;  %v3292_v4 = vand.u32 2147483647, %v3282_v48  ;;  %vm3288_vm10 = vweird.f32 %v3282_v48 }
0x12b4   : > { %v3245_v60 = vsub.f32 1.0, %v3244_v59  ;;  %v3295_v13 = vor.u32 1.1754944e-38, %v3294_v1  ;;  %v4010_v1 = vld [vmem:[%s5969_s12] ss:$0 sm:$0xff] }
0x12b5   : > { %vm3293_vm11 = vcmp.eq.f32.partialorder %v3292_v4, 8.507059e+37  ;;  %v4011_v4 = vld [vmem:[%s5970_s13] ss:$0 sm:$0xff] }
0x12b6   : > { %v3246_v3 = vmul.f32 %v4155_v53, %v3245_v60 }
0x12b8   : > { %v4157_v5 = vpop.eup %4156  ;;  %v3247_v17 = vadd.f32 %v4155_v53, %v3246_v3 }
0x12b9   : > { %v3284_v51 = vmul.f32 %v4157_v5, %v3282_v48  ;;  %vm3289_vm9 = vweird.f32 %v4157_v5 }
0x12ba   : > { %v3251_v19 = vsel %vm3250_vm7, %v4155_v53, %v3247_v17  ;;  %vm3290_vm12 = vmor %vm3288_vm10, %vm3289_vm9  ;;  %vm3508_vm7 = vcmask 7168  }
0x12bb   : > { %v3256_v40 = vsel %vm3253_vm8, %v3255_v52, %v3251_v19  ;;  %v3285_v36 = vsub.f32 1.0, %v3284_v51 }
0x12bc   : > { %v3257_v47 = vmul.f32 %v3256_v40, %v3232_v21 }
0x12bd   : > { %v3286_v30 = vmul.f32 %v4157_v5, %v3285_v36 }
0x12be   : > { %v3913_v44 = vclamps-f32 %v3257_v47, 1.0 }
0x12bf   : > { %v3287_v23 = vadd.f32 %v4157_v5, %v3286_v30 }
0x12c0   : > { %v3304_v11 = vadd.f32 1.0, %v3913_v44 }
0x12c1   : > { %v3291_v7 = vsel %vm3290_vm12, %v4157_v5, %v3287_v23 }
0x12c2   : > { %v3296_v27 = vsel %vm3293_vm11, %v3295_v13, %v3291_v7  ;;  %v3310_v28 = vmul.f32 %v3304_v11, %v3052_v54  ;;  %v4012_v54 = vld [vmem:[%s5971_s14] ss:$0 sm:$0xff] }
0x12c3   : > { %v3297_v32 = vmul.f32 %v3296_v27, %v3272_v2 }
0x12c4   : > { %3367 = vmatmul.f32.gmra.mxu3 %v3310_v28 }
0x12c5   : > { %v3914_v26 = vclamps-f32 %v3297_v32, 1.0 }
0x12c7   : > { %v3305_v18 = vadd.f32 1.0, %v3914_v26 }
0x12c9   : > { %v3311_v22 = vmul.f32 %v3305_v18, %v3053_v16 }
0x12cb   : > { %3393 = vmatmul.f32.gmra.mxu0 %v3311_v22 }
0x1314   : > { %v3362_v0 = vpop.f32.mrf.mxu3 }
0x1315   : > { %v3388_v20 = vpop.f32.mrf.mxu0 }
0x1316   : > { %v3389_v8 = vadd.f32 %v3388_v20, %v3362_v0 }
0x1318   : > { %v3397_v34 = vadd.f32 %v3389_v8, %v5425_v37 }
0x131a   : > { %v3405_v24 = vadd.f32 %v4009_v35, %v3397_v34 }
0x131c   : > { %3408 = vadd.xlane.f32.xlu1 %v3405_v24 }
0x131d   : > { %v3365_v56 = vpop.f32.mrf.mxu3  ;;  %v3391_v33 = vpop.f32.mrf.mxu0 }
0x131e   : > { %v3392_v39 = vadd.f32 %v3391_v33, %v3365_v56 }
0x1320   : > { %v3398_v50 = vadd.f32 %v3392_v39, %v5429_v55 }
0x1322   : > { %v3406_v38 = vadd.f32 %v4009_v35, %v3398_v50 }
0x1324   : > { %3410 = vadd.xlane.f32.xlu0 %v3406_v38 }
0x1347   : > { %v3368_v58 = vpop.f32.mrf.mxu3 }
0x1348   : > { %v3394_v45 = vpop.f32.mrf.mxu0 }
0x1349   : > { %v3395_v25 = vadd.f32 %v3394_v45, %v3368_v58 }
0x134b   : > { %v3399_v29 = vadd.f32 %v3395_v25, %v5433_v10 }
0x134d   : > { %v3407_v46 = vadd.f32 %v4009_v35, %v3399_v29 }
0x134f   : > { %3412 = vadd.xlane.f32.xlu2 %v3407_v46 }
0x138f   : > { %v3409_v49 = vpop.xlane.xlu1 %3408 }
0x1390   : > { %v3414_v6 = vmul.f32 0.015625, %v3409_v49 }
0x1392   : > { %v3417_v42 = vsub.f32 %v3405_v24, %v3414_v6 }
0x1394   : > { %v3420_v37 = vmul.f32 %v3417_v42, %v3417_v42 }
0x1396   : > { %v3423_v48 = vmul.f32 %v4438_v57, %v3420_v37 }
0x1397   : > { %v3411_v53 = vpop.xlane.xlu0 %3410 }
0x1398   : > { %3426 = vadd.xlane.f32.xlu1 %v3423_v48  ;;  %v3415_v63 = vmul.f32 0.015625, %v3411_v53 }
0x139a   : > { %v3418_v41 = vsub.f32 %v3406_v38, %v3415_v63 }
0x139c   : > { %v3421_v55 = vmul.f32 %v3418_v41, %v3418_v41 }
0x139e   : > { %v3424_v59 = vmul.f32 %v4438_v57, %v3421_v55 }
0x13a0   : > { %3428 = vadd.xlane.f32.xlu0 %v3424_v59 }
0x13c2   : > { %v3413_v60 = vpop.xlane.xlu2 %3412 }
0x13c3   : > { %v3416_v61 = vmul.f32 0.015625, %v3413_v60 }
0x13c5   : > { %v3419_v9 = vsub.f32 %v3407_v46, %v3416_v61  ;;  %v638_v46 = vshrl.u32 %v630_v43, 7 }
0x13c7   : > { %v3422_v10 = vmul.f32 %v3419_v9, %v3419_v9  ;;  %v640_v49 = vadd.s32 16, %v638_v46 }
0x13c9   : > { %v3425_v15 = vmul.f32 %v4438_v57, %v3422_v10  ;;  %vm643_vm6 = vcmp.lt.s32.totalorder %v640_v49, 17  ;;  %v3606_v49 = vld [vmem:[%s5973_s16 + $0x78] sm:$0xff] }
0x13ca   : > { %v646_v63 = vsel %vm643_vm6, 0.0, %v4186_v31  ;;  %3608 = vmatpush.msra.mxu1 %v3606_v49 }
0x13cb   : > { %3430 = vadd.xlane.f32.xlu2 %v3425_v15 }
0x140b   : > { %v3427_v3 = vpop.xlane.xlu1 %3426 }
0x140c   : > { %v3432_v62 = vmul.f32 0.015625, %v3427_v3 }
0x140e   : > { %v3435_v5 = vadd.f32 1e-06, %v3432_v62 }
0x1410   : > { %4158 = vrsqrt.f32 %v3435_v5  ;;  %vm3444_vm14 = vweird.f32 %v3435_v5 }
0x1413   : > { %v3429_v51 = vpop.xlane.xlu0 %3428 }
0x1414   : > { %v3433_v21 = vmul.f32 0.015625, %v3429_v51 }
0x1416   : > { %v4159_v17 = vpop.eup %4158  ;;  %v3436_v40 = vadd.f32 1e-06, %v3433_v21 }
0x1417   : > { %v3439_v52 = vmul.f32 %v4159_v17, %v3435_v5  ;;  %vm3445_vm13 = vweird.f32 %v4159_v17 }
0x1418   : > { %4160 = vrsqrt.f32 %v3436_v40  ;;  %vm3446_vm15 = vmor %vm3444_vm14, %vm3445_vm13  ;;  %vm3454_vm1 = vweird.f32 %v3436_v40 }
0x1419   : > { %v3440_v12 = vmul.f32 %v4159_v17, %v3439_v52  ;;  %v4191_v52 = vmov 0  }
0x141a   : > { %4004 = vset.pattern.permute.xlu2 %v4191_v52  ;;  %4003 = vset.pattern.permute.xlu0 %v4191_v52 }
0x141b   : > { %v3441_v19 = vmul.f32 0.5, %v3440_v12  ;;  %4002 = vset.pattern.permute.xlu1 %v4191_v52  ;;  %v3641_v52 = vld [vmem:[%s5975_s18 + $0x60] sm:$0xff] }
0x141d   : > { %v3442_v36 = vsub.f32 1.5, %v3441_v19 }
0x141e   : > { %v4161_v44 = vpop.eup %4160 }
0x141f   : > { %v3443_v47 = vmul.f32 %v4159_v17, %v3442_v36  ;;  %v3449_v13 = vmul.f32 %v4161_v44, %v3436_v40  ;;  %vm3455_vm0 = vweird.f32 %v4161_v44 }
0x1420   : > { %vm3456_vm2 = vmor %vm3454_vm1, %vm3455_vm0 }
0x1421   : > { %v3447_v14 = vsel %vm3446_vm15, %v4159_v17, %v3443_v47  ;;  %v3450_v2 = vmul.f32 %v4161_v44, %v3449_v13 }
0x1422   : > { %v3468_v30 = vmul.f32 %v3447_v14, %v3417_v42  ;;  %v4013_v42 = vld [vmem:[#allocation2] ss:$0 sm:$0xff] }
0x1423   : > { %v3451_v27 = vmul.f32 0.5, %v3450_v2 }
0x1424   : > { %v3475_v23 = vmul.f32 %v4010_v1, %v3468_v30 }
0x1425   : > { %v3452_v28 = vsub.f32 1.5, %v3451_v27 }
0x1426   : > { %v5822_v11 = vadd.f32 %v4011_v4, %v3475_v23 }
0x1427   : > { %v3453_v32 = vmul.f32 %v4161_v44, %v3452_v28 }
0x1428   : > { %v3489_v7 = vmul.f32 %v4012_v54, %v5822_v11 }
0x1429   : > { %v3457_v26 = vsel %vm3456_vm2, %v4161_v44, %v3453_v32 }
0x142a   : > { %3492 = vadd.xlane.f32.xlu1 %v3489_v7  ;;  %v3469_v16 = vmul.f32 %v3457_v26, %v3418_v41 }
0x142c   : > { %v3476_v18 = vmul.f32 %v4010_v1, %v3469_v16 }
0x142e   : > { %v5825_v22 = vadd.f32 %v4011_v4, %v3476_v18 }
0x1430   : > { %v3490_v0 = vmul.f32 %v4012_v54, %v5825_v22 }
0x1432   : > { %3494 = vadd.xlane.f32.xlu0 %v3490_v0 }
0x143e   : > { %v3431_v20 = vpop.xlane.xlu2 %3430 }
0x143f   : > { %v3434_v8 = vmul.f32 0.015625, %v3431_v20 }
0x1441   : > { %v3437_v35 = vadd.f32 1e-06, %v3434_v8 }
0x1443   : > { %4162 = vrsqrt.f32 %v3437_v35  ;;  %vm3464_vm4 = vweird.f32 %v3437_v35 }
0x1449   : > { %v4163_v34 = vpop.eup %4162 }
0x144a   : > { %v3459_v24 = vmul.f32 %v4163_v34, %v3437_v35  ;;  %vm3465_vm3 = vweird.f32 %v4163_v34 }
0x144b   : > { %vm3466_vm5 = vmor %vm3464_vm4, %vm3465_vm3 }
0x144c   : > { %v3460_v56 = vmul.f32 %v4163_v34, %v3459_v24 }
0x144e   : > { %v3461_v33 = vmul.f32 0.5, %v3460_v56 }
0x1450   : > { %v3462_v39 = vsub.f32 1.5, %v3461_v33 }
0x1452   : > { %v3463_v50 = vmul.f32 %v4163_v34, %v3462_v39 }
0x1454   : > { %v3467_v38 = vsel %vm3466_vm5, %v4163_v34, %v3463_v50 }
0x1455   : > { %v3470_v58 = vmul.f32 %v3467_v38, %v3419_v9 }
0x1457   : > { %v3477_v45 = vmul.f32 %v4010_v1, %v3470_v58 }
0x1459   : > { %v5828_v25 = vadd.f32 %v4011_v4, %v3477_v45 }
0x145b   : > { %v3491_v29 = vmul.f32 %v4012_v54, %v5828_v25 }
0x145d   : > { %3496 = vadd.xlane.f32.xlu2 %v3491_v29 }
0x149d   : > { %v3493_v37 = vpop.xlane.xlu1 %3492 }
0x149e   : > { %v3502_v53 = vadd.f32 %v4013_v42, %v3493_v37 }
0x14a0   : > { %v3509_v60 = vsel %vm3508_vm7, %v3502_v53, -inf }
0x14a5   : > { %v3495_v6 = vpop.xlane.xlu0 %3494 }
0x14a6   : > { %v3503_v48 = vadd.f32 %v4013_v42, %v3495_v6 }
0x14a8   : > { %v3510_v55 = vsel %vm3508_vm7, %v3503_v48, -inf }
0x14a9   : > { %v3512_v9 = vmax.f32 %v3509_v60, %v3510_v55  ;;  %v3600_v55 = vld [vmem:[%s5973_s16 + $0x48] sm:$0xff]  ;;  %v3597_v60 = vld [vmem:[%s5973_s16 + $0x30] sm:$0xff] }
0x14d0   : > { %v3497_v41 = vpop.xlane.xlu2 %3496 }
0x14d1   : > { %v3504_v59 = vadd.f32 %v4013_v42, %v3497_v41  ;;  %v3601_v41 = vld [vmem:[%s5973_s16 + $0x50] sm:$0xff] }
0x14d3   : > { %v3507_v61 = vadd.f32 %v3504_v59, %v646_v63  ;;  %v3602_v63 = vld [vmem:[%s5973_s16 + $0x58] sm:$0xff] }
0x14d4   : > { %v3598_v59 = vld [vmem:[%s5973_s16 + $0x38] sm:$0xff] }
0x14d5   : > { %v3511_v43 = vsel %vm3508_vm7, %v3507_v61, -inf }
0x14d6   : > { %v3513_v10 = vmax.f32 %v3512_v9, %v3511_v43  ;;  %v3595_v9 = vld [vmem:[%s5973_s16 + $0x20] sm:$0xff]  ;;  %v3594_v43 = vld [vmem:[%s5973_s16 + $0x18] sm:$0xff] }
0x14d8   : > { %v3514_v15 = vrot.slane %v3513_v10, 4 }
0x14da   : > { %v3515_v3 = vmax.f32 %v3513_v10, %v3514_v15  ;;  %v3593_v10 = vld [vmem:[%s5973_s16 + $0x10] sm:$0xff]  ;;  %v3592_v15 = vld [vmem:[%s5973_s16 + $0x8] sm:$0xff] }
0x14dc   : > { %v3516_v62 = vrot.slane %v3515_v3, 2 }
0x14de   : > { %v3517_v5 = vmax.f32 %v3515_v3, %v3516_v62  ;;  %v3644_v3 = vld [vmem:[%s5975_s18 + $0x78] sm:$0xff]  ;;  %v3643_v62 = vld [vmem:[%s5975_s18 + $0x70] sm:$0xff] }
0x14df   : > { %3646 = vmatpush.msrb.mxu2 %v3644_v3 }
0x14e0   : > { %v3518_v17 = vrot.slane %v3517_v5, 1 }
0x14e1   : > { %3647 = vmatpush.msrb.mxu2 %v3643_v62 }
0x14e2   : > { %v3519_v31 = vmax.f32 %v3517_v5, %v3518_v17  ;;  %v3591_v5 = vld [vmem:[%s5973_s16] sm:$0xff]  ;;  %v3642_v17 = vld [vmem:[%s5975_s18 + $0x68] sm:$0xff] }
0x14e3   : > { %3648 = vmatpush.msrb.mxu2 %v3642_v17 }
0x14e4   : > { %v3520_v12 = vsub.f32 %v3502_v53, %v3519_v31  ;;  %v3521_v51 = vsub.f32 %v3503_v48, %v3519_v31  ;;  %v3522_v21 = vsub.f32 %v3507_v61, %v3519_v31  ;;  %v3596_v61 = vld [vmem:[%s5973_s16 + $0x28] sm:$0xff]  ;;  %v3640_v31 = vld [vmem:[%s5975_s18 + $0x58] sm:$0xff] }
0x14e5   : > { %3649 = vmatpush.msrb.mxu2 %v3641_v52 }
0x14e6   : > { %v3523_v19 = vmul.f32 1.442695, %v3520_v12  ;;  %v3525_v40 = vmul.f32 1.442695, %v3521_v51  ;;  %v3527_v36 = vmul.f32 1.442695, %v3522_v21 }
0x14e7   : > { %v3639_v21 = vld [vmem:[%s5975_s18 + $0x50] sm:$0xff]  ;;  %3650 = vmatpush.msrb.mxu2 %v3640_v31 }
0x14e8   : > { %4164 = vpow2.f32 %v3523_v19 }
0x14e9   : > { %4166 = vpow2.f32 %v3525_v40  ;;  %v3638_v40 = vld [vmem:[%s5975_s18 + $0x48] sm:$0xff]  ;;  %3651 = vmatpush.msrb.mxu2 %v3639_v21 }
0x14ea   : > { %4168 = vpow2.f32 %v3527_v36  ;;  %v3637_v36 = vld [vmem:[%s5975_s18 + $0x40] sm:$0xff] }
0x14eb   : > { %3652 = vmatpush.msrb.mxu2 %v3638_v40 }
0x14ed   : > { %3653 = vmatpush.msrb.mxu2 %v3637_v36 }
0x14ee   : > { %v4165_v47 = vpop.eup %4164 }
0x14ef   : > { %v4167_v1 = vpop.eup %4166  ;;  %v3529_v14 = vsel %vm3508_vm7, %v4165_v47, 0.0 }
0x14f0   : > { %v4169_v30 = vpop.eup %4168  ;;  %v3530_v4 = vsel %vm3508_vm7, %v4167_v1, 0.0 }
0x14f1   : > { %v3531_v44 = vadd.f32 %v3530_v4, %v3529_v14  ;;  %v3532_v23 = vsel %vm3508_vm7, %v4169_v30, 0.0 }
0x14f3   : > { %v3533_v54 = vadd.f32 %v3532_v23, %v3531_v44  ;;  %v3633_v44 = vld [vmem:[%s5975_s18 + $0x20] sm:$0xff] }
0x14f5   : > { %v3534_v13 = vrot.slane %v3533_v54, 4 }
0x14f7   : > { %v3535_v2 = vadd.f32 %v3534_v13, %v3533_v54  ;;  %v3632_v54 = vld [vmem:[%s5975_s18 + $0x18] sm:$0xff] }
0x14f9   : > { %v3536_v7 = vrot.slane %v3535_v2, 2 }
0x14fb   : > { %v3537_v27 = vadd.f32 %v3536_v7, %v3535_v2 }
0x14fd   : > { %v3538_v28 = vrot.slane %v3537_v27, 1 }
0x14ff   : > { %v3539_v32 = vadd.f32 %v3538_v28, %v3537_v27 }
0x1501   : > { %4170 = vrcp.f32 %v3539_v32  ;;  %v3631_v32 = vld [vmem:[%s5975_s18 + $0x10] sm:$0xff] }
0x1507   : > { %v4171_v26 = vpop.eup %4170 }
0x1508   : > { %v3543_v16 = vmul.f32 %v4171_v26, %v4169_v30  ;;  %v3542_v18 = vmul.f32 %v4171_v26, %v4167_v1  ;;  %v3541_v0 = vmul.f32 %v4171_v26, %v4165_v47  ;;  %v3636_v47 = vld [vmem:[%s5975_s18 + $0x38] sm:$0xff]  ;;  %v3635_v1 = vld [vmem:[%s5975_s18 + $0x30] sm:$0xff]  ;;  %v3634_v30 = vld [vmem:[%s5975_s18 + $0x28] sm:$0xff] }
0x1509   : > { %3654 = vmatpush.msrb.mxu2 %v3636_v47  ;;  %v3630_v26 = vld [vmem:[%s5975_s18 + $0x8] sm:$0xff] }
0x150a   : > { %3556 = vperm.xlu2 %4004, %v3543_v16   ;;  %3551 = vperm.xlu0 %4003, %v3542_v18   ;;  %v3629_v16 = vld [vmem:[%s5975_s18] sm:$0xff] }
0x150b   : > { %3546 = vperm.xlu1 %4002, %v3541_v0   ;;  %3655 = vmatpush.msrb.mxu2 %v3635_v1  ;;  %v3607_v18 = vld [vmem:[%s5974_s17] sm:$0x1] }
0x150d   : > { %3656 = vmatpush.msrb.mxu2 %v3634_v30 }
0x150f   : > { %3657 = vmatpush.msrb.mxu2 %v3633_v44 }
0x1511   : > { %3658 = vmatpush.msrb.mxu2 %v3632_v54 }
0x1513   : > { %3659 = vmatpush.msrb.mxu2 %v3631_v32 }
0x1515   : > { %3660 = vmatpush.msrb.mxu2 %v3630_v26 }
0x1517   : > { %3661 = vmatpush.msrb.mxu2 %v3629_v16 }
0x1564   : > { %v3557_v8 = vpop.permute.xlu2 %3556 }
0x1565   : > { %v3561_v56 = vmul.f32 %v3557_v8, %v5828_v25  ;;  %v3603_v25 = vld [vmem:[%s5973_s16 + $0x60] sm:$0xff] }
0x157c   : > { %v3552_v20 = vpop.permute.xlu0 %3551 }
0x157d   : > { %v3560_v35 = vmul.f32 %v3552_v20, %v5825_v22  ;;  %v3547_v34 = vpop.permute.xlu1 %3546  ;;  %v3605_v22 = vld [vmem:[%s5973_s16 + $0x70] sm:$0xff] }
0x157e   : > { %v3559_v24 = vmul.f32 %v3547_v34, %v5822_v11  ;;  %v3604_v11 = vld [vmem:[%s5973_s16 + $0x68] sm:$0xff]  ;;  %3609 = vmatpush.msra.mxu1 %v3605_v22 }
0x1580   : > { %v3562_v33 = vadd.f32 %v3560_v35, %v3559_v24  ;;  %3610 = vmatpush.msra.mxu1 %v3604_v11  ;;  %v3645_v35 = vld [vmem:[%s5976_s19] sm:$0x1] }
0x1582   : > { %v3563_v39 = vadd.f32 %v3562_v33, %v3561_v56  ;;  %3611 = vmatpush.msra.mxu1 %v3603_v25 }
0x1584   : > { %v3564_v50 = vrot.slane %v3563_v39, 4  ;;  %3612 = vmatpush.msra.mxu1 %v3602_v63 }
0x1586   : > { %v3565_v38 = vadd.f32 %v3564_v50, %v3563_v39  ;;  %3613 = vmatpush.msra.mxu1 %v3601_v41 }
0x1588   : > { %v3566_v58 = vrot.slane %v3565_v38, 2  ;;  %3614 = vmatpush.msra.mxu1 %v3600_v55 }
0x158a   : > { %v3567_v45 = vadd.f32 %v3566_v58, %v3565_v38 }
0x158c   : > { %v3568_v29 = vrot.slane %v3567_v45, 1 }
0x158e   : > { %v3569_v46 = vadd.f32 %v3568_v29, %v3567_v45 }
0x1590   : > { %3570 = vadd.xlane.f32.xlu1 %v3569_v46 }
0x1603   : > { %v3571_v6 = vpop.xlane.xlu1 %3570 }
0x1604   : > { %v3572_v42 = vmul.f32 0.015625, %v3571_v6 }
0x1606   : > { %v5854_v37 = vsub.f32 %v3569_v46, %v3572_v42 }
0x1608   : > { %v3574_v48 = vmul.f32 %v5854_v37, %v5854_v37 }
0x160a   : > { %v3575_v53 = vmul.f32 %v4438_v57, %v3574_v48  ;;  %v3599_v57 = vld [vmem:[%s5973_s16 + $0x40] sm:$0xff] }
0x160b   : > { %3615 = vmatpush.msra.mxu1 %v3599_v57 }
0x160c   : > { %3576 = vadd.xlane.f32.xlu2 %v3575_v53 }
0x160d   : > { %3616 = vmatpush.msra.mxu1 %v3598_v59 }
0x160f   : > { %3617 = vmatpush.msra.mxu1 %v3597_v60 }
0x1611   : > { %3618 = vmatpush.msra.mxu1 %v3596_v61 }
0x1613   : > { %3619 = vmatpush.msra.mxu1 %v3595_v9 }
0x1615   : > { %3620 = vmatpush.msra.mxu1 %v3594_v43 }
0x1617   : > { %3621 = vmatpush.msra.mxu1 %v3593_v10 }
0x1619   : > { %3622 = vmatpush.msra.mxu1 %v3592_v15 }
0x161b   : > { %3623 = vmatpush.msra.mxu1 %v3591_v5 }
0x167f   : > { %v3577_v12 = vpop.xlane.xlu2 %3576 }
0x1680   : > { %v3578_v51 = vmul.f32 0.015625, %v3577_v12 }
0x1682   : > { %v3579_v19 = vadd.f32 1e-05, %v3578_v51 }
0x1684   : > { %4172 = vrsqrt.f32 %v3579_v19  ;;  %vm3586_vm9 = vweird.f32 %v3579_v19 }
0x168a   : > { %v4173_v14 = vpop.eup %4172 }
0x168b   : > { %v3581_v4 = vmul.f32 %v4173_v14, %v3579_v19  ;;  %vm3587_vm8 = vweird.f32 %v4173_v14 }
0x168c   : > { %vm3588_vm10 = vmor %vm3586_vm9, %vm3587_vm8 }
0x168d   : > { %v3582_v23 = vmul.f32 %v4173_v14, %v3581_v4 }
0x168f   : > { %v3583_v13 = vmul.f32 0.5, %v3582_v23 }
0x1691   : > { %v3584_v2 = vsub.f32 1.5, %v3583_v13 }
0x1693   : > { %v3585_v7 = vmul.f32 %v4173_v14, %v3584_v2 }
0x1695   : > { %v3589_v27 = vsel %vm3588_vm10, %v4173_v14, %v3585_v7 }
0x1696   : > { %v3590_v28 = vmul.f32 %v3589_v27, %v5854_v37 }
0x1698   : > { %3624 = vmatmul.f32.vlgmr.msra.gmra.mxu1 %v3590_v28 }
0x1715   : > { %v3625_v0 = vpop.f32.mrf.mxu1 }
0x1716   : > { %v3626_v20 = vadd.f32 %v3625_v0, %v3607_v18 }
0x1718   : > { %v3628_v8 = vmax.f32 %v3626_v20, 0.0 }
0x171a   : > { %3662 = vmatmul.f32.vlgmr.msrb.gmra.mxu2 %v3628_v8 }
0x179d   : > { %v3663_v34 = vpop.f32.mrf.mxu2 }
0x179e   : > { %v3664_v24 = vadd.f32 %v3663_v34, %v3645_v35 }
0x17a0   : > { %v3666_v56 = vperm.slane %v3664_v24, 0 }
0x17a2   : > { %3667 = vst [vmem:[%s629_s22] sm:$0xff] %v3666_v56 }
0x17a3 PF: > { %s32_s23 = sadd.s32 1, %s4180_s23  }
0x17a4   : > { %p29_p4 = scmp.ge.s32.totalorder %s32_s23, 4  }
0x17a6   :  { %31 = sbr.rel (!%p29_p4) target bundleno = 6 (0x6), region = 138 }

</bundles_post_ra>
